<compile_context>
chip_gen: v7x
topology: tpu7x:2x2x1
jax: 0.10.0
libtpu: 0.0.40
codegen_flags: <defaults>
</compile_context>

<pallas_src>
import jax
import jax.numpy as jnp
from jax.experimental import pallas as pl
from jax.experimental.pallas import tpu as pltpu

NUM_CLASSES = 6
BN_EPS = 1e-5
CPAD = 128   # lane-dense channel padding for all stored feature maps


# ---------------------------------------------------------------------------
# Kernel: generic KxK stride-1 conv + (BN-folded) bias + ReLU, one image per
# grid step.  im2col happens inside the kernel as K*K shifted slices of the
# VMEM-resident padded input tile, each fed to an MXU dot (bf16 x bf16 -> f32).
# ---------------------------------------------------------------------------
def _conv_bn_relu_kernel(x_ref, w_ref, b_ref, o_ref):
    hout, wout, cout = o_ref.shape
    hp, _, cin = x_ref.shape
    k = hp - hout + 1
    assert w_ref.shape[0] == k * k * cin
    x = x_ref[...]                                     # (hp, wp, cin) bf16
    acc = jnp.zeros((hout * wout, cout), jnp.float32)
    for kh in range(k):
        for kw in range(k):
            tap = kh * k + kw
            xt = x[kh:kh + hout, kw:kw + wout, :].reshape(hout * wout, cin)
            wt = w_ref[tap * cin:(tap + 1) * cin, :]
            acc = acc + jnp.dot(xt, wt, preferred_element_type=jnp.float32)
    y = jnp.maximum(acc + b_ref[...], 0.0)             # bias(+folded BN) + ReLU
    o_ref[...] = y.reshape(hout, wout, cout).astype(o_ref.dtype)


def conv_bn_relu(x_pad, w, b, hout, wout):
    """x_pad: (N, hout+K-1, wout+K-1, cin) bf16; w: (K*K*cin, CPAD) bf16."""
    n, hp, wp, cin = x_pad.shape
    kkcin, cout = w.shape
    flops = int(2 * n * hout * wout * kkcin * cout)
    bytes_accessed = int(x_pad.size * x_pad.dtype.itemsize
                         + w.size * w.dtype.itemsize + b.size * 4
                         + n * hout * wout * cout * 2)
    return pl.pallas_call(
        _conv_bn_relu_kernel,
        out_shape=jax.ShapeDtypeStruct((n, hout, wout, cout), jnp.bfloat16),
        grid=(n,),
        in_specs=[
            pl.BlockSpec((None, hp, wp, cin), lambda i: (i, 0, 0, 0)),
            pl.BlockSpec((kkcin, cout), lambda i: (0, 0)),
            pl.BlockSpec((1, cout), lambda i: (0, 0)),
        ],
        out_specs=pl.BlockSpec((None, hout, wout, cout), lambda i: (i, 0, 0, 0)),
        compiler_params=pltpu.CompilerParams(dimension_semantics=("parallel",)),
        cost_estimate=pl.CostEstimate(flops=flops, transcendentals=0,
                                      bytes_accessed=bytes_accessed),
    )(x_pad, w, b)


# ---------------------------------------------------------------------------
# Kernel: fused FCN head (3x3 conv+BN+ReLU -> dropout(eval) -> 1x1 classifier)
# + exact 2x bilinear upsample (align_corners=False) as a 2-tap lerp.
# ---------------------------------------------------------------------------
def _head_upsample_kernel(x_ref, w3_ref, b3_ref, w4_ref, b4_ref, o_ref, t_ref):
    hout2, wout2, cpad = o_ref.shape
    hout, wout = hout2 // 2, wout2 // 2
    _, _, cin = x_ref.shape
    x = x_ref[...]                                     # (hout+2, wout+2, cin)

    # 3x3 conv + folded-BN + ReLU (head conv), im2col fused in-kernel.
    acc = jnp.zeros((hout * wout, cpad), jnp.float32)
    for kh in range(3):
        for kw in range(3):
            tap = kh * 3 + kw
            xt = x[kh:kh + hout, kw:kw + wout, :].reshape(hout * wout, cin)
            acc = acc + jnp.dot(xt, w3_ref[tap * cin:(tap + 1) * cin, :],
                                preferred_element_type=jnp.float32)
    y = jnp.maximum(acc + b3_ref[...], 0.0)
    # dropout is identity in eval mode.

    # 1x1 classifier conv (kept in VMEM -- no (M, 8) HBM round trip).
    z = jnp.dot(y.astype(jnp.bfloat16), w4_ref[...],
                preferred_element_type=jnp.float32) + b4_ref[...]
    z = z.reshape(hout, wout, cpad)                    # logits, f32

    # Exact 2x bilinear upsample, align_corners=False:
    #   out[2i]   = 0.25*in[i-1] + 0.75*in[i]   (edge-clamped)
    #   out[2i+1] = 0.75*in[i]   + 0.25*in[i+1] (edge-clamped)
    # Pure VPU, channels stay in the lane dim; W pass into VMEM scratch,
    # then H pass straight to the output block.
    for j in range(wout):
        zc = z[:, j, :]
        zl = z[:, max(j - 1, 0), :]
        zr = z[:, min(j + 1, wout - 1), :]
        t_ref[:, 2 * j, :] = 0.25 * zl + 0.75 * zc
        t_ref[:, 2 * j + 1, :] = 0.75 * zc + 0.25 * zr
    for i in range(hout):
        tc = t_ref[i, :, :]
        tl = t_ref[max(i - 1, 0), :, :]
        tr = t_ref[min(i + 1, hout - 1), :, :]
        o_ref[2 * i, :, :] = 0.25 * tl + 0.75 * tc
        o_ref[2 * i + 1, :, :] = 0.75 * tc + 0.25 * tr
    # TODO(synk): lerp taps are specialized to the exact 2x ratio this
    # backbone produces; arbitrary ratios would need prefetched lo/hi/frac.


def head_upsample(x_pad, w3, b3, w4, b4):
    n, hp, wp, cin = x_pad.shape
    hout, wout = hp - 2, wp - 2
    cpad = w3.shape[1]
    flops = int(2 * n * hout * wout * (w3.shape[0] + cpad) * cpad)
    bytes_accessed = int(x_pad.size * 2 + (w3.size + w4.size) * 2
                         + n * 4 * hout * wout * cpad * 4)
    return pl.pallas_call(
        _head_upsample_kernel,
        out_shape=jax.ShapeDtypeStruct((n, 2 * hout, 2 * wout, cpad),
                                       jnp.float32),
        grid=(n,),
        in_specs=[
            pl.BlockSpec((None, hp, wp, cin), lambda i: (i, 0, 0, 0)),
            pl.BlockSpec(w3.shape, lambda i: (0, 0)),
            pl.BlockSpec((1, cpad), lambda i: (0, 0)),
            pl.BlockSpec(w4.shape, lambda i: (0, 0)),
            pl.BlockSpec((1, cpad), lambda i: (0, 0)),
        ],
        out_specs=pl.BlockSpec((None, 2 * hout, 2 * wout, cpad),
                               lambda i: (i, 0, 0, 0)),
        scratch_shapes=[pltpu.VMEM((hout, 2 * wout, cpad), jnp.float32)],
        compiler_params=pltpu.CompilerParams(dimension_semantics=("parallel",)),
        cost_estimate=pl.CostEstimate(flops=flops, transcendentals=0,
                                      bytes_accessed=bytes_accessed),
    )(x_pad, w3, b3, w4, b4)


# ---------------------------------------------------------------------------
# Weight packing: fold BN scale into weight columns, zero-pad channels to 128.
# ---------------------------------------------------------------------------
def _fold_bn(gamma, beta, mean, var):
    scale = gamma / jnp.sqrt(var + BN_EPS)
    return scale, beta - mean * scale


def _pack_conv3x3(w, scale, cin_pad, cpad=CPAD):
    """(3,3,cin,cout) conv weight -> BN-folded, padded (9*cin_pad, cpad)."""
    _, _, cin, cout = w.shape
    wf = w * scale
    wp = jnp.zeros((3, 3, cin_pad, cpad), w.dtype)
    wp = wp.at[:, :, :cin, :cout].set(wf)
    return wp.reshape(9 * cin_pad, cpad)


def _pack_conv1_s2(w, scale, cpad=CPAD):
    """Stride-2 3x3 conv -> equivalent stride-1 2x2 conv over the 2x2
    space-to-depth input (4*cin channels).  Rows ordered (tap, a, b, cin)."""
    _, _, cin, cout = w.shape
    wf = w * scale
    w22 = jnp.zeros((2, 2, 2, 2, cin, cpad), w.dtype)
    for kh in range(3):
        for kw in range(3):
            dh, a = divmod(kh, 2)
            dw, b = divmod(kw, 2)
            w22 = w22.at[dh, dw, a, b, :, :cout].set(wf[kh, kw])
    return w22.reshape(16 * cin, cpad)


def _space_to_depth2(xp):
    """(N, Hp, Wp, C) with even Hp,Wp -> (N, Hp//2, Wp//2, 4*C), channel order
    (a, b, c) matching _pack_conv1_s2."""
    n, hp, wp, c = xp.shape
    x = xp.reshape(n, hp // 2, 2, wp // 2, 2, c)
    x = jnp.transpose(x, (0, 1, 3, 2, 4, 5))
    return x.reshape(n, hp // 2, wp // 2, 4 * c)


def init_params(key):
    ks = jax.random.split(key, 8)

    def conv_w(k, kh, kw, cin, cout):
        fan_in = kh * kw * cin
        return jax.random.normal(k, (kh, kw, cin, cout), jnp.float32) / jnp.sqrt(fan_in)

    def bn(k, c):
        k1, k2, k3 = jax.random.split(k, 3)
        gamma = 1.0 + 0.1 * jax.random.normal(k1, (c,), jnp.float32)
        beta = 0.1 * jax.random.normal(k2, (c,), jnp.float32)
        mean = 0.1 * jax.random.normal(k3, (c,), jnp.float32)
        var = jnp.ones((c,), jnp.float32)
        return _fold_bn(gamma, beta, mean, var)

    w1 = conv_w(ks[0], 3, 3, 3, 16);  s1, b1 = bn(ks[1], 16)
    w2 = conv_w(ks[2], 3, 3, 16, 32); s2, b2 = bn(ks[3], 32)
    w3 = conv_w(ks[4], 3, 3, 32, 8);  s3, b3 = bn(ks[5], 8)
    w4 = jax.random.normal(ks[6], (8, NUM_CLASSES), jnp.float32) / jnp.sqrt(8.0)
    b4 = 0.01 * jax.random.normal(ks[7], (NUM_CLASSES,), jnp.float32)

    def pad_bias(b):
        return jnp.pad(b, (0, CPAD - b.shape[0])).reshape(1, CPAD).astype(jnp.float32)

    return {
        "w1": _pack_conv1_s2(w1, s1).astype(jnp.bfloat16),
        "b1": pad_bias(b1),
        "w2": _pack_conv3x3(w2, s2, CPAD).astype(jnp.bfloat16),
        "b2": pad_bias(b2),
        "w3": _pack_conv3x3(w3, s3, CPAD).astype(jnp.bfloat16),
        "b3": pad_bias(b3),
        "w4": jnp.pad(w4, ((0, CPAD - 8), (0, CPAD - NUM_CLASSES))).astype(jnp.bfloat16),
        "b4": pad_bias(b4),
    }


# ---------------------------------------------------------------------------
# FCNWrapper.forward equivalent: run FCN, return only the main ('out') tensor.
# ---------------------------------------------------------------------------
def fcn_wrapper_forward(x_nchw, p):
    n, c, h, w = x_nchw.shape
    x = jnp.transpose(x_nchw, (0, 2, 3, 1)).astype(jnp.bfloat16)   # NCHW -> NHWC

    # backbone conv1: 3x3 stride-2 conv + BN + ReLU, computed directly at
    # stride 2 via space-to-depth (no wasted full-res FLOPs).
    xp = jnp.pad(x, ((0, 0), (1, 1), (1, 1), (0, 0)))
    xq = _space_to_depth2(xp)                                      # (N, H/2+1, W/2+1, 12)
    hh, wh = h // 2, w // 2
    f1 = conv_bn_relu(xq, p["w1"], p["b1"], hh, wh)                # (N, H/2, W/2, 128)

    # backbone conv2: 3x3 + BN + ReLU
    f1p = jnp.pad(f1, ((0, 0), (1, 1), (1, 1), (0, 0)))
    f2 = conv_bn_relu(f1p, p["w2"], p["b2"], hh, wh)               # (N, H/2, W/2, 128)

    # fused FCN head (3x3+BN+ReLU -> dropout(id) -> 1x1) + 2x bilinear upsample
    f2p = jnp.pad(f2, ((0, 0), (1, 1), (1, 1), (0, 0)))
    up = head_upsample(f2p, p["w3"], p["b3"], p["w4"], p["b4"])    # (N, H, W, 128) f32

    out = up[..., :NUM_CLASSES]                                    # drop channel padding
    return jnp.transpose(out, (0, 3, 1, 2))                        # back to NCHW


if __name__ == "__main__":
    key = jax.random.PRNGKey(0)
    k_x, k_p = jax.random.split(key)
    x = jax.random.normal(k_x, (2, 3, 16, 16), jnp.float32)        # NCHW input
    params = init_params(k_p)

    fwd = jax.jit(fcn_wrapper_forward)
    out = jax.block_until_ready(fwd(x, params))

    assert out.shape == (2, NUM_CLASSES, 16, 16), out.shape
    assert out.dtype == jnp.float32
    assert bool(jnp.all(jnp.isfinite(out)))
    print("KERNEL_OK")
</pallas_src>

<mosaic_0001>
module attributes {stable_mosaic.version = 11 : i64} {
  func.func @_conv_bn_relu_kernel(%arg0: i32, %arg1: memref<1x9x9x12xbf16, #tpu.memory_space<vmem>>, %arg2: memref<48x128xbf16, #tpu.memory_space<vmem>>, %arg3: memref<1x128xf32, #tpu.memory_space<vmem>>, %arg4: memref<1x8x8x128xbf16, #tpu.memory_space<vmem>>) attributes {dimension_semantics = [#tpu.dimension_semantics<parallel>], iteration_bounds = array<i64: 2>, scalar_prefetch = 0 : i64, scratch_operands = 0 : i64, tpu.core_type = #tpu.core_type<tc>, window_params = [{transform_indices = @transform_0, window_bounds = array<i64: 1, 9, 9, 12>}, {pipeline_mode = #tpu.pipeline_mode<synchronous>, transform_indices = @transform_1, window_bounds = array<i64: 48, 128>}, {pipeline_mode = #tpu.pipeline_mode<synchronous>, transform_indices = @transform_2, window_bounds = array<i64: 1, 128>}, {transform_indices = @transform_3, window_bounds = array<i64: 1, 8, 8, 128>}]} {
    %c0 = arith.constant 0 : index
    %c0_0 = arith.constant 0 : index
    %c0_1 = arith.constant 0 : index
    %c0_2 = arith.constant 0 : index
    %0 = vector.load %arg1[%c0, %c0_0, %c0_1, %c0_2] : memref<1x9x9x12xbf16, #tpu.memory_space<vmem>>, vector<1x9x9x12xbf16>
    %1 = vector.shape_cast %0 : vector<1x9x9x12xbf16> to vector<9x9x12xbf16>
    %cst = arith.constant 0.000000e+00 : f32
    %2 = vector.broadcast %cst : f32 to vector<64x128xf32>
    %3 = vector.extract_strided_slice %1 {offsets = [0, 0, 0], sizes = [8, 8, 12], strides = [1, 1, 1]} : vector<9x9x12xbf16> to vector<8x8x12xbf16>
    %4 = vector.shape_cast %3 : vector<8x8x12xbf16> to vector<64x12xbf16>
    %c0_3 = arith.constant 0 : index
    %c0_4 = arith.constant 0 : index
    %5 = vector.load %arg2[%c0_3, %c0_4] : memref<48x128xbf16, #tpu.memory_space<vmem>>, vector<12x128xbf16>
    %cst_5 = arith.constant dense<0.000000e+00> : vector<64x128xf32>
    %6 = tpu.matmul %4, %5, %cst_5 {dimension_numbers = #tpu.dot_dimension_numbers<[1], [0], [0], [1], [0, 0, 1, 1], [], []>} : vector<64x12xbf16>, vector<12x128xbf16>, vector<64x128xf32> -> vector<64x128xf32>
    %7 = arith.addf %2, %6 : vector<64x128xf32>
    %8 = vector.extract_strided_slice %1 {offsets = [0, 1, 0], sizes = [8, 8, 12], strides = [1, 1, 1]} : vector<9x9x12xbf16> to vector<8x8x12xbf16>
    %9 = vector.shape_cast %8 : vector<8x8x12xbf16> to vector<64x12xbf16>
    %c12 = arith.constant 12 : index
    %c0_6 = arith.constant 0 : index
    %10 = vector.load %arg2[%c12, %c0_6] : memref<48x128xbf16, #tpu.memory_space<vmem>>, vector<12x128xbf16>
    %cst_7 = arith.constant dense<0.000000e+00> : vector<64x128xf32>
    %11 = tpu.matmul %9, %10, %cst_7 {dimension_numbers = #tpu.dot_dimension_numbers<[1], [0], [0], [1], [0, 0, 1, 1], [], []>} : vector<64x12xbf16>, vector<12x128xbf16>, vector<64x128xf32> -> vector<64x128xf32>
    %12 = arith.addf %7, %11 : vector<64x128xf32>
    %13 = vector.extract_strided_slice %1 {offsets = [1, 0, 0], sizes = [8, 8, 12], strides = [1, 1, 1]} : vector<9x9x12xbf16> to vector<8x8x12xbf16>
    %14 = vector.shape_cast %13 : vector<8x8x12xbf16> to vector<64x12xbf16>
    %c24 = arith.constant 24 : index
    %c0_8 = arith.constant 0 : index
    %15 = vector.load %arg2[%c24, %c0_8] : memref<48x128xbf16, #tpu.memory_space<vmem>>, vector<12x128xbf16>
    %cst_9 = arith.constant dense<0.000000e+00> : vector<64x128xf32>
    %16 = tpu.matmul %14, %15, %cst_9 {dimension_numbers = #tpu.dot_dimension_numbers<[1], [0], [0], [1], [0, 0, 1, 1], [], []>} : vector<64x12xbf16>, vector<12x128xbf16>, vector<64x128xf32> -> vector<64x128xf32>
    %17 = arith.addf %12, %16 : vector<64x128xf32>
    %18 = vector.extract_strided_slice %1 {offsets = [1, 1, 0], sizes = [8, 8, 12], strides = [1, 1, 1]} : vector<9x9x12xbf16> to vector<8x8x12xbf16>
    %19 = vector.shape_cast %18 : vector<8x8x12xbf16> to vector<64x12xbf16>
    %c36 = arith.constant 36 : index
    %c0_10 = arith.constant 0 : index
    %20 = vector.load %arg2[%c36, %c0_10] : memref<48x128xbf16, #tpu.memory_space<vmem>>, vector<12x128xbf16>
    %cst_11 = arith.constant dense<0.000000e+00> : vector<64x128xf32>
    %21 = tpu.matmul %19, %20, %cst_11 {dimension_numbers = #tpu.dot_dimension_numbers<[1], [0], [0], [1], [0, 0, 1, 1], [], []>} : vector<64x12xbf16>, vector<12x128xbf16>, vector<64x128xf32> -> vector<64x128xf32>
    %22 = arith.addf %17, %21 : vector<64x128xf32>
    %c0_12 = arith.constant 0 : index
    %c0_13 = arith.constant 0 : index
    %23 = vector.load %arg3[%c0_12, %c0_13] : memref<1x128xf32, #tpu.memory_space<vmem>>, vector<1x128xf32>
    %24 = vector.broadcast %23 : vector<1x128xf32> to vector<64x128xf32>
    %25 = arith.addf %22, %24 : vector<64x128xf32>
    %cst_14 = arith.constant 0.000000e+00 : f32
    %26 = vector.broadcast %cst_14 : f32 to vector<64x128xf32>
    %27 = arith.maximumf %25, %26 : vector<64x128xf32>
    %28 = vector.shape_cast %27 : vector<64x128xf32> to vector<8x8x128xf32>
    %29 = arith.truncf %28 : vector<8x8x128xf32> to vector<8x8x128xbf16>
    %c0_15 = arith.constant 0 : index
    %c0_16 = arith.constant 0 : index
    %c0_17 = arith.constant 0 : index
    %c0_18 = arith.constant 0 : index
    %30 = vector.load %arg4[%c0_15, %c0_16, %c0_17, %c0_18] : memref<1x8x8x128xbf16, #tpu.memory_space<vmem>>, vector<1x8x8x128xbf16>
    %31 = vector.shape_cast %30 : vector<1x8x8x128xbf16> to vector<8x8x128xbf16>
    %32 = vector.shape_cast %29 : vector<8x8x128xbf16> to vector<1x8x8x128xbf16>
    tpu.vector_store %arg4[%c0_15, %c0_16, %c0_17, %c0_18], %32 {strides = array<i32>} : memref<1x8x8x128xbf16, #tpu.memory_space<vmem>>, vector<1x8x8x128xbf16>,
    return
  }
  func.func @transform_0(%arg0: i32) -> (i32, i32, i32, i32) {
    %c0_i32 = arith.constant 0 : i32
    %c0_i32_0 = arith.constant 0 : i32
    %c0_i32_1 = arith.constant 0 : i32
    %c0_i32_2 = arith.constant 0 : i32
    return %arg0, %c0_i32, %c0_i32_0, %c0_i32_1 : i32, i32, i32, i32
  }
  func.func @transform_1(%arg0: i32) -> (i32, i32) {
    %c0_i32 = arith.constant 0 : i32
    %c0_i32_0 = arith.constant 0 : i32
    %c0_i32_1 = arith.constant 0 : i32
    return %c0_i32, %c0_i32_0 : i32, i32
  }
  func.func @transform_2(%arg0: i32) -> (i32, i32) {
    %c0_i32 = arith.constant 0 : i32
    %c0_i32_0 = arith.constant 0 : i32
    %c0_i32_1 = arith.constant 0 : i32
    return %c0_i32, %c0_i32_0 : i32, i32
  }
  func.func @transform_3(%arg0: i32) -> (i32, i32, i32, i32) {
    %c0_i32 = arith.constant 0 : i32
    %c0_i32_0 = arith.constant 0 : i32
    %c0_i32_1 = arith.constant 0 : i32
    %c0_i32_2 = arith.constant 0 : i32
    return %arg0, %c0_i32, %c0_i32_0, %c0_i32_1 : i32, i32, i32, i32
  }
}

module attributes {stable_mosaic.version = 11 : i64} {
  func.func @_conv_bn_relu_kernel(%arg0: i32, %arg1: memref<1x10x10x128xbf16, #tpu.memory_space<vmem>>, %arg2: memref<1152x128xbf16, #tpu.memory_space<vmem>>, %arg3: memref<1x128xf32, #tpu.memory_space<vmem>>, %arg4: memref<1x8x8x128xbf16, #tpu.memory_space<vmem>>) attributes {dimension_semantics = [#tpu.dimension_semantics<parallel>], iteration_bounds = array<i64: 2>, scalar_prefetch = 0 : i64, scratch_operands = 0 : i64, tpu.core_type = #tpu.core_type<tc>, window_params = [{transform_indices = @transform_0, window_bounds = array<i64: 1, 10, 10, 128>}, {pipeline_mode = #tpu.pipeline_mode<synchronous>, transform_indices = @transform_1, window_bounds = array<i64: 1152, 128>}, {pipeline_mode = #tpu.pipeline_mode<synchronous>, transform_indices = @transform_2, window_bounds = array<i64: 1, 128>}, {transform_indices = @transform_3, window_bounds = array<i64: 1, 8, 8, 128>}]} {
    %c0 = arith.constant 0 : index
    %c0_0 = arith.constant 0 : index
    %c0_1 = arith.constant 0 : index
    %c0_2 = arith.constant 0 : index
    %0 = vector.load %arg1[%c0, %c0_0, %c0_1, %c0_2] : memref<1x10x10x128xbf16, #tpu.memory_space<vmem>>, vector<1x10x10x128xbf16>
    %1 = vector.shape_cast %0 : vector<1x10x10x128xbf16> to vector<10x10x128xbf16>
    %cst = arith.constant 0.000000e+00 : f32
    %2 = vector.broadcast %cst : f32 to vector<64x128xf32>
    %3 = vector.extract_strided_slice %1 {offsets = [0, 0, 0], sizes = [8, 8, 128], strides = [1, 1, 1]} : vector<10x10x128xbf16> to vector<8x8x128xbf16>
    %4 = vector.shape_cast %3 : vector<8x8x128xbf16> to vector<64x128xbf16>
    %c0_3 = arith.constant 0 : index
    %c0_4 = arith.constant 0 : index
    %5 = vector.load %arg2[%c0_3, %c0_4] : memref<1152x128xbf16, #tpu.memory_space<vmem>>, vector<128x128xbf16>
    %cst_5 = arith.constant dense<0.000000e+00> : vector<64x128xf32>
    %6 = tpu.matmul %4, %5, %cst_5 {dimension_numbers = #tpu.dot_dimension_numbers<[1], [0], [0], [1], [0, 0, 1, 1], [], []>} : vector<64x128xbf16>, vector<128x128xbf16>, vector<64x128xf32> -> vector<64x128xf32>
    %7 = arith.addf %2, %6 : vector<64x128xf32>
    %8 = vector.extract_strided_slice %1 {offsets = [0, 1, 0], sizes = [8, 8, 128], strides = [1, 1, 1]} : vector<10x10x128xbf16> to vector<8x8x128xbf16>
    %9 = vector.shape_cast %8 : vector<8x8x128xbf16> to vector<64x128xbf16>
    %c128 = arith.constant 128 : index
    %c0_6 = arith.constant 0 : index
    %10 = vector.load %arg2[%c128, %c0_6] : memref<1152x128xbf16, #tpu.memory_space<vmem>>, vector<128x128xbf16>
    %cst_7 = arith.constant dense<0.000000e+00> : vector<64x128xf32>
    %11 = tpu.matmul %9, %10, %cst_7 {dimension_numbers = #tpu.dot_dimension_numbers<[1], [0], [0], [1], [0, 0, 1, 1], [], []>} : vector<64x128xbf16>, vector<128x128xbf16>, vector<64x128xf32> -> vector<64x128xf32>
    %12 = arith.addf %7, %11 : vector<64x128xf32>
    %13 = vector.extract_strided_slice %1 {offsets = [0, 2, 0], sizes = [8, 8, 128], strides = [1, 1, 1]} : vector<10x10x128xbf16> to vector<8x8x128xbf16>
    %14 = vector.shape_cast %13 : vector<8x8x128xbf16> to vector<64x128xbf16>
    %c256 = arith.constant 256 : index
    %c0_8 = arith.constant 0 : index
    %15 = vector.load %arg2[%c256, %c0_8] : memref<1152x128xbf16, #tpu.memory_space<vmem>>, vector<128x128xbf16>
    %cst_9 = arith.constant dense<0.000000e+00> : vector<64x128xf32>
    %16 = tpu.matmul %14, %15, %cst_9 {dimension_numbers = #tpu.dot_dimension_numbers<[1], [0], [0], [1], [0, 0, 1, 1], [], []>} : vector<64x128xbf16>, vector<128x128xbf16>, vector<64x128xf32> -> vector<64x128xf32>
    %17 = arith.addf %12, %16 : vector<64x128xf32>
    %18 = vector.extract_strided_slice %1 {offsets = [1, 0, 0], sizes = [8, 8, 128], strides = [1, 1, 1]} : vector<10x10x128xbf16> to vector<8x8x128xbf16>
    %19 = vector.shape_cast %18 : vector<8x8x128xbf16> to vector<64x128xbf16>
    %c384 = arith.constant 384 : index
    %c0_10 = arith.constant 0 : index
    %20 = vector.load %arg2[%c384, %c0_10] : memref<1152x128xbf16, #tpu.memory_space<vmem>>, vector<128x128xbf16>
    %cst_11 = arith.constant dense<0.000000e+00> : vector<64x128xf32>
    %21 = tpu.matmul %19, %20, %cst_11 {dimension_numbers = #tpu.dot_dimension_numbers<[1], [0], [0], [1], [0, 0, 1, 1], [], []>} : vector<64x128xbf16>, vector<128x128xbf16>, vector<64x128xf32> -> vector<64x128xf32>
    %22 = arith.addf %17, %21 : vector<64x128xf32>
    %23 = vector.extract_strided_slice %1 {offsets = [1, 1, 0], sizes = [8, 8, 128], strides = [1, 1, 1]} : vector<10x10x128xbf16> to vector<8x8x128xbf16>
    %24 = vector.shape_cast %23 : vector<8x8x128xbf16> to vector<64x128xbf16>
    %c512 = arith.constant 512 : index
    %c0_12 = arith.constant 0 : index
    %25 = vector.load %arg2[%c512, %c0_12] : memref<1152x128xbf16, #tpu.memory_space<vmem>>, vector<128x128xbf16>
    %cst_13 = arith.constant dense<0.000000e+00> : vector<64x128xf32>
    %26 = tpu.matmul %24, %25, %cst_13 {dimension_numbers = #tpu.dot_dimension_numbers<[1], [0], [0], [1], [0, 0, 1, 1], [], []>} : vector<64x128xbf16>, vector<128x128xbf16>, vector<64x128xf32> -> vector<64x128xf32>
    %27 = arith.addf %22, %26 : vector<64x128xf32>
    %28 = vector.extract_strided_slice %1 {offsets = [1, 2, 0], sizes = [8, 8, 128], strides = [1, 1, 1]} : vector<10x10x128xbf16> to vector<8x8x128xbf16>
    %29 = vector.shape_cast %28 : vector<8x8x128xbf16> to vector<64x128xbf16>
    %c640 = arith.constant 640 : index
    %c0_14 = arith.constant 0 : index
    %30 = vector.load %arg2[%c640, %c0_14] : memref<1152x128xbf16, #tpu.memory_space<vmem>>, vector<128x128xbf16>
    %cst_15 = arith.constant dense<0.000000e+00> : vector<64x128xf32>
    %31 = tpu.matmul %29, %30, %cst_15 {dimension_numbers = #tpu.dot_dimension_numbers<[1], [0], [0], [1], [0, 0, 1, 1], [], []>} : vector<64x128xbf16>, vector<128x128xbf16>, vector<64x128xf32> -> vector<64x128xf32>
    %32 = arith.addf %27, %31 : vector<64x128xf32>
    %33 = vector.extract_strided_slice %1 {offsets = [2, 0, 0], sizes = [8, 8, 128], strides = [1, 1, 1]} : vector<10x10x128xbf16> to vector<8x8x128xbf16>
    %34 = vector.shape_cast %33 : vector<8x8x128xbf16> to vector<64x128xbf16>
    %c768 = arith.constant 768 : index
    %c0_16 = arith.constant 0 : index
    %35 = vector.load %arg2[%c768, %c0_16] : memref<1152x128xbf16, #tpu.memory_space<vmem>>, vector<128x128xbf16>
    %cst_17 = arith.constant dense<0.000000e+00> : vector<64x128xf32>
    %36 = tpu.matmul %34, %35, %cst_17 {dimension_numbers = #tpu.dot_dimension_numbers<[1], [0], [0], [1], [0, 0, 1, 1], [], []>} : vector<64x128xbf16>, vector<128x128xbf16>, vector<64x128xf32> -> vector<64x128xf32>
    %37 = arith.addf %32, %36 : vector<64x128xf32>
    %38 = vector.extract_strided_slice %1 {offsets = [2, 1, 0], sizes = [8, 8, 128], strides = [1, 1, 1]} : vector<10x10x128xbf16> to vector<8x8x128xbf16>
    %39 = vector.shape_cast %38 : vector<8x8x128xbf16> to vector<64x128xbf16>
    %c896 = arith.constant 896 : index
    %c0_18 = arith.constant 0 : index
    %40 = vector.load %arg2[%c896, %c0_18] : memref<1152x128xbf16, #tpu.memory_space<vmem>>, vector<128x128xbf16>
    %cst_19 = arith.constant dense<0.000000e+00> : vector<64x128xf32>
    %41 = tpu.matmul %39, %40, %cst_19 {dimension_numbers = #tpu.dot_dimension_numbers<[1], [0], [0], [1], [0, 0, 1, 1], [], []>} : vector<64x128xbf16>, vector<128x128xbf16>, vector<64x128xf32> -> vector<64x128xf32>
    %42 = arith.addf %37, %41 : vector<64x128xf32>
    %43 = vector.extract_strided_slice %1 {offsets = [2, 2, 0], sizes = [8, 8, 128], strides = [1, 1, 1]} : vector<10x10x128xbf16> to vector<8x8x128xbf16>
    %44 = vector.shape_cast %43 : vector<8x8x128xbf16> to vector<64x128xbf16>
    %c1024 = arith.constant 1024 : index
    %c0_20 = arith.constant 0 : index
    %45 = vector.load %arg2[%c1024, %c0_20] : memref<1152x128xbf16, #tpu.memory_space<vmem>>, vector<128x128xbf16>
    %cst_21 = arith.constant dense<0.000000e+00> : vector<64x128xf32>
    %46 = tpu.matmul %44, %45, %cst_21 {dimension_numbers = #tpu.dot_dimension_numbers<[1], [0], [0], [1], [0, 0, 1, 1], [], []>} : vector<64x128xbf16>, vector<128x128xbf16>, vector<64x128xf32> -> vector<64x128xf32>
    %47 = arith.addf %42, %46 : vector<64x128xf32>
    %c0_22 = arith.constant 0 : index
    %c0_23 = arith.constant 0 : index
    %48 = vector.load %arg3[%c0_22, %c0_23] : memref<1x128xf32, #tpu.memory_space<vmem>>, vector<1x128xf32>
    %49 = vector.broadcast %48 : vector<1x128xf32> to vector<64x128xf32>
    %50 = arith.addf %47, %49 : vector<64x128xf32>
    %cst_24 = arith.constant 0.000000e+00 : f32
    %51 = vector.broadcast %cst_24 : f32 to vector<64x128xf32>
    %52 = arith.maximumf %50, %51 : vector<64x128xf32>
    %53 = vector.shape_cast %52 : vector<64x128xf32> to vector<8x8x128xf32>
    %54 = arith.truncf %53 : vector<8x8x128xf32> to vector<8x8x128xbf16>
    %c0_25 = arith.constant 0 : index
    %c0_26 = arith.constant 0 : index
    %c0_27 = arith.constant 0 : index
    %c0_28 = arith.constant 0 : index
    %55 = vector.load %arg4[%c0_25, %c0_26, %c0_27, %c0_28] : memref<1x8x8x128xbf16, #tpu.memory_space<vmem>>, vector<1x8x8x128xbf16>
    %56 = vector.shape_cast %55 : vector<1x8x8x128xbf16> to vector<8x8x128xbf16>
    %57 = vector.shape_cast %54 : vector<8x8x128xbf16> to vector<1x8x8x128xbf16>
    tpu.vector_store %arg4[%c0_25, %c0_26, %c0_27, %c0_28], %57 {strides = array<i32>} : memref<1x8x8x128xbf16, #tpu.memory_space<vmem>>, vector<1x8x8x128xbf16>,
    return
  }
  func.func @transform_0(%arg0: i32) -> (i32, i32, i32, i32) {
    %c0_i32 = arith.constant 0 : i32
    %c0_i32_0 = arith.constant 0 : i32
    %c0_i32_1 = arith.constant 0 : i32
    %c0_i32_2 = arith.constant 0 : i32
    return %arg0, %c0_i32, %c0_i32_0, %c0_i32_1 : i32, i32, i32, i32
  }
  func.func @transform_1(%arg0: i32) -> (i32, i32) {
    %c0_i32 = arith.constant 0 : i32
    %c0_i32_0 = arith.constant 0 : i32
    %c0_i32_1 = arith.constant 0 : i32
    return %c0_i32, %c0_i32_0 : i32, i32
  }
  func.func @transform_2(%arg0: i32) -> (i32, i32) {
    %c0_i32 = arith.constant 0 : i32
    %c0_i32_0 = arith.constant 0 : i32
    %c0_i32_1 = arith.constant 0 : i32
    return %c0_i32, %c0_i32_0 : i32, i32
  }
  func.func @transform_3(%arg0: i32) -> (i32, i32, i32, i32) {
    %c0_i32 = arith.constant 0 : i32
    %c0_i32_0 = arith.constant 0 : i32
    %c0_i32_1 = arith.constant 0 : i32
    %c0_i32_2 = arith.constant 0 : i32
    return %arg0, %c0_i32, %c0_i32_0, %c0_i32_1 : i32, i32, i32, i32
  }
}

module attributes {stable_mosaic.version = 11 : i64} {
  func.func @_head_upsample_kernel(%arg0: i32, %arg1: memref<1x10x10x128xbf16, #tpu.memory_space<vmem>>, %arg2: memref<1152x128xbf16, #tpu.memory_space<vmem>>, %arg3: memref<1x128xf32, #tpu.memory_space<vmem>>, %arg4: memref<128x128xbf16, #tpu.memory_space<vmem>>, %arg5: memref<1x128xf32, #tpu.memory_space<vmem>>, %arg6: memref<1x16x16x128xf32, #tpu.memory_space<vmem>>, %arg7: memref<8x16x128xf32, #tpu.memory_space<vmem>>) attributes {dimension_semantics = [#tpu.dimension_semantics<parallel>], iteration_bounds = array<i64: 2>, scalar_prefetch = 0 : i64, scratch_operands = 1 : i64, tpu.core_type = #tpu.core_type<tc>, window_params = [{transform_indices = @transform_0, window_bounds = array<i64: 1, 10, 10, 128>}, {pipeline_mode = #tpu.pipeline_mode<synchronous>, transform_indices = @transform_1, window_bounds = array<i64: 1152, 128>}, {pipeline_mode = #tpu.pipeline_mode<synchronous>, transform_indices = @transform_2, window_bounds = array<i64: 1, 128>}, {pipeline_mode = #tpu.pipeline_mode<synchronous>, transform_indices = @transform_3, window_bounds = array<i64: 128, 128>}, {pipeline_mode = #tpu.pipeline_mode<synchronous>, transform_indices = @transform_4, window_bounds = array<i64: 1, 128>}, {transform_indices = @transform_5, window_bounds = array<i64: 1, 16, 16, 128>}]} {
    %c0 = arith.constant 0 : index
    %c0_0 = arith.constant 0 : index
    %c0_1 = arith.constant 0 : index
    %c0_2 = arith.constant 0 : index
    %0 = vector.load %arg1[%c0, %c0_0, %c0_1, %c0_2] : memref<1x10x10x128xbf16, #tpu.memory_space<vmem>>, vector<1x10x10x128xbf16>
    %1 = vector.shape_cast %0 : vector<1x10x10x128xbf16> to vector<10x10x128xbf16>
    %cst = arith.constant 0.000000e+00 : f32
    %2 = vector.broadcast %cst : f32 to vector<64x128xf32>
    %3 = vector.extract_strided_slice %1 {offsets = [0, 0, 0], sizes = [8, 8, 128], strides = [1, 1, 1]} : vector<10x10x128xbf16> to vector<8x8x128xbf16>
    %4 = vector.shape_cast %3 : vector<8x8x128xbf16> to vector<64x128xbf16>
    %c0_3 = arith.constant 0 : index
    %c0_4 = arith.constant 0 : index
    %5 = vector.load %arg2[%c0_3, %c0_4] : memref<1152x128xbf16, #tpu.memory_space<vmem>>, vector<128x128xbf16>
    %cst_5 = arith.constant dense<0.000000e+00> : vector<64x128xf32>
    %6 = tpu.matmul %4, %5, %cst_5 {dimension_numbers = #tpu.dot_dimension_numbers<[1], [0], [0], [1], [0, 0, 1, 1], [], []>} : vector<64x128xbf16>, vector<128x128xbf16>, vector<64x128xf32> -> vector<64x128xf32>
    %7 = arith.addf %2, %6 : vector<64x128xf32>
    %8 = vector.extract_strided_slice %1 {offsets = [0, 1, 0], sizes = [8, 8, 128], strides = [1, 1, 1]} : vector<10x10x128xbf16> to vector<8x8x128xbf16>
    %9 = vector.shape_cast %8 : vector<8x8x128xbf16> to vector<64x128xbf16>
    %c128 = arith.constant 128 : index
    %c0_6 = arith.constant 0 : index
    %10 = vector.load %arg2[%c128, %c0_6] : memref<1152x128xbf16, #tpu.memory_space<vmem>>, vector<128x128xbf16>
    %cst_7 = arith.constant dense<0.000000e+00> : vector<64x128xf32>
    %11 = tpu.matmul %9, %10, %cst_7 {dimension_numbers = #tpu.dot_dimension_numbers<[1], [0], [0], [1], [0, 0, 1, 1], [], []>} : vector<64x128xbf16>, vector<128x128xbf16>, vector<64x128xf32> -> vector<64x128xf32>
    %12 = arith.addf %7, %11 : vector<64x128xf32>
    %13 = vector.extract_strided_slice %1 {offsets = [0, 2, 0], sizes = [8, 8, 128], strides = [1, 1, 1]} : vector<10x10x128xbf16> to vector<8x8x128xbf16>
    %14 = vector.shape_cast %13 : vector<8x8x128xbf16> to vector<64x128xbf16>
    %c256 = arith.constant 256 : index
    %c0_8 = arith.constant 0 : index
    %15 = vector.load %arg2[%c256, %c0_8] : memref<1152x128xbf16, #tpu.memory_space<vmem>>, vector<128x128xbf16>
    %cst_9 = arith.constant dense<0.000000e+00> : vector<64x128xf32>
    %16 = tpu.matmul %14, %15, %cst_9 {dimension_numbers = #tpu.dot_dimension_numbers<[1], [0], [0], [1], [0, 0, 1, 1], [], []>} : vector<64x128xbf16>, vector<128x128xbf16>, vector<64x128xf32> -> vector<64x128xf32>
    %17 = arith.addf %12, %16 : vector<64x128xf32>
    %18 = vector.extract_strided_slice %1 {offsets = [1, 0, 0], sizes = [8, 8, 128], strides = [1, 1, 1]} : vector<10x10x128xbf16> to vector<8x8x128xbf16>
    %19 = vector.shape_cast %18 : vector<8x8x128xbf16> to vector<64x128xbf16>
    %c384 = arith.constant 384 : index
    %c0_10 = arith.constant 0 : index
    %20 = vector.load %arg2[%c384, %c0_10] : memref<1152x128xbf16, #tpu.memory_space<vmem>>, vector<128x128xbf16>
    %cst_11 = arith.constant dense<0.000000e+00> : vector<64x128xf32>
    %21 = tpu.matmul %19, %20, %cst_11 {dimension_numbers = #tpu.dot_dimension_numbers<[1], [0], [0], [1], [0, 0, 1, 1], [], []>} : vector<64x128xbf16>, vector<128x128xbf16>, vector<64x128xf32> -> vector<64x128xf32>
    %22 = arith.addf %17, %21 : vector<64x128xf32>
    %23 = vector.extract_strided_slice %1 {offsets = [1, 1, 0], sizes = [8, 8, 128], strides = [1, 1, 1]} : vector<10x10x128xbf16> to vector<8x8x128xbf16>
    %24 = vector.shape_cast %23 : vector<8x8x128xbf16> to vector<64x128xbf16>
    %c512 = arith.constant 512 : index
    %c0_12 = arith.constant 0 : index
    %25 = vector.load %arg2[%c512, %c0_12] : memref<1152x128xbf16, #tpu.memory_space<vmem>>, vector<128x128xbf16>
    %cst_13 = arith.constant dense<0.000000e+00> : vector<64x128xf32>
    %26 = tpu.matmul %24, %25, %cst_13 {dimension_numbers = #tpu.dot_dimension_numbers<[1], [0], [0], [1], [0, 0, 1, 1], [], []>} : vector<64x128xbf16>, vector<128x128xbf16>, vector<64x128xf32> -> vector<64x128xf32>
    %27 = arith.addf %22, %26 : vector<64x128xf32>
    %28 = vector.extract_strided_slice %1 {offsets = [1, 2, 0], sizes = [8, 8, 128], strides = [1, 1, 1]} : vector<10x10x128xbf16> to vector<8x8x128xbf16>
    %29 = vector.shape_cast %28 : vector<8x8x128xbf16> to vector<64x128xbf16>
    %c640 = arith.constant 640 : index
    %c0_14 = arith.constant 0 : index
    %30 = vector.load %arg2[%c640, %c0_14] : memref<1152x128xbf16, #tpu.memory_space<vmem>>, vector<128x128xbf16>
    %cst_15 = arith.constant dense<0.000000e+00> : vector<64x128xf32>
    %31 = tpu.matmul %29, %30, %cst_15 {dimension_numbers = #tpu.dot_dimension_numbers<[1], [0], [0], [1], [0, 0, 1, 1], [], []>} : vector<64x128xbf16>, vector<128x128xbf16>, vector<64x128xf32> -> vector<64x128xf32>
    %32 = arith.addf %27, %31 : vector<64x128xf32>
    %33 = vector.extract_strided_slice %1 {offsets = [2, 0, 0], sizes = [8, 8, 128], strides = [1, 1, 1]} : vector<10x10x128xbf16> to vector<8x8x128xbf16>
    %34 = vector.shape_cast %33 : vector<8x8x128xbf16> to vector<64x128xbf16>
    %c768 = arith.constant 768 : index
    %c0_16 = arith.constant 0 : index
    %35 = vector.load %arg2[%c768, %c0_16] : memref<1152x128xbf16, #tpu.memory_space<vmem>>, vector<128x128xbf16>
    %cst_17 = arith.constant dense<0.000000e+00> : vector<64x128xf32>
    %36 = tpu.matmul %34, %35, %cst_17 {dimension_numbers = #tpu.dot_dimension_numbers<[1], [0], [0], [1], [0, 0, 1, 1], [], []>} : vector<64x128xbf16>, vector<128x128xbf16>, vector<64x128xf32> -> vector<64x128xf32>
    %37 = arith.addf %32, %36 : vector<64x128xf32>
    %38 = vector.extract_strided_slice %1 {offsets = [2, 1, 0], sizes = [8, 8, 128], strides = [1, 1, 1]} : vector<10x10x128xbf16> to vector<8x8x128xbf16>
    %39 = vector.shape_cast %38 : vector<8x8x128xbf16> to vector<64x128xbf16>
    %c896 = arith.constant 896 : index
    %c0_18 = arith.constant 0 : index
    %40 = vector.load %arg2[%c896, %c0_18] : memref<1152x128xbf16, #tpu.memory_space<vmem>>, vector<128x128xbf16>
    %cst_19 = arith.constant dense<0.000000e+00> : vector<64x128xf32>
    %41 = tpu.matmul %39, %40, %cst_19 {dimension_numbers = #tpu.dot_dimension_numbers<[1], [0], [0], [1], [0, 0, 1, 1], [], []>} : vector<64x128xbf16>, vector<128x128xbf16>, vector<64x128xf32> -> vector<64x128xf32>
    %42 = arith.addf %37, %41 : vector<64x128xf32>
    %43 = vector.extract_strided_slice %1 {offsets = [2, 2, 0], sizes = [8, 8, 128], strides = [1, 1, 1]} : vector<10x10x128xbf16> to vector<8x8x128xbf16>
    %44 = vector.shape_cast %43 : vector<8x8x128xbf16> to vector<64x128xbf16>
    %c1024 = arith.constant 1024 : index
    %c0_20 = arith.constant 0 : index
    %45 = vector.load %arg2[%c1024, %c0_20] : memref<1152x128xbf16, #tpu.memory_space<vmem>>, vector<128x128xbf16>
    %cst_21 = arith.constant dense<0.000000e+00> : vector<64x128xf32>
    %46 = tpu.matmul %44, %45, %cst_21 {dimension_numbers = #tpu.dot_dimension_numbers<[1], [0], [0], [1], [0, 0, 1, 1], [], []>} : vector<64x128xbf16>, vector<128x128xbf16>, vector<64x128xf32> -> vector<64x128xf32>
    %47 = arith.addf %42, %46 : vector<64x128xf32>
    %c0_22 = arith.constant 0 : index
    %c0_23 = arith.constant 0 : index
    %48 = vector.load %arg3[%c0_22, %c0_23] : memref<1x128xf32, #tpu.memory_space<vmem>>, vector<1x128xf32>
    %49 = vector.broadcast %48 : vector<1x128xf32> to vector<64x128xf32>
    %50 = arith.addf %47, %49 : vector<64x128xf32>
    %cst_24 = arith.constant 0.000000e+00 : f32
    %51 = vector.broadcast %cst_24 : f32 to vector<64x128xf32>
    %52 = arith.maximumf %50, %51 : vector<64x128xf32>
    %53 = arith.truncf %52 : vector<64x128xf32> to vector<64x128xbf16>
    %c0_25 = arith.constant 0 : index
    %c0_26 = arith.constant 0 : index
    %54 = vector.load %arg4[%c0_25, %c0_26] : memref<128x128xbf16, #tpu.memory_space<vmem>>, vector<128x128xbf16>
    %cst_27 = arith.constant dense<0.000000e+00> : vector<64x128xf32>
    %55 = tpu.matmul %53, %54, %cst_27 {dimension_numbers = #tpu.dot_dimension_numbers<[1], [0], [0], [1], [0, 0, 1, 1], [], []>} : vector<64x128xbf16>, vector<128x128xbf16>, vector<64x128xf32> -> vector<64x128xf32>
    %c0_28 = arith.constant 0 : index
    %c0_29 = arith.constant 0 : index
    %56 = vector.load %arg5[%c0_28, %c0_29] : memref<1x128xf32, #tpu.memory_space<vmem>>, vector<1x128xf32>
    %57 = vector.broadcast %56 : vector<1x128xf32> to vector<64x128xf32>
    %58 = arith.addf %55, %57 : vector<64x128xf32>
    %59 = vector.shape_cast %58 : vector<64x128xf32> to vector<8x8x128xf32>
    %60 = vector.extract_strided_slice %59 {offsets = [0, 0, 0], sizes = [8, 1, 128], strides = [1, 1, 1]} : vector<8x8x128xf32> to vector<8x1x128xf32>
    %61 = vector.shape_cast %60 : vector<8x1x128xf32> to vector<8x128xf32>
    %62 = vector.extract_strided_slice %59 {offsets = [0, 0, 0], sizes = [8, 1, 128], strides = [1, 1, 1]} : vector<8x8x128xf32> to vector<8x1x128xf32>
    %63 = vector.shape_cast %62 : vector<8x1x128xf32> to vector<8x128xf32>
    %64 = vector.extract_strided_slice %59 {offsets = [0, 1, 0], sizes = [8, 1, 128], strides = [1, 1, 1]} : vector<8x8x128xf32> to vector<8x1x128xf32>
    %65 = vector.shape_cast %64 : vector<8x1x128xf32> to vector<8x128xf32>
    %cst_30 = arith.constant 2.500000e-01 : f32
    %66 = vector.broadcast %cst_30 : f32 to vector<8x128xf32>
    %67 = arith.mulf %66, %63 : vector<8x128xf32>
    %cst_31 = arith.constant 7.500000e-01 : f32
    %68 = vector.broadcast %cst_31 : f32 to vector<8x128xf32>
    %69 = arith.mulf %68, %61 : vector<8x128xf32>
    %70 = arith.addf %67, %69 : vector<8x128xf32>
    %c0_32 = arith.constant 0 : index
    %c0_33 = arith.constant 0 : index
    %c0_34 = arith.constant 0 : index
    %71 = vector.load %arg7[%c0_32, %c0_33, %c0_34] : memref<8x16x128xf32, #tpu.memory_space<vmem>>, vector<8x1x128xf32>
    %72 = vector.shape_cast %71 : vector<8x1x128xf32> to vector<8x128xf32>
    %73 = vector.shape_cast %70 : vector<8x128xf32> to vector<8x1x128xf32>
    tpu.vector_store %arg7[%c0_32, %c0_33, %c0_34], %73 {strides = array<i32>} : memref<8x16x128xf32, #tpu.memory_space<vmem>>, vector<8x1x128xf32>,
    %cst_35 = arith.constant 7.500000e-01 : f32
    %74 = vector.broadcast %cst_35 : f32 to vector<8x128xf32>
    %75 = arith.mulf %74, %61 : vector<8x128xf32>
    %cst_36 = arith.constant 2.500000e-01 : f32
    %76 = vector.broadcast %cst_36 : f32 to vector<8x128xf32>
    %77 = arith.mulf %76, %65 : vector<8x128xf32>
    %78 = arith.addf %75, %77 : vector<8x128xf32>
    %c0_37 = arith.constant 0 : index
    %c1 = arith.constant 1 : index
    %c0_38 = arith.constant 0 : index
    %79 = vector.load %arg7[%c0_37, %c1, %c0_38] : memref<8x16x128xf32, #tpu.memory_space<vmem>>, vector<8x1x128xf32>
    %80 = vector.shape_cast %79 : vector<8x1x128xf32> to vector<8x128xf32>
    %81 = vector.shape_cast %78 : vector<8x128xf32> to vector<8x1x128xf32>
    tpu.vector_store %arg7[%c0_37, %c1, %c0_38], %81 {strides = array<i32>} : memref<8x16x128xf32, #tpu.memory_space<vmem>>, vector<8x1x128xf32>,
    %82 = vector.extract_strided_slice %59 {offsets = [0, 1, 0], sizes = [8, 1, 128], strides = [1, 1, 1]} : vector<8x8x128xf32> to vector<8x1x128xf32>
    %83 = vector.shape_cast %82 : vector<8x1x128xf32> to vector<8x128xf32>
    %84 = vector.extract_strided_slice %59 {offsets = [0, 0, 0], sizes = [8, 1, 128], strides = [1, 1, 1]} : vector<8x8x128xf32> to vector<8x1x128xf32>
    %85 = vector.shape_cast %84 : vector<8x1x128xf32> to vector<8x128xf32>
    %86 = vector.extract_strided_slice %59 {offsets = [0, 2, 0], sizes = [8, 1, 128], strides = [1, 1, 1]} : vector<8x8x128xf32> to vector<8x1x128xf32>
    %87 = vector.shape_cast %86 : vector<8x1x128xf32> to vector<8x128xf32>
    %cst_39 = arith.constant 2.500000e-01 : f32
    %88 = vector.broadcast %cst_39 : f32 to vector<8x128xf32>
    %89 = arith.mulf %88, %85 : vector<8x128xf32>
    %cst_40 = arith.constant 7.500000e-01 : f32
    %90 = vector.broadcast %cst_40 : f32 to vector<8x128xf32>
    %91 = arith.mulf %90, %83 : vector<8x128xf32>
    %92 = arith.addf %89, %91 : vector<8x128xf32>
    %c0_41 = arith.constant 0 : index
    %c2 = arith.constant 2 : index
    %c0_42 = arith.constant 0 : index
    %93 = vector.load %arg7[%c0_41, %c2, %c0_42] : memref<8x16x128xf32, #tpu.memory_space<vmem>>, vector<8x1x128xf32>
    %94 = vector.shape_cast %93 : vector<8x1x128xf32> to vector<8x128xf32>
    %95 = vector.shape_cast %92 : vector<8x128xf32> to vector<8x1x128xf32>
    tpu.vector_store %arg7[%c0_41, %c2, %c0_42], %95 {strides = array<i32>} : memref<8x16x128xf32, #tpu.memory_space<vmem>>, vector<8x1x128xf32>,
    %cst_43 = arith.constant 7.500000e-01 : f32
    %96 = vector.broadcast %cst_43 : f32 to vector<8x128xf32>
    %97 = arith.mulf %96, %83 : vector<8x128xf32>
    %cst_44 = arith.constant 2.500000e-01 : f32
    %98 = vector.broadcast %cst_44 : f32 to vector<8x128xf32>
    %99 = arith.mulf %98, %87 : vector<8x128xf32>
    %100 = arith.addf %97, %99 : vector<8x128xf32>
    %c0_45 = arith.constant 0 : index
    %c3 = arith.constant 3 : index
    %c0_46 = arith.constant 0 : index
    %101 = vector.load %arg7[%c0_45, %c3, %c0_46] : memref<8x16x128xf32, #tpu.memory_space<vmem>>, vector<8x1x128xf32>
    %102 = vector.shape_cast %101 : vector<8x1x128xf32> to vector<8x128xf32>
    %103 = vector.shape_cast %100 : vector<8x128xf32> to vector<8x1x128xf32>
    tpu.vector_store %arg7[%c0_45, %c3, %c0_46], %103 {strides = array<i32>} : memref<8x16x128xf32, #tpu.memory_space<vmem>>, vector<8x1x128xf32>,
    %104 = vector.extract_strided_slice %59 {offsets = [0, 2, 0], sizes = [8, 1, 128], strides = [1, 1, 1]} : vector<8x8x128xf32> to vector<8x1x128xf32>
    %105 = vector.shape_cast %104 : vector<8x1x128xf32> to vector<8x128xf32>
    %106 = vector.extract_strided_slice %59 {offsets = [0, 1, 0], sizes = [8, 1, 128], strides = [1, 1, 1]} : vector<8x8x128xf32> to vector<8x1x128xf32>
    %107 = vector.shape_cast %106 : vector<8x1x128xf32> to vector<8x128xf32>
    %108 = vector.extract_strided_slice %59 {offsets = [0, 3, 0], sizes = [8, 1, 128], strides = [1, 1, 1]} : vector<8x8x128xf32> to vector<8x1x128xf32>
    %109 = vector.shape_cast %108 : vector<8x1x128xf32> to vector<8x128xf32>
    %cst_47 = arith.constant 2.500000e-01 : f32
    %110 = vector.broadcast %cst_47 : f32 to vector<8x128xf32>
    %111 = arith.mulf %110, %107 : vector<8x128xf32>
    %cst_48 = arith.constant 7.500000e-01 : f32
    %112 = vector.broadcast %cst_48 : f32 to vector<8x128xf32>
    %113 = arith.mulf %112, %105 : vector<8x128xf32>
    %114 = arith.addf %111, %113 : vector<8x128xf32>
    %c0_49 = arith.constant 0 : index
    %c4 = arith.constant 4 : index
    %c0_50 = arith.constant 0 : index
    %115 = vector.load %arg7[%c0_49, %c4, %c0_50] : memref<8x16x128xf32, #tpu.memory_space<vmem>>, vector<8x1x128xf32>
    %116 = vector.shape_cast %115 : vector<8x1x128xf32> to vector<8x128xf32>
    %117 = vector.shape_cast %114 : vector<8x128xf32> to vector<8x1x128xf32>
    tpu.vector_store %arg7[%c0_49, %c4, %c0_50], %117 {strides = array<i32>} : memref<8x16x128xf32, #tpu.memory_space<vmem>>, vector<8x1x128xf32>,
    %cst_51 = arith.constant 7.500000e-01 : f32
    %118 = vector.broadcast %cst_51 : f32 to vector<8x128xf32>
    %119 = arith.mulf %118, %105 : vector<8x128xf32>
    %cst_52 = arith.constant 2.500000e-01 : f32
    %120 = vector.broadcast %cst_52 : f32 to vector<8x128xf32>
    %121 = arith.mulf %120, %109 : vector<8x128xf32>
    %122 = arith.addf %119, %121 : vector<8x128xf32>
    %c0_53 = arith.constant 0 : index
    %c5 = arith.constant 5 : index
    %c0_54 = arith.constant 0 : index
    %123 = vector.load %arg7[%c0_53, %c5, %c0_54] : memref<8x16x128xf32, #tpu.memory_space<vmem>>, vector<8x1x128xf32>
    %124 = vector.shape_cast %123 : vector<8x1x128xf32> to vector<8x128xf32>
    %125 = vector.shape_cast %122 : vector<8x128xf32> to vector<8x1x128xf32>
    tpu.vector_store %arg7[%c0_53, %c5, %c0_54], %125 {strides = array<i32>} : memref<8x16x128xf32, #tpu.memory_space<vmem>>, vector<8x1x128xf32>,
    %126 = vector.extract_strided_slice %59 {offsets = [0, 3, 0], sizes = [8, 1, 128], strides = [1, 1, 1]} : vector<8x8x128xf32> to vector<8x1x128xf32>
    %127 = vector.shape_cast %126 : vector<8x1x128xf32> to vector<8x128xf32>
    %128 = vector.extract_strided_slice %59 {offsets = [0, 2, 0], sizes = [8, 1, 128], strides = [1, 1, 1]} : vector<8x8x128xf32> to vector<8x1x128xf32>
    %129 = vector.shape_cast %128 : vector<8x1x128xf32> to vector<8x128xf32>
    %130 = vector.extract_strided_slice %59 {offsets = [0, 4, 0], sizes = [8, 1, 128], strides = [1, 1, 1]} : vector<8x8x128xf32> to vector<8x1x128xf32>
    %131 = vector.shape_cast %130 : vector<8x1x128xf32> to vector<8x128xf32>
    %cst_55 = arith.constant 2.500000e-01 : f32
    %132 = vector.broadcast %cst_55 : f32 to vector<8x128xf32>
    %133 = arith.mulf %132, %129 : vector<8x128xf32>
    %cst_56 = arith.constant 7.500000e-01 : f32
    %134 = vector.broadcast %cst_56 : f32 to vector<8x128xf32>
    %135 = arith.mulf %134, %127 : vector<8x128xf32>
    %136 = arith.addf %133, %135 : vector<8x128xf32>
    %c0_57 = arith.constant 0 : index
    %c6 = arith.constant 6 : index
    %c0_58 = arith.constant 0 : index
    %137 = vector.load %arg7[%c0_57, %c6, %c0_58] : memref<8x16x128xf32, #tpu.memory_space<vmem>>, vector<8x1x128xf32>
    %138 = vector.shape_cast %137 : vector<8x1x128xf32> to vector<8x128xf32>
    %139 = vector.shape_cast %136 : vector<8x128xf32> to vector<8x1x128xf32>
    tpu.vector_store %arg7[%c0_57, %c6, %c0_58], %139 {strides = array<i32>} : memref<8x16x128xf32, #tpu.memory_space<vmem>>, vector<8x1x128xf32>,
    %cst_59 = arith.constant 7.500000e-01 : f32
    %140 = vector.broadcast %cst_59 : f32 to vector<8x128xf32>
    %141 = arith.mulf %140, %127 : vector<8x128xf32>
    %cst_60 = arith.constant 2.500000e-01 : f32
    %142 = vector.broadcast %cst_60 : f32 to vector<8x128xf32>
    %143 = arith.mulf %142, %131 : vector<8x128xf32>
    %144 = arith.addf %141, %143 : vector<8x128xf32>
    %c0_61 = arith.constant 0 : index
    %c7 = arith.constant 7 : index
    %c0_62 = arith.constant 0 : index
    %145 = vector.load %arg7[%c0_61, %c7, %c0_62] : memref<8x16x128xf32, #tpu.memory_space<vmem>>, vector<8x1x128xf32>
    %146 = vector.shape_cast %145 : vector<8x1x128xf32> to vector<8x128xf32>
    %147 = vector.shape_cast %144 : vector<8x128xf32> to vector<8x1x128xf32>
    tpu.vector_store %arg7[%c0_61, %c7, %c0_62], %147 {strides = array<i32>} : memref<8x16x128xf32, #tpu.memory_space<vmem>>, vector<8x1x128xf32>,
    %148 = vector.extract_strided_slice %59 {offsets = [0, 4, 0], sizes = [8, 1, 128], strides = [1, 1, 1]} : vector<8x8x128xf32> to vector<8x1x128xf32>
    %149 = vector.shape_cast %148 : vector<8x1x128xf32> to vector<8x128xf32>
    %150 = vector.extract_strided_slice %59 {offsets = [0, 3, 0], sizes = [8, 1, 128], strides = [1, 1, 1]} : vector<8x8x128xf32> to vector<8x1x128xf32>
    %151 = vector.shape_cast %150 : vector<8x1x128xf32> to vector<8x128xf32>
    %152 = vector.extract_strided_slice %59 {offsets = [0, 5, 0], sizes = [8, 1, 128], strides = [1, 1, 1]} : vector<8x8x128xf32> to vector<8x1x128xf32>
    %153 = vector.shape_cast %152 : vector<8x1x128xf32> to vector<8x128xf32>
    %cst_63 = arith.constant 2.500000e-01 : f32
    %154 = vector.broadcast %cst_63 : f32 to vector<8x128xf32>
    %155 = arith.mulf %154, %151 : vector<8x128xf32>
    %cst_64 = arith.constant 7.500000e-01 : f32
    %156 = vector.broadcast %cst_64 : f32 to vector<8x128xf32>
    %157 = arith.mulf %156, %149 : vector<8x128xf32>
    %158 = arith.addf %155, %157 : vector<8x128xf32>
    %c0_65 = arith.constant 0 : index
    %c8 = arith.constant 8 : index
    %c0_66 = arith.constant 0 : index
    %159 = vector.load %arg7[%c0_65, %c8, %c0_66] : memref<8x16x128xf32, #tpu.memory_space<vmem>>, vector<8x1x128xf32>
    %160 = vector.shape_cast %159 : vector<8x1x128xf32> to vector<8x128xf32>
    %161 = vector.shape_cast %158 : vector<8x128xf32> to vector<8x1x128xf32>
    tpu.vector_store %arg7[%c0_65, %c8, %c0_66], %161 {strides = array<i32>} : memref<8x16x128xf32, #tpu.memory_space<vmem>>, vector<8x1x128xf32>,
    %cst_67 = arith.constant 7.500000e-01 : f32
    %162 = vector.broadcast %cst_67 : f32 to vector<8x128xf32>
    %163 = arith.mulf %162, %149 : vector<8x128xf32>
    %cst_68 = arith.constant 2.500000e-01 : f32
    %164 = vector.broadcast %cst_68 : f32 to vector<8x128xf32>
    %165 = arith.mulf %164, %153 : vector<8x128xf32>
    %166 = arith.addf %163, %165 : vector<8x128xf32>
    %c0_69 = arith.constant 0 : index
    %c9 = arith.constant 9 : index
    %c0_70 = arith.constant 0 : index
    %167 = vector.load %arg7[%c0_69, %c9, %c0_70] : memref<8x16x128xf32, #tpu.memory_space<vmem>>, vector<8x1x128xf32>
    %168 = vector.shape_cast %167 : vector<8x1x128xf32> to vector<8x128xf32>
    %169 = vector.shape_cast %166 : vector<8x128xf32> to vector<8x1x128xf32>
    tpu.vector_store %arg7[%c0_69, %c9, %c0_70], %169 {strides = array<i32>} : memref<8x16x128xf32, #tpu.memory_space<vmem>>, vector<8x1x128xf32>,
    %170 = vector.extract_strided_slice %59 {offsets = [0, 5, 0], sizes = [8, 1, 128], strides = [1, 1, 1]} : vector<8x8x128xf32> to vector<8x1x128xf32>
    %171 = vector.shape_cast %170 : vector<8x1x128xf32> to vector<8x128xf32>
    %172 = vector.extract_strided_slice %59 {offsets = [0, 4, 0], sizes = [8, 1, 128], strides = [1, 1, 1]} : vector<8x8x128xf32> to vector<8x1x128xf32>
    %173 = vector.shape_cast %172 : vector<8x1x128xf32> to vector<8x128xf32>
    %174 = vector.extract_strided_slice %59 {offsets = [0, 6, 0], sizes = [8, 1, 128], strides = [1, 1, 1]} : vector<8x8x128xf32> to vector<8x1x128xf32>
    %175 = vector.shape_cast %174 : vector<8x1x128xf32> to vector<8x128xf32>
    %cst_71 = arith.constant 2.500000e-01 : f32
    %176 = vector.broadcast %cst_71 : f32 to vector<8x128xf32>
    %177 = arith.mulf %176, %173 : vector<8x128xf32>
    %cst_72 = arith.constant 7.500000e-01 : f32
    %178 = vector.broadcast %cst_72 : f32 to vector<8x128xf32>
    %179 = arith.mulf %178, %171 : vector<8x128xf32>
    %180 = arith.addf %177, %179 : vector<8x128xf32>
    %c0_73 = arith.constant 0 : index
    %c10 = arith.constant 10 : index
    %c0_74 = arith.constant 0 : index
    %181 = vector.load %arg7[%c0_73, %c10, %c0_74] : memref<8x16x128xf32, #tpu.memory_space<vmem>>, vector<8x1x128xf32>
    %182 = vector.shape_cast %181 : vector<8x1x128xf32> to vector<8x128xf32>
    %183 = vector.shape_cast %180 : vector<8x128xf32> to vector<8x1x128xf32>
    tpu.vector_store %arg7[%c0_73, %c10, %c0_74], %183 {strides = array<i32>} : memref<8x16x128xf32, #tpu.memory_space<vmem>>, vector<8x1x128xf32>,
    %cst_75 = arith.constant 7.500000e-01 : f32
    %184 = vector.broadcast %cst_75 : f32 to vector<8x128xf32>
    %185 = arith.mulf %184, %171 : vector<8x128xf32>
    %cst_76 = arith.constant 2.500000e-01 : f32
    %186 = vector.broadcast %cst_76 : f32 to vector<8x128xf32>
    %187 = arith.mulf %186, %175 : vector<8x128xf32>
    %188 = arith.addf %185, %187 : vector<8x128xf32>
    %c0_77 = arith.constant 0 : index
    %c11 = arith.constant 11 : index
    %c0_78 = arith.constant 0 : index
    %189 = vector.load %arg7[%c0_77, %c11, %c0_78] : memref<8x16x128xf32, #tpu.memory_space<vmem>>, vector<8x1x128xf32>
    %190 = vector.shape_cast %189 : vector<8x1x128xf32> to vector<8x128xf32>
    %191 = vector.shape_cast %188 : vector<8x128xf32> to vector<8x1x128xf32>
    tpu.vector_store %arg7[%c0_77, %c11, %c0_78], %191 {strides = array<i32>} : memref<8x16x128xf32, #tpu.memory_space<vmem>>, vector<8x1x128xf32>,
    %192 = vector.extract_strided_slice %59 {offsets = [0, 6, 0], sizes = [8, 1, 128], strides = [1, 1, 1]} : vector<8x8x128xf32> to vector<8x1x128xf32>
    %193 = vector.shape_cast %192 : vector<8x1x128xf32> to vector<8x128xf32>
    %194 = vector.extract_strided_slice %59 {offsets = [0, 5, 0], sizes = [8, 1, 128], strides = [1, 1, 1]} : vector<8x8x128xf32> to vector<8x1x128xf32>
    %195 = vector.shape_cast %194 : vector<8x1x128xf32> to vector<8x128xf32>
    %196 = vector.extract_strided_slice %59 {offsets = [0, 7, 0], sizes = [8, 1, 128], strides = [1, 1, 1]} : vector<8x8x128xf32> to vector<8x1x128xf32>
    %197 = vector.shape_cast %196 : vector<8x1x128xf32> to vector<8x128xf32>
    %cst_79 = arith.constant 2.500000e-01 : f32
    %198 = vector.broadcast %cst_79 : f32 to vector<8x128xf32>
    %199 = arith.mulf %198, %195 : vector<8x128xf32>
    %cst_80 = arith.constant 7.500000e-01 : f32
    %200 = vector.broadcast %cst_80 : f32 to vector<8x128xf32>
    %201 = arith.mulf %200, %193 : vector<8x128xf32>
    %202 = arith.addf %199, %201 : vector<8x128xf32>
    %c0_81 = arith.constant 0 : index
    %c12 = arith.constant 12 : index
    %c0_82 = arith.constant 0 : index
    %203 = vector.load %arg7[%c0_81, %c12, %c0_82] : memref<8x16x128xf32, #tpu.memory_space<vmem>>, vector<8x1x128xf32>
    %204 = vector.shape_cast %203 : vector<8x1x128xf32> to vector<8x128xf32>
    %205 = vector.shape_cast %202 : vector<8x128xf32> to vector<8x1x128xf32>
    tpu.vector_store %arg7[%c0_81, %c12, %c0_82], %205 {strides = array<i32>} : memref<8x16x128xf32, #tpu.memory_space<vmem>>, vector<8x1x128xf32>,
    %cst_83 = arith.constant 7.500000e-01 : f32
    %206 = vector.broadcast %cst_83 : f32 to vector<8x128xf32>
    %207 = arith.mulf %206, %193 : vector<8x128xf32>
    %cst_84 = arith.constant 2.500000e-01 : f32
    %208 = vector.broadcast %cst_84 : f32 to vector<8x128xf32>
    %209 = arith.mulf %208, %197 : vector<8x128xf32>
    %210 = arith.addf %207, %209 : vector<8x128xf32>
    %c0_85 = arith.constant 0 : index
    %c13 = arith.constant 13 : index
    %c0_86 = arith.constant 0 : index
    %211 = vector.load %arg7[%c0_85, %c13, %c0_86] : memref<8x16x128xf32, #tpu.memory_space<vmem>>, vector<8x1x128xf32>
    %212 = vector.shape_cast %211 : vector<8x1x128xf32> to vector<8x128xf32>
    %213 = vector.shape_cast %210 : vector<8x128xf32> to vector<8x1x128xf32>
    tpu.vector_store %arg7[%c0_85, %c13, %c0_86], %213 {strides = array<i32>} : memref<8x16x128xf32, #tpu.memory_space<vmem>>, vector<8x1x128xf32>,
    %214 = vector.extract_strided_slice %59 {offsets = [0, 7, 0], sizes = [8, 1, 128], strides = [1, 1, 1]} : vector<8x8x128xf32> to vector<8x1x128xf32>
    %215 = vector.shape_cast %214 : vector<8x1x128xf32> to vector<8x128xf32>
    %216 = vector.extract_strided_slice %59 {offsets = [0, 6, 0], sizes = [8, 1, 128], strides = [1, 1, 1]} : vector<8x8x128xf32> to vector<8x1x128xf32>
    %217 = vector.shape_cast %216 : vector<8x1x128xf32> to vector<8x128xf32>
    %218 = vector.extract_strided_slice %59 {offsets = [0, 7, 0], sizes = [8, 1, 128], strides = [1, 1, 1]} : vector<8x8x128xf32> to vector<8x1x128xf32>
    %219 = vector.shape_cast %218 : vector<8x1x128xf32> to vector<8x128xf32>
    %cst_87 = arith.constant 2.500000e-01 : f32
    %220 = vector.broadcast %cst_87 : f32 to vector<8x128xf32>
    %221 = arith.mulf %220, %217 : vector<8x128xf32>
    %cst_88 = arith.constant 7.500000e-01 : f32
    %222 = vector.broadcast %cst_88 : f32 to vector<8x128xf32>
    %223 = arith.mulf %222, %215 : vector<8x128xf32>
    %224 = arith.addf %221, %223 : vector<8x128xf32>
    %c0_89 = arith.constant 0 : index
    %c14 = arith.constant 14 : index
    %c0_90 = arith.constant 0 : index
    %225 = vector.load %arg7[%c0_89, %c14, %c0_90] : memref<8x16x128xf32, #tpu.memory_space<vmem>>, vector<8x1x128xf32>
    %226 = vector.shape_cast %225 : vector<8x1x128xf32> to vector<8x128xf32>
    %227 = vector.shape_cast %224 : vector<8x128xf32> to vector<8x1x128xf32>
    tpu.vector_store %arg7[%c0_89, %c14, %c0_90], %227 {strides = array<i32>} : memref<8x16x128xf32, #tpu.memory_space<vmem>>, vector<8x1x128xf32>,
    %cst_91 = arith.constant 7.500000e-01 : f32
    %228 = vector.broadcast %cst_91 : f32 to vector<8x128xf32>
    %229 = arith.mulf %228, %215 : vector<8x128xf32>
    %cst_92 = arith.constant 2.500000e-01 : f32
    %230 = vector.broadcast %cst_92 : f32 to vector<8x128xf32>
    %231 = arith.mulf %230, %219 : vector<8x128xf32>
    %232 = arith.addf %229, %231 : vector<8x128xf32>
    %c0_93 = arith.constant 0 : index
    %c15 = arith.constant 15 : index
    %c0_94 = arith.constant 0 : index
    %233 = vector.load %arg7[%c0_93, %c15, %c0_94] : memref<8x16x128xf32, #tpu.memory_space<vmem>>, vector<8x1x128xf32>
    %234 = vector.shape_cast %233 : vector<8x1x128xf32> to vector<8x128xf32>
    %235 = vector.shape_cast %232 : vector<8x128xf32> to vector<8x1x128xf32>
    tpu.vector_store %arg7[%c0_93, %c15, %c0_94], %235 {strides = array<i32>} : memref<8x16x128xf32, #tpu.memory_space<vmem>>, vector<8x1x128xf32>,
    %c0_95 = arith.constant 0 : index
    %c0_96 = arith.constant 0 : index
    %c0_97 = arith.constant 0 : index
    %236 = vector.load %arg7[%c0_95, %c0_96, %c0_97] : memref<8x16x128xf32, #tpu.memory_space<vmem>>, vector<1x16x128xf32>
    %237 = vector.shape_cast %236 : vector<1x16x128xf32> to vector<16x128xf32>
    %c0_98 = arith.constant 0 : index
    %c0_99 = arith.constant 0 : index
    %c0_100 = arith.constant 0 : index
    %238 = vector.load %arg7[%c0_98, %c0_99, %c0_100] : memref<8x16x128xf32, #tpu.memory_space<vmem>>, vector<1x16x128xf32>
    %239 = vector.shape_cast %238 : vector<1x16x128xf32> to vector<16x128xf32>
    %c1_101 = arith.constant 1 : index
    %c0_102 = arith.constant 0 : index
    %c0_103 = arith.constant 0 : index
    %240 = vector.load %arg7[%c1_101, %c0_102, %c0_103] : memref<8x16x128xf32, #tpu.memory_space<vmem>>, vector<1x16x128xf32>
    %241 = vector.shape_cast %240 : vector<1x16x128xf32> to vector<16x128xf32>
    %cst_104 = arith.constant 2.500000e-01 : f32
    %242 = vector.broadcast %cst_104 : f32 to vector<16x128xf32>
    %243 = arith.mulf %242, %239 : vector<16x128xf32>
    %cst_105 = arith.constant 7.500000e-01 : f32
    %244 = vector.broadcast %cst_105 : f32 to vector<16x128xf32>
    %245 = arith.mulf %244, %237 : vector<16x128xf32>
    %246 = arith.addf %243, %245 : vector<16x128xf32>
    %c0_106 = arith.constant 0 : index
    %c0_107 = arith.constant 0 : index
    %c0_108 = arith.constant 0 : index
    %c0_109 = arith.constant 0 : index
    %247 = vector.load %arg6[%c0_106, %c0_107, %c0_108, %c0_109] : memref<1x16x16x128xf32, #tpu.memory_space<vmem>>, vector<1x1x16x128xf32>
    %248 = vector.shape_cast %247 : vector<1x1x16x128xf32> to vector<16x128xf32>
    %249 = vector.shape_cast %246 : vector<16x128xf32> to vector<1x1x16x128xf32>
    tpu.vector_store %arg6[%c0_106, %c0_107, %c0_108, %c0_109], %249 {strides = array<i32>} : memref<1x16x16x128xf32, #tpu.memory_space<vmem>>, vector<1x1x16x128xf32>,
    %cst_110 = arith.constant 7.500000e-01 : f32
    %250 = vector.broadcast %cst_110 : f32 to vector<16x128xf32>
    %251 = arith.mulf %250, %237 : vector<16x128xf32>
    %cst_111 = arith.constant 2.500000e-01 : f32
    %252 = vector.broadcast %cst_111 : f32 to vector<16x128xf32>
    %253 = arith.mulf %252, %241 : vector<16x128xf32>
    %254 = arith.addf %251, %253 : vector<16x128xf32>
    %c0_112 = arith.constant 0 : index
    %c1_113 = arith.constant 1 : index
    %c0_114 = arith.constant 0 : index
    %c0_115 = arith.constant 0 : index
    %255 = vector.load %arg6[%c0_112, %c1_113, %c0_114, %c0_115] : memref<1x16x16x128xf32, #tpu.memory_space<vmem>>, vector<1x1x16x128xf32>
    %256 = vector.shape_cast %255 : vector<1x1x16x128xf32> to vector<16x128xf32>
    %257 = vector.shape_cast %254 : vector<16x128xf32> to vector<1x1x16x128xf32>
    tpu.vector_store %arg6[%c0_112, %c1_113, %c0_114, %c0_115], %257 {strides = array<i32>} : memref<1x16x16x128xf32, #tpu.memory_space<vmem>>, vector<1x1x16x128xf32>,
    %c1_116 = arith.constant 1 : index
    %c0_117 = arith.constant 0 : index
    %c0_118 = arith.constant 0 : index
    %258 = vector.load %arg7[%c1_116, %c0_117, %c0_118] : memref<8x16x128xf32, #tpu.memory_space<vmem>>, vector<1x16x128xf32>
    %259 = vector.shape_cast %258 : vector<1x16x128xf32> to vector<16x128xf32>
    %c0_119 = arith.constant 0 : index
    %c0_120 = arith.constant 0 : index
    %c0_121 = arith.constant 0 : index
    %260 = vector.load %arg7[%c0_119, %c0_120, %c0_121] : memref<8x16x128xf32, #tpu.memory_space<vmem>>, vector<1x16x128xf32>
    %261 = vector.shape_cast %260 : vector<1x16x128xf32> to vector<16x128xf32>
    %c2_122 = arith.constant 2 : index
    %c0_123 = arith.constant 0 : index
    %c0_124 = arith.constant 0 : index
    %262 = vector.load %arg7[%c2_122, %c0_123, %c0_124] : memref<8x16x128xf32, #tpu.memory_space<vmem>>, vector<1x16x128xf32>
    %263 = vector.shape_cast %262 : vector<1x16x128xf32> to vector<16x128xf32>
    %cst_125 = arith.constant 2.500000e-01 : f32
    %264 = vector.broadcast %cst_125 : f32 to vector<16x128xf32>
    %265 = arith.mulf %264, %261 : vector<16x128xf32>
    %cst_126 = arith.constant 7.500000e-01 : f32
    %266 = vector.broadcast %cst_126 : f32 to vector<16x128xf32>
    %267 = arith.mulf %266, %259 : vector<16x128xf32>
    %268 = arith.addf %265, %267 : vector<16x128xf32>
    %c0_127 = arith.constant 0 : index
    %c2_128 = arith.constant 2 : index
    %c0_129 = arith.constant 0 : index
    %c0_130 = arith.constant 0 : index
    %269 = vector.load %arg6[%c0_127, %c2_128, %c0_129, %c0_130] : memref<1x16x16x128xf32, #tpu.memory_space<vmem>>, vector<1x1x16x128xf32>
    %270 = vector.shape_cast %269 : vector<1x1x16x128xf32> to vector<16x128xf32>
    %271 = vector.shape_cast %268 : vector<16x128xf32> to vector<1x1x16x128xf32>
    tpu.vector_store %arg6[%c0_127, %c2_128, %c0_129, %c0_130], %271 {strides = array<i32>} : memref<1x16x16x128xf32, #tpu.memory_space<vmem>>, vector<1x1x16x128xf32>,
    %cst_131 = arith.constant 7.500000e-01 : f32
    %272 = vector.broadcast %cst_131 : f32 to vector<16x128xf32>
    %273 = arith.mulf %272, %259 : vector<16x128xf32>
    %cst_132 = arith.constant 2.500000e-01 : f32
    %274 = vector.broadcast %cst_132 : f32 to vector<16x128xf32>
    %275 = arith.mulf %274, %263 : vector<16x128xf32>
    %276 = arith.addf %273, %275 : vector<16x128xf32>
    %c0_133 = arith.constant 0 : index
    %c3_134 = arith.constant 3 : index
    %c0_135 = arith.constant 0 : index
    %c0_136 = arith.constant 0 : index
    %277 = vector.load %arg6[%c0_133, %c3_134, %c0_135, %c0_136] : memref<1x16x16x128xf32, #tpu.memory_space<vmem>>, vector<1x1x16x128xf32>
    %278 = vector.shape_cast %277 : vector<1x1x16x128xf32> to vector<16x128xf32>
    %279 = vector.shape_cast %276 : vector<16x128xf32> to vector<1x1x16x128xf32>
    tpu.vector_store %arg6[%c0_133, %c3_134, %c0_135, %c0_136], %279 {strides = array<i32>} : memref<1x16x16x128xf32, #tpu.memory_space<vmem>>, vector<1x1x16x128xf32>,
    %c2_137 = arith.constant 2 : index
    %c0_138 = arith.constant 0 : index
    %c0_139 = arith.constant 0 : index
    %280 = vector.load %arg7[%c2_137, %c0_138, %c0_139] : memref<8x16x128xf32, #tpu.memory_space<vmem>>, vector<1x16x128xf32>
    %281 = vector.shape_cast %280 : vector<1x16x128xf32> to vector<16x128xf32>
    %c1_140 = arith.constant 1 : index
    %c0_141 = arith.constant 0 : index
    %c0_142 = arith.constant 0 : index
    %282 = vector.load %arg7[%c1_140, %c0_141, %c0_142] : memref<8x16x128xf32, #tpu.memory_space<vmem>>, vector<1x16x128xf32>
    %283 = vector.shape_cast %282 : vector<1x16x128xf32> to vector<16x128xf32>
    %c3_143 = arith.constant 3 : index
    %c0_144 = arith.constant 0 : index
    %c0_145 = arith.constant 0 : index
    %284 = vector.load %arg7[%c3_143, %c0_144, %c0_145] : memref<8x16x128xf32, #tpu.memory_space<vmem>>, vector<1x16x128xf32>
    %285 = vector.shape_cast %284 : vector<1x16x128xf32> to vector<16x128xf32>
    %cst_146 = arith.constant 2.500000e-01 : f32
    %286 = vector.broadcast %cst_146 : f32 to vector<16x128xf32>
    %287 = arith.mulf %286, %283 : vector<16x128xf32>
    %cst_147 = arith.constant 7.500000e-01 : f32
    %288 = vector.broadcast %cst_147 : f32 to vector<16x128xf32>
    %289 = arith.mulf %288, %281 : vector<16x128xf32>
    %290 = arith.addf %287, %289 : vector<16x128xf32>
    %c0_148 = arith.constant 0 : index
    %c4_149 = arith.constant 4 : index
    %c0_150 = arith.constant 0 : index
    %c0_151 = arith.constant 0 : index
    %291 = vector.load %arg6[%c0_148, %c4_149, %c0_150, %c0_151] : memref<1x16x16x128xf32, #tpu.memory_space<vmem>>, vector<1x1x16x128xf32>
    %292 = vector.shape_cast %291 : vector<1x1x16x128xf32> to vector<16x128xf32>
    %293 = vector.shape_cast %290 : vector<16x128xf32> to vector<1x1x16x128xf32>
    tpu.vector_store %arg6[%c0_148, %c4_149, %c0_150, %c0_151], %293 {strides = array<i32>} : memref<1x16x16x128xf32, #tpu.memory_space<vmem>>, vector<1x1x16x128xf32>,
    %cst_152 = arith.constant 7.500000e-01 : f32
    %294 = vector.broadcast %cst_152 : f32 to vector<16x128xf32>
    %295 = arith.mulf %294, %281 : vector<16x128xf32>
    %cst_153 = arith.constant 2.500000e-01 : f32
    %296 = vector.broadcast %cst_153 : f32 to vector<16x128xf32>
    %297 = arith.mulf %296, %285 : vector<16x128xf32>
    %298 = arith.addf %295, %297 : vector<16x128xf32>
    %c0_154 = arith.constant 0 : index
    %c5_155 = arith.constant 5 : index
    %c0_156 = arith.constant 0 : index
    %c0_157 = arith.constant 0 : index
    %299 = vector.load %arg6[%c0_154, %c5_155, %c0_156, %c0_157] : memref<1x16x16x128xf32, #tpu.memory_space<vmem>>, vector<1x1x16x128xf32>
    %300 = vector.shape_cast %299 : vector<1x1x16x128xf32> to vector<16x128xf32>
    %301 = vector.shape_cast %298 : vector<16x128xf32> to vector<1x1x16x128xf32>
    tpu.vector_store %arg6[%c0_154, %c5_155, %c0_156, %c0_157], %301 {strides = array<i32>} : memref<1x16x16x128xf32, #tpu.memory_space<vmem>>, vector<1x1x16x128xf32>,
    %c3_158 = arith.constant 3 : index
    %c0_159 = arith.constant 0 : index
    %c0_160 = arith.constant 0 : index
    %302 = vector.load %arg7[%c3_158, %c0_159, %c0_160] : memref<8x16x128xf32, #tpu.memory_space<vmem>>, vector<1x16x128xf32>
    %303 = vector.shape_cast %302 : vector<1x16x128xf32> to vector<16x128xf32>
    %c2_161 = arith.constant 2 : index
    %c0_162 = arith.constant 0 : index
    %c0_163 = arith.constant 0 : index
    %304 = vector.load %arg7[%c2_161, %c0_162, %c0_163] : memref<8x16x128xf32, #tpu.memory_space<vmem>>, vector<1x16x128xf32>
    %305 = vector.shape_cast %304 : vector<1x16x128xf32> to vector<16x128xf32>
    %c4_164 = arith.constant 4 : index
    %c0_165 = arith.constant 0 : index
    %c0_166 = arith.constant 0 : index
    %306 = vector.load %arg7[%c4_164, %c0_165, %c0_166] : memref<8x16x128xf32, #tpu.memory_space<vmem>>, vector<1x16x128xf32>
    %307 = vector.shape_cast %306 : vector<1x16x128xf32> to vector<16x128xf32>
    %cst_167 = arith.constant 2.500000e-01 : f32
    %308 = vector.broadcast %cst_167 : f32 to vector<16x128xf32>
    %309 = arith.mulf %308, %305 : vector<16x128xf32>
    %cst_168 = arith.constant 7.500000e-01 : f32
    %310 = vector.broadcast %cst_168 : f32 to vector<16x128xf32>
    %311 = arith.mulf %310, %303 : vector<16x128xf32>
    %312 = arith.addf %309, %311 : vector<16x128xf32>
    %c0_169 = arith.constant 0 : index
    %c6_170 = arith.constant 6 : index
    %c0_171 = arith.constant 0 : index
    %c0_172 = arith.constant 0 : index
    %313 = vector.load %arg6[%c0_169, %c6_170, %c0_171, %c0_172] : memref<1x16x16x128xf32, #tpu.memory_space<vmem>>, vector<1x1x16x128xf32>
    %314 = vector.shape_cast %313 : vector<1x1x16x128xf32> to vector<16x128xf32>
    %315 = vector.shape_cast %312 : vector<16x128xf32> to vector<1x1x16x128xf32>
    tpu.vector_store %arg6[%c0_169, %c6_170, %c0_171, %c0_172], %315 {strides = array<i32>} : memref<1x16x16x128xf32, #tpu.memory_space<vmem>>, vector<1x1x16x128xf32>,
    %cst_173 = arith.constant 7.500000e-01 : f32
    %316 = vector.broadcast %cst_173 : f32 to vector<16x128xf32>
    %317 = arith.mulf %316, %303 : vector<16x128xf32>
    %cst_174 = arith.constant 2.500000e-01 : f32
    %318 = vector.broadcast %cst_174 : f32 to vector<16x128xf32>
    %319 = arith.mulf %318, %307 : vector<16x128xf32>
    %320 = arith.addf %317, %319 : vector<16x128xf32>
    %c0_175 = arith.constant 0 : index
    %c7_176 = arith.constant 7 : index
    %c0_177 = arith.constant 0 : index
    %c0_178 = arith.constant 0 : index
    %321 = vector.load %arg6[%c0_175, %c7_176, %c0_177, %c0_178] : memref<1x16x16x128xf32, #tpu.memory_space<vmem>>, vector<1x1x16x128xf32>
    %322 = vector.shape_cast %321 : vector<1x1x16x128xf32> to vector<16x128xf32>
    %323 = vector.shape_cast %320 : vector<16x128xf32> to vector<1x1x16x128xf32>
    tpu.vector_store %arg6[%c0_175, %c7_176, %c0_177, %c0_178], %323 {strides = array<i32>} : memref<1x16x16x128xf32, #tpu.memory_space<vmem>>, vector<1x1x16x128xf32>,
    %c4_179 = arith.constant 4 : index
    %c0_180 = arith.constant 0 : index
    %c0_181 = arith.constant 0 : index
    %324 = vector.load %arg7[%c4_179, %c0_180, %c0_181] : memref<8x16x128xf32, #tpu.memory_space<vmem>>, vector<1x16x128xf32>
    %325 = vector.shape_cast %324 : vector<1x16x128xf32> to vector<16x128xf32>
    %c3_182 = arith.constant 3 : index
    %c0_183 = arith.constant 0 : index
    %c0_184 = arith.constant 0 : index
    %326 = vector.load %arg7[%c3_182, %c0_183, %c0_184] : memref<8x16x128xf32, #tpu.memory_space<vmem>>, vector<1x16x128xf32>
    %327 = vector.shape_cast %326 : vector<1x16x128xf32> to vector<16x128xf32>
    %c5_185 = arith.constant 5 : index
    %c0_186 = arith.constant 0 : index
    %c0_187 = arith.constant 0 : index
    %328 = vector.load %arg7[%c5_185, %c0_186, %c0_187] : memref<8x16x128xf32, #tpu.memory_space<vmem>>, vector<1x16x128xf32>
    %329 = vector.shape_cast %328 : vector<1x16x128xf32> to vector<16x128xf32>
    %cst_188 = arith.constant 2.500000e-01 : f32
    %330 = vector.broadcast %cst_188 : f32 to vector<16x128xf32>
    %331 = arith.mulf %330, %327 : vector<16x128xf32>
    %cst_189 = arith.constant 7.500000e-01 : f32
    %332 = vector.broadcast %cst_189 : f32 to vector<16x128xf32>
    %333 = arith.mulf %332, %325 : vector<16x128xf32>
    %334 = arith.addf %331, %333 : vector<16x128xf32>
    %c0_190 = arith.constant 0 : index
    %c8_191 = arith.constant 8 : index
    %c0_192 = arith.constant 0 : index
    %c0_193 = arith.constant 0 : index
    %335 = vector.load %arg6[%c0_190, %c8_191, %c0_192, %c0_193] : memref<1x16x16x128xf32, #tpu.memory_space<vmem>>, vector<1x1x16x128xf32>
    %336 = vector.shape_cast %335 : vector<1x1x16x128xf32> to vector<16x128xf32>
    %337 = vector.shape_cast %334 : vector<16x128xf32> to vector<1x1x16x128xf32>
    tpu.vector_store %arg6[%c0_190, %c8_191, %c0_192, %c0_193], %337 {strides = array<i32>} : memref<1x16x16x128xf32, #tpu.memory_space<vmem>>, vector<1x1x16x128xf32>,
    %cst_194 = arith.constant 7.500000e-01 : f32
    %338 = vector.broadcast %cst_194 : f32 to vector<16x128xf32>
    %339 = arith.mulf %338, %325 : vector<16x128xf32>
    %cst_195 = arith.constant 2.500000e-01 : f32
    %340 = vector.broadcast %cst_195 : f32 to vector<16x128xf32>
    %341 = arith.mulf %340, %329 : vector<16x128xf32>
    %342 = arith.addf %339, %341 : vector<16x128xf32>
    %c0_196 = arith.constant 0 : index
    %c9_197 = arith.constant 9 : index
    %c0_198 = arith.constant 0 : index
    %c0_199 = arith.constant 0 : index
    %343 = vector.load %arg6[%c0_196, %c9_197, %c0_198, %c0_199] : memref<1x16x16x128xf32, #tpu.memory_space<vmem>>, vector<1x1x16x128xf32>
    %344 = vector.shape_cast %343 : vector<1x1x16x128xf32> to vector<16x128xf32>
    %345 = vector.shape_cast %342 : vector<16x128xf32> to vector<1x1x16x128xf32>
    tpu.vector_store %arg6[%c0_196, %c9_197, %c0_198, %c0_199], %345 {strides = array<i32>} : memref<1x16x16x128xf32, #tpu.memory_space<vmem>>, vector<1x1x16x128xf32>,
    %c5_200 = arith.constant 5 : index
    %c0_201 = arith.constant 0 : index
    %c0_202 = arith.constant 0 : index
    %346 = vector.load %arg7[%c5_200, %c0_201, %c0_202] : memref<8x16x128xf32, #tpu.memory_space<vmem>>, vector<1x16x128xf32>
    %347 = vector.shape_cast %346 : vector<1x16x128xf32> to vector<16x128xf32>
    %c4_203 = arith.constant 4 : index
    %c0_204 = arith.constant 0 : index
    %c0_205 = arith.constant 0 : index
    %348 = vector.load %arg7[%c4_203, %c0_204, %c0_205] : memref<8x16x128xf32, #tpu.memory_space<vmem>>, vector<1x16x128xf32>
    %349 = vector.shape_cast %348 : vector<1x16x128xf32> to vector<16x128xf32>
    %c6_206 = arith.constant 6 : index
    %c0_207 = arith.constant 0 : index
    %c0_208 = arith.constant 0 : index
    %350 = vector.load %arg7[%c6_206, %c0_207, %c0_208] : memref<8x16x128xf32, #tpu.memory_space<vmem>>, vector<1x16x128xf32>
    %351 = vector.shape_cast %350 : vector<1x16x128xf32> to vector<16x128xf32>
    %cst_209 = arith.constant 2.500000e-01 : f32
    %352 = vector.broadcast %cst_209 : f32 to vector<16x128xf32>
    %353 = arith.mulf %352, %349 : vector<16x128xf32>
    %cst_210 = arith.constant 7.500000e-01 : f32
    %354 = vector.broadcast %cst_210 : f32 to vector<16x128xf32>
    %355 = arith.mulf %354, %347 : vector<16x128xf32>
    %356 = arith.addf %353, %355 : vector<16x128xf32>
    %c0_211 = arith.constant 0 : index
    %c10_212 = arith.constant 10 : index
    %c0_213 = arith.constant 0 : index
    %c0_214 = arith.constant 0 : index
    %357 = vector.load %arg6[%c0_211, %c10_212, %c0_213, %c0_214] : memref<1x16x16x128xf32, #tpu.memory_space<vmem>>, vector<1x1x16x128xf32>
    %358 = vector.shape_cast %357 : vector<1x1x16x128xf32> to vector<16x128xf32>
    %359 = vector.shape_cast %356 : vector<16x128xf32> to vector<1x1x16x128xf32>
    tpu.vector_store %arg6[%c0_211, %c10_212, %c0_213, %c0_214], %359 {strides = array<i32>} : memref<1x16x16x128xf32, #tpu.memory_space<vmem>>, vector<1x1x16x128xf32>,
    %cst_215 = arith.constant 7.500000e-01 : f32
    %360 = vector.broadcast %cst_215 : f32 to vector<16x128xf32>
    %361 = arith.mulf %360, %347 : vector<16x128xf32>
    %cst_216 = arith.constant 2.500000e-01 : f32
    %362 = vector.broadcast %cst_216 : f32 to vector<16x128xf32>
    %363 = arith.mulf %362, %351 : vector<16x128xf32>
    %364 = arith.addf %361, %363 : vector<16x128xf32>
    %c0_217 = arith.constant 0 : index
    %c11_218 = arith.constant 11 : index
    %c0_219 = arith.constant 0 : index
    %c0_220 = arith.constant 0 : index
    %365 = vector.load %arg6[%c0_217, %c11_218, %c0_219, %c0_220] : memref<1x16x16x128xf32, #tpu.memory_space<vmem>>, vector<1x1x16x128xf32>
    %366 = vector.shape_cast %365 : vector<1x1x16x128xf32> to vector<16x128xf32>
    %367 = vector.shape_cast %364 : vector<16x128xf32> to vector<1x1x16x128xf32>
    tpu.vector_store %arg6[%c0_217, %c11_218, %c0_219, %c0_220], %367 {strides = array<i32>} : memref<1x16x16x128xf32, #tpu.memory_space<vmem>>, vector<1x1x16x128xf32>,
    %c6_221 = arith.constant 6 : index
    %c0_222 = arith.constant 0 : index
    %c0_223 = arith.constant 0 : index
    %368 = vector.load %arg7[%c6_221, %c0_222, %c0_223] : memref<8x16x128xf32, #tpu.memory_space<vmem>>, vector<1x16x128xf32>
    %369 = vector.shape_cast %368 : vector<1x16x128xf32> to vector<16x128xf32>
    %c5_224 = arith.constant 5 : index
    %c0_225 = arith.constant 0 : index
    %c0_226 = arith.constant 0 : index
    %370 = vector.load %arg7[%c5_224, %c0_225, %c0_226] : memref<8x16x128xf32, #tpu.memory_space<vmem>>, vector<1x16x128xf32>
    %371 = vector.shape_cast %370 : vector<1x16x128xf32> to vector<16x128xf32>
    %c7_227 = arith.constant 7 : index
    %c0_228 = arith.constant 0 : index
    %c0_229 = arith.constant 0 : index
    %372 = vector.load %arg7[%c7_227, %c0_228, %c0_229] : memref<8x16x128xf32, #tpu.memory_space<vmem>>, vector<1x16x128xf32>
    %373 = vector.shape_cast %372 : vector<1x16x128xf32> to vector<16x128xf32>
    %cst_230 = arith.constant 2.500000e-01 : f32
    %374 = vector.broadcast %cst_230 : f32 to vector<16x128xf32>
    %375 = arith.mulf %374, %371 : vector<16x128xf32>
    %cst_231 = arith.constant 7.500000e-01 : f32
    %376 = vector.broadcast %cst_231 : f32 to vector<16x128xf32>
    %377 = arith.mulf %376, %369 : vector<16x128xf32>
    %378 = arith.addf %375, %377 : vector<16x128xf32>
    %c0_232 = arith.constant 0 : index
    %c12_233 = arith.constant 12 : index
    %c0_234 = arith.constant 0 : index
    %c0_235 = arith.constant 0 : index
    %379 = vector.load %arg6[%c0_232, %c12_233, %c0_234, %c0_235] : memref<1x16x16x128xf32, #tpu.memory_space<vmem>>, vector<1x1x16x128xf32>
    %380 = vector.shape_cast %379 : vector<1x1x16x128xf32> to vector<16x128xf32>
    %381 = vector.shape_cast %378 : vector<16x128xf32> to vector<1x1x16x128xf32>
    tpu.vector_store %arg6[%c0_232, %c12_233, %c0_234, %c0_235], %381 {strides = array<i32>} : memref<1x16x16x128xf32, #tpu.memory_space<vmem>>, vector<1x1x16x128xf32>,
    %cst_236 = arith.constant 7.500000e-01 : f32
    %382 = vector.broadcast %cst_236 : f32 to vector<16x128xf32>
    %383 = arith.mulf %382, %369 : vector<16x128xf32>
    %cst_237 = arith.constant 2.500000e-01 : f32
    %384 = vector.broadcast %cst_237 : f32 to vector<16x128xf32>
    %385 = arith.mulf %384, %373 : vector<16x128xf32>
    %386 = arith.addf %383, %385 : vector<16x128xf32>
    %c0_238 = arith.constant 0 : index
    %c13_239 = arith.constant 13 : index
    %c0_240 = arith.constant 0 : index
    %c0_241 = arith.constant 0 : index
    %387 = vector.load %arg6[%c0_238, %c13_239, %c0_240, %c0_241] : memref<1x16x16x128xf32, #tpu.memory_space<vmem>>, vector<1x1x16x128xf32>
    %388 = vector.shape_cast %387 : vector<1x1x16x128xf32> to vector<16x128xf32>
    %389 = vector.shape_cast %386 : vector<16x128xf32> to vector<1x1x16x128xf32>
    tpu.vector_store %arg6[%c0_238, %c13_239, %c0_240, %c0_241], %389 {strides = array<i32>} : memref<1x16x16x128xf32, #tpu.memory_space<vmem>>, vector<1x1x16x128xf32>,
    %c7_242 = arith.constant 7 : index
    %c0_243 = arith.constant 0 : index
    %c0_244 = arith.constant 0 : index
    %390 = vector.load %arg7[%c7_242, %c0_243, %c0_244] : memref<8x16x128xf32, #tpu.memory_space<vmem>>, vector<1x16x128xf32>
    %391 = vector.shape_cast %390 : vector<1x16x128xf32> to vector<16x128xf32>
    %c6_245 = arith.constant 6 : index
    %c0_246 = arith.constant 0 : index
    %c0_247 = arith.constant 0 : index
    %392 = vector.load %arg7[%c6_245, %c0_246, %c0_247] : memref<8x16x128xf32, #tpu.memory_space<vmem>>, vector<1x16x128xf32>
    %393 = vector.shape_cast %392 : vector<1x16x128xf32> to vector<16x128xf32>
    %c7_248 = arith.constant 7 : index
    %c0_249 = arith.constant 0 : index
    %c0_250 = arith.constant 0 : index
    %394 = vector.load %arg7[%c7_248, %c0_249, %c0_250] : memref<8x16x128xf32, #tpu.memory_space<vmem>>, vector<1x16x128xf32>
    %395 = vector.shape_cast %394 : vector<1x16x128xf32> to vector<16x128xf32>
    %cst_251 = arith.constant 2.500000e-01 : f32
    %396 = vector.broadcast %cst_251 : f32 to vector<16x128xf32>
    %397 = arith.mulf %396, %393 : vector<16x128xf32>
    %cst_252 = arith.constant 7.500000e-01 : f32
    %398 = vector.broadcast %cst_252 : f32 to vector<16x128xf32>
    %399 = arith.mulf %398, %391 : vector<16x128xf32>
    %400 = arith.addf %397, %399 : vector<16x128xf32>
    %c0_253 = arith.constant 0 : index
    %c14_254 = arith.constant 14 : index
    %c0_255 = arith.constant 0 : index
    %c0_256 = arith.constant 0 : index
    %401 = vector.load %arg6[%c0_253, %c14_254, %c0_255, %c0_256] : memref<1x16x16x128xf32, #tpu.memory_space<vmem>>, vector<1x1x16x128xf32>
    %402 = vector.shape_cast %401 : vector<1x1x16x128xf32> to vector<16x128xf32>
    %403 = vector.shape_cast %400 : vector<16x128xf32> to vector<1x1x16x128xf32>
    tpu.vector_store %arg6[%c0_253, %c14_254, %c0_255, %c0_256], %403 {strides = array<i32>} : memref<1x16x16x128xf32, #tpu.memory_space<vmem>>, vector<1x1x16x128xf32>,
    %cst_257 = arith.constant 7.500000e-01 : f32
    %404 = vector.broadcast %cst_257 : f32 to vector<16x128xf32>
    %405 = arith.mulf %404, %391 : vector<16x128xf32>
    %cst_258 = arith.constant 2.500000e-01 : f32
    %406 = vector.broadcast %cst_258 : f32 to vector<16x128xf32>
    %407 = arith.mulf %406, %395 : vector<16x128xf32>
    %408 = arith.addf %405, %407 : vector<16x128xf32>
    %c0_259 = arith.constant 0 : index
    %c15_260 = arith.constant 15 : index
    %c0_261 = arith.constant 0 : index
    %c0_262 = arith.constant 0 : index
    %409 = vector.load %arg6[%c0_259, %c15_260, %c0_261, %c0_262] : memref<1x16x16x128xf32, #tpu.memory_space<vmem>>, vector<1x1x16x128xf32>
    %410 = vector.shape_cast %409 : vector<1x1x16x128xf32> to vector<16x128xf32>
    %411 = vector.shape_cast %408 : vector<16x128xf32> to vector<1x1x16x128xf32>
    tpu.vector_store %arg6[%c0_259, %c15_260, %c0_261, %c0_262], %411 {strides = array<i32>} : memref<1x16x16x128xf32, #tpu.memory_space<vmem>>, vector<1x1x16x128xf32>,
    return
  }
  func.func @transform_0(%arg0: i32) -> (i32, i32, i32, i32) {
    %c0_i32 = arith.constant 0 : i32
    %c0_i32_0 = arith.constant 0 : i32
    %c0_i32_1 = arith.constant 0 : i32
    %c0_i32_2 = arith.constant 0 : i32
    return %arg0, %c0_i32, %c0_i32_0, %c0_i32_1 : i32, i32, i32, i32
  }
  func.func @transform_1(%arg0: i32) -> (i32, i32) {
    %c0_i32 = arith.constant 0 : i32
    %c0_i32_0 = arith.constant 0 : i32
    %c0_i32_1 = arith.constant 0 : i32
    return %c0_i32, %c0_i32_0 : i32, i32
  }
  func.func @transform_2(%arg0: i32) -> (i32, i32) {
    %c0_i32 = arith.constant 0 : i32
    %c0_i32_0 = arith.constant 0 : i32
    %c0_i32_1 = arith.constant 0 : i32
    return %c0_i32, %c0_i32_0 : i32, i32
  }
  func.func @transform_3(%arg0: i32) -> (i32, i32) {
    %c0_i32 = arith.constant 0 : i32
    %c0_i32_0 = arith.constant 0 : i32
    %c0_i32_1 = arith.constant 0 : i32
    return %c0_i32, %c0_i32_0 : i32, i32
  }
  func.func @transform_4(%arg0: i32) -> (i32, i32) {
    %c0_i32 = arith.constant 0 : i32
    %c0_i32_0 = arith.constant 0 : i32
    %c0_i32_1 = arith.constant 0 : i32
    return %c0_i32, %c0_i32_0 : i32, i32
  }
  func.func @transform_5(%arg0: i32) -> (i32, i32, i32, i32) {
    %c0_i32 = arith.constant 0 : i32
    %c0_i32_0 = arith.constant 0 : i32
    %c0_i32_1 = arith.constant 0 : i32
    %c0_i32_2 = arith.constant 0 : i32
    return %arg0, %c0_i32, %c0_i32_0, %c0_i32_1 : i32, i32, i32, i32
  }
}

</mosaic_0001>

<bundles_post_ra>
// kernel: fcn_wrapper_forward.3
= control target key start
LH: loop header
LB: loop body
LE: loop exit
PB: predicated region body
PF: predicated region fallthrough
CT: control target
= control target key end

     0   :  { %s1032_s12 = smov 0   ;;  %s1193_s0 = inlined_call_operand.vmem [shape: bf16[2,9,9,12], index: 0, kind: input, shape index: {}]   ;;  %s1194_s1 = inlined_call_operand.vmem [shape: bf16[48,128], index: 1, kind: input, shape index: {}]   ;;  %s1195_s2 = inlined_call_operand.vmem [shape: f32[1,128], index: 2, kind: input, shape index: {}]   ;;  %s1196_s3 = inlined_call_operand.vmem [shape: bf16[2,8,8,128], index: 3, kind: output, shape index: {}]  }
   0x1 LB: > { %s824_s13 = sadd.s32 4294967295, %s1010_s12   ;;  %p828_p0 = scmp.ge.s32.totalorder %s1010_s12, 1  ;;  %s1010_s12 = sphi %s1032_s12, %s13_s12  }
   0x2   : > { %p137_p1 = scmp.lt.s32.totalorder %s1010_s12, 3 }
   0x4   : > { %p138_p2 = pnand %p828_p0, %p137_p1 }
   0x5   : > { %vm340_vm0 = vcmask (!%p138_p2), 1045504   ;;  %p161_p3 = scmp.lt.s32.totalorder (!%p138_p2), %s824_s13, 1  ;;  %v992_v0 = vld [vmem:[%s1194_s1 + $0xc] sm:$0x3f] (!%p138_p2)   ;;  %v996_v1 = vld [vmem:[%s1194_s1 + $0x4] sm:$0xfc] (!%p138_p2)  }
   0x6   : > { %141 = sbr.rel (%p138_p2) target bundleno = 285 (0x11d), region = 32  ;;  %981 = vmatprep.subr.msk.bf16.mxu0 (!%p138_p2), %vm340_vm0, %v992_v0  ;;  %v540_v2 = vsel (!%p138_p2), %vm340_vm0, %v992_v0, 0  ;;  %v326_v3 = vrot.slane (!%p138_p2), %v996_v1, 2  ;;  %v1054_v4 = vld [vmem:[%s1194_s1] sm:$0x3f] (!%p138_p2)   ;;  %vm327_vm1 = vcmask (!%p138_p2), 97280  }
   0x7   : > { %936 = vmatpush3.bf16.msra.mxu0 (!%p138_p2), %v540_v2  ;;  %vm192_vm2 = vsmask.f32 (!%p138_p2), 3328  ;;  %vm193_vm3 = vsmask.f32 (!%p138_p2), 7440  ;;  %v1000_v1 = vld [vmem:[%s1194_s1 + $0x10] sm:$0xfc] (!%p138_p2)  }
   0x8   : > { %979 = vmatprep.subr.msk.bf16.mxu1 (!%p138_p2), %vm340_vm0, %v326_v3  ;;  %v342_v5 = vsel (!%p138_p2), %vm340_vm0, %v326_v3, 0  ;;  %vm1114_vm4 = vmor (!%p138_p2), %vm192_vm2, %vm193_vm3 }
   0x9   : > { %916 = vmatpush3.bf16.msra.mxu1 (!%p138_p2), %v342_v5 }
   0xa   : > { %980 = vmatprep.subr.msk.bf16.mxu1 (!%p138_p2), %vm340_vm0, %v1054_v4 }
   0xd   : > { %s1200_s13 = smov (!%p161_p3, %s824_s13), 1 }
   0xe   : > { %s983_s18 = smul.u32 72, %s1200_s13  ;;  %s871_s28 = sshll.u32 %s1200_s13, 5 }
   0xf   : > { %s170_s4 = scalar_lea.vmem %s1196_s3, %s871_s28 }
  0x10   : > { %s1059_s23 = scalar_lea.vmem %s1193_s0, %s983_s18 }
  0x11   : > { %v1064_v6 = vld [vmem:[%s1059_s23 + $0x8] sm:$0xf]  ;;  %v1067_v7 = vld [vmem:[%s1059_s23 + $0x10] sm:$0xf]  ;;  %v1070_v8 = vld [vmem:[%s1059_s23 + $0x18] sm:$0xf] }
  0x12   : > { %v224_v9 = vshrl.u32 %v1067_v7, 16  ;;  %v227_v10 = vshll.u32 %v1067_v7, 16  ;;  %v1075_v11 = vld [vmem:[%s1059_s23 + $0x20] sm:$0xf]  ;;  %v210_v12 = vshrl.u32 %v1064_v6, 16  ;;  %v213_v13 = vshll.u32 %v1064_v6, 16 }
  0x13   : > { %v850_v14 = vcombine.low %v1064_v6, %v1067_v7  ;;  %v1084_v15 = vld [vmem:[%s1059_s23 + $0x28] sm:$0xf]  ;;  %v1087_v16 = vld [vmem:[%s1059_s23 + $0x30] sm:$0xf]  ;;  %v252_v19 = vshrl.u32 %v1075_v11, 16  ;;  %v851_v20 = vcombine.low %v1070_v8, %v1075_v11  ;;  %v255_v22 = vshll.u32 %v1075_v11, 16 }
  0x14   : > { %v226_v17 = vrot.slane %v224_v9, 4  ;;  %v229_v18 = vrot.slane %v227_v10, 5  ;;  %v1093_v21 = vld [vmem:[%s1059_s23] sm:$0xf]  ;;  %v266_v23 = vshrl.u32 %v1084_v15, 16  ;;  %v269_v24 = vshll.u32 %v1084_v15, 16 }
  0x15   : > { %937 = vmatprep.mubr.msk.bf16.mxu0 %vm327_vm1, %v850_v14  ;;  %v852_v25 = vcombine.low %v1084_v15, %v1087_v16  ;;  %v173_v26 = vld [vmem:[%s1059_s23 + $0x4] sm:$0x1]  ;;  %v280_v27 = vshrl.u32 %v1087_v16, 16  ;;  %v283_v28 = vshll.u32 %v1087_v16, 16  ;;  %v175_v29 = vld [vmem:[%s1059_s23 + $0xc] sm:$0x1] }
  0x16   : > { %938 = vmatmul.mubr.msk.bf16.vlgmr.msra.gmra.mrb[0].mxu0 %vm327_vm1, %v851_v20  ;;  %v177_v30 = vld [vmem:[%s1059_s23 + $0x14] sm:$0x1]  ;;  %v230_v31 = vor.u32 %v229_v18, %v226_v17  ;;  %v196_v32 = vshrl.u32 %v1093_v21, 16  ;;  %v199_v33 = vshll.u32 %v1093_v21, 16  ;;  %v205_v34 = vshll.u32 %v173_v26, 16 }
  0x17   : > { %941 = vmatprep.mubr.msk.bf16.mxu0 %vm327_vm1, %v852_v25  ;;  %v212_v35 = vrot.slane %v210_v12, 4  ;;  %v179_v36 = vld [vmem:[%s1059_s23 + $0x1c] sm:$0x1]  ;;  %v215_v37 = vrot.slane %v213_v13, 5  ;;  %v219_v38 = vshll.u32 %v175_v29, 16  ;;  %v233_v40 = vshll.u32 %v177_v30, 16 }
  0x18   : > { %v231_v39 = vrot.slane %v230_v31, 4  ;;  %v181_v41 = vld [vmem:[%s1059_s23 + $0x24] sm:$0x1]  ;;  %v198_v43 = vrot.slane %v196_v32, 4  ;;  %v201_v44 = vrot.slane %v199_v33, 5  ;;  %v207_v45 = vrot.slane %v205_v34, 5 }
  0x19   : > { %v238_v46 = vshrl.u32 %v1070_v8, 16  ;;  %v216_v47 = vor.u32 %v215_v37, %v212_v35  ;;  %v221_v48 = vrot.slane %v219_v38, 5  ;;  %v235_v49 = vrot.slane %v233_v40, 5  ;;  %v1121_v51 = vld [vmem:[%s1059_s23 + $0x38] sm:$0xf] }
  0x1a   : > { %v241_v50 = vshll.u32 %v1070_v8, 16  ;;  %v202_v52 = vor.u32 %v201_v44, %v198_v43  ;;  %v247_v54 = vshll.u32 %v179_v36, 16  ;;  %v254_v55 = vrot.slane %v252_v19, 4  ;;  %v188_v60 = vld [vmem:[%s1059_s23 + $0x40] sm:$0xf] }
  0x1b   : > { %v240_v53 = vrot.slane %v238_v46, 4  ;;  %v217_v56 = vrot.slane %v216_v47, 4  ;;  %v236_v57 = vsel %vm1114_vm4, %v231_v39, %v235_v49  ;;  %v257_v59 = vrot.slane %v255_v22, 5  ;;  %v183_v29 = vld [vmem:[%s1059_s23 + $0x2c] sm:$0x1] }
  0x1c   : > { %v243_v58 = vrot.slane %v241_v50, 5  ;;  %v203_v61 = vrot.slane %v202_v52, 4  ;;  %v249_v62 = vrot.slane %v247_v54, 5  ;;  %v261_v63 = vshll.u32 %v181_v41, 16  ;;  %v185_v35 = vld [vmem:[%s1059_s23 + $0x34] sm:$0x1] }
  0x1d   : > { %v294_v0 = vshrl.u32 %v1121_v51, 16  ;;  %v222_v2 = vsel %vm1114_vm4, %v217_v56, %v221_v48  ;;  %v258_v5 = vor.u32 %v257_v59, %v254_v55  ;;  %v297_v9 = vshll.u32 %v1121_v51, 16  ;;  %v187_v36 = vld [vmem:[%s1059_s23 + $0x3c] sm:$0x1]  ;;  %v189_v44 = vld [vmem:[%s1059_s23 + $0x44] sm:$0x1] }
  0x1e   : > { %v244_v3 = vor.u32 %v243_v58, %v240_v53  ;;  %v208_v10 = vsel %vm1114_vm4, %v203_v61, %v207_v45  ;;  %v263_v12 = vrot.slane %v261_v63, 5  ;;  %v859_v13 = vcombine.low %v222_v2, %v236_v57 }
  0x1f   : > { %v853_v14 = vcombine.low %v1121_v51, %v188_v60  ;;  %v259_v18 = vrot.slane %v258_v5, 4  ;;  %v832_v19 = vcombine.low %v208_v10, %v222_v2  ;;  %v616_v20 = vshrl.u32 %v188_v60, 16 }
  0x20   : > { %v245_v17 = vrot.slane %v244_v3, 4  ;;  %v619_v22 = vshll.u32 %v188_v60, 16  ;;  %v641_v25 = vrot.slane %v1000_v1, 2  ;;  %v447_v26 = vsel %vm340_vm0, %v1054_v4, 0 }
  0x21   : > { %942 = vmatmul.mubr.msk.bf16.gmra.mrb[4].mxu0 %vm327_vm1, %v853_v14  ;;  %v268_v30 = vrot.slane %v266_v23, 4  ;;  %v264_v32 = vsel %vm1114_vm4, %v259_v18, %v263_v12  ;;  %917 = vmatprep.mubr.msk.bf16.mxu1 %vm327_vm1, %v832_v19  ;;  %v618_v33 = vrot.slane %v616_v20, 4  ;;  %v271_v34 = vrot.slane %v269_v24, 5 }
  0x22   : > { %v250_v31 = vsel %vm1114_vm4, %v245_v17, %v249_v62  ;;  %947 = vmatprep.mubr.msk.bf16.mxu0 %vm327_vm1, %v859_v13  ;;  %v621_v23 = vrot.slane %v619_v22, 5  ;;  %982 = vmatprep.subr.msk.bf16.mxu0 %vm340_vm0, %v641_v25  ;;  %v655_v38 = vsel %vm340_vm0, %v641_v25, 0  ;;  %v275_v40 = vshll.u32 %v183_v29, 16 }
  0x23   : > { %v833_v4 = vcombine.low %v236_v57, %v250_v31  ;;  %v860_v37 = vcombine.low %v250_v31, %v264_v32  ;;  %946 = vmatpush3.bf16.msra.mxu0 %v655_v38  ;;  %v272_v39 = vor.u32 %v271_v34, %v268_v30  ;;  %v282_v41 = vrot.slane %v280_v27, 4 }
  0x24   : > { %v285_v43 = vrot.slane %v283_v28, 5  ;;  %v289_v24 = vshll.u32 %v185_v35, 16  ;;  %v296_v45 = vrot.slane %v294_v0, 4  ;;  %v299_v46 = vrot.slane %v297_v9, 5 }
  0x25   : > { %918 = vmatmul.mubr.msk.bf16.vlgmr.msra.gmra.mrb[0].mxu1 %vm327_vm1, %v833_v4  ;;  %v303_v47 = vshll.u32 %v187_v36, 16  ;;  %v273_v48 = vrot.slane %v272_v39, 4  ;;  %v277_v49 = vrot.slane %v275_v40, 5  ;;  %v622_v52 = vor.u32 %v621_v23, %v618_v33 }
  0x26   : > { %926 = vmatpush3.bf16.msra.mxu1 %v447_v26  ;;  %v286_v50 = vor.u32 %v285_v43, %v282_v41  ;;  %v291_v53 = vrot.slane %v289_v24, 5  ;;  %v300_v54 = vor.u32 %v299_v46, %v296_v45  ;;  %v625_v56 = vshll.u32 %v189_v44, 16 }
  0x27   : > { %v305_v55 = vrot.slane %v303_v47, 5  ;;  %v278_v27 = vsel %vm1114_vm4, %v273_v48, %v277_v49  ;;  %v623_v57 = vrot.slane %v622_v52, 4  ;;  %v841_v0 = vcombine.low %v1093_v21, %v1064_v6 }
  0x28   : > { %v287_v28 = vrot.slane %v286_v50, 4  ;;  %v834_v58 = vcombine.low %v264_v32, %v278_v27  ;;  %v301_v59 = vrot.slane %v300_v54, 4  ;;  %v627_v60 = vrot.slane %v625_v56, 5 }
  0x29   : > { %948 = vmatmul.mubr.msk.bf16.vlgmr.msra.gmra.mrb[0].mxu0 %vm327_vm1, %v860_v37  ;;  %v842_v5 = vcombine.low %v1067_v7, %v1070_v8  ;;  %v843_v9 = vcombine.low %v1075_v11, %v1084_v15  ;;  %v844_v6 = vcombine.low %v1087_v16, %v1121_v51  ;;  %v868_v11 = vld [vmem:[%s1195_s2] ss:$0 sm:$0xff] }
  0x2a   : > { %v292_v61 = vsel %vm1114_vm4, %v287_v28, %v291_v53  ;;  %921 = vmatprep.mubr.msk.bf16.mxu1 %vm327_vm1, %v834_v58  ;;  %v306_v62 = vsel %vm1114_vm4, %v301_v59, %v305_v55  ;;  %v628_v1 = vsel %vm1114_vm4, %v623_v57, %v627_v60 }
  0x2b   : > { %v861_v63 = vcombine.low %v278_v27, %v292_v61  ;;  %v835_v2 = vcombine.low %v292_v61, %v306_v62  ;;  %v862_v3 = vcombine.low %v306_v62, %v628_v1 }
  0x2d   : > { %951 = vmatprep.mubr.msk.bf16.mxu0 %vm327_vm1, %v861_v63  ;;  %922 = vmatmul.mubr.msk.bf16.gmra.mrb[4].mxu1 %vm327_vm1, %v835_v2 }
  0x2e   : > { %927 = vmatprep.mubr.msk.bf16.mxu1 %vm327_vm1, %v841_v0 }
  0x31   : > { %952 = vmatmul.mubr.msk.bf16.gmra.mrb[4].mxu0 %vm327_vm1, %v862_v3 }
  0x35   : > { %928 = vmatmul.mubr.msk.bf16.vlgmr.msra.gmra.mrb[0].mxu1 %vm327_vm1, %v842_v5 }
  0x36   : > { %931 = vmatprep.mubr.msk.bf16.mxu1 %vm327_vm1, %v843_v9 }
  0x3d   : > { %932 = vmatmul.mubr.msk.bf16.gmra.mrb[4].mxu1 %vm327_vm1, %v844_v6 }
  0xfc   : > { %v949_v21 = vpop.f32.mrb[0].mxu0 }
  0xfd   : > { %v691_v42 = vpop.f32.mrb[1].mxu0 }
  0xfe   : > { %v950_v10 = vpop.f32.mrb[2].mxu0 }
  0xff   : > { %v694_v12 = vpop.f32.mrb[3].mxu0 }
 0x104   : > { %v953_v13 = vpop.f32.mrb[4].mxu0 }
 0x105   : > { %v707_v14 = vpop.f32.mrb[5].mxu0 }
 0x106   : > { %v954_v7 = vpop.f32.mrb[6].mxu0 }
 0x107   : > { %v710_v8 = vpop.f32.mrb[7].mxu0 }
 0x108   : > { %v929_v17 = vpop.f32.mrb[0].mxu1 }
 0x109   : > { %v955_v15 = vadd.f32 %v949_v21, %v929_v17  ;;  %v483_v18 = vpop.f32.mrb[1].mxu1 }
 0x10a   : > { %v956_v19 = vadd.f32 %v691_v42, %v483_v18  ;;  %v930_v16 = vpop.f32.mrb[2].mxu1 }
 0x10b   : > { %v739_v51 = vadd.f32 %v955_v15, %v868_v11  ;;  %v957_v20 = vadd.f32 %v950_v10, %v930_v16  ;;  %v486_v22 = vpop.f32.mrb[3].mxu1 }
 0x10c   : > { %v737_v25 = vadd.f32 %v956_v19, %v868_v11  ;;  %v958_v26 = vadd.f32 %v694_v12, %v486_v22 }
 0x10d   : > { %v740_v29 = vadd.f32 %v957_v20, %v868_v11  ;;  %v747_v31 = vmax.f32 %v739_v51, 0.0 }
 0x10e   : > { %v738_v30 = vadd.f32 %v958_v26, %v868_v11  ;;  %v745_v33 = vmax.f32 %v737_v25, 0.0 }
 0x10f   : > { %v748_v32 = vmax.f32 %v740_v29, 0.0 }
 0x110   : > { %v746_v34 = vmax.f32 %v738_v30, 0.0  ;;  %v933_v35 = vpop.f32.mrb[4].mxu1 }
 0x111   : > { %v880_v36 = vpack.c.bf16 %v748_v32, %v747_v31  ;;  %v959_v4 = vadd.f32 %v953_v13, %v933_v35  ;;  %v499_v37 = vpop.f32.mrb[5].mxu1 }
 0x112   : > { %v875_v23 = vpack.c.bf16 %v746_v34, %v745_v33  ;;  %v960_v38 = vadd.f32 %v707_v14, %v499_v37  ;;  %v934_v39 = vpop.f32.mrb[6].mxu1 }
 0x113   : > { %892 = vst [vmem:[%s170_s4 + $0x8] sm:$0xff] %v880_v36   ;;  %v743_v40 = vadd.f32 %v959_v4, %v868_v11  ;;  %v961_v41 = vadd.f32 %v954_v7, %v934_v39  ;;  %v502_v43 = vpop.f32.mrb[7].mxu1 }
 0x114   : > { %876 = vst [vmem:[%s170_s4] sm:$0xff] %v875_v23   ;;  %v741_v44 = vadd.f32 %v960_v38, %v868_v11  ;;  %v962_v24 = vadd.f32 %v710_v8, %v502_v43 }
 0x115   : > { %v744_v45 = vadd.f32 %v961_v41, %v868_v11  ;;  %v751_v47 = vmax.f32 %v743_v40, 0.0 }
 0x116   : > { %v742_v46 = vadd.f32 %v962_v24, %v868_v11  ;;  %v749_v49 = vmax.f32 %v741_v44, 0.0 }
 0x117   : > { %v752_v48 = vmax.f32 %v744_v45, 0.0 }
 0x118   : > { %v750_v50 = vmax.f32 %v742_v46, 0.0 }
 0x119   : > { %v890_v52 = vpack.c.bf16 %v752_v48, %v751_v47 }
 0x11a   : > { %v885_v53 = vpack.c.bf16 %v750_v50, %v749_v49 }
 0x11b   : > { %894 = vst [vmem:[%s170_s4 + $0x18] sm:$0xff] %v890_v52  }
 0x11c   : > { %893 = vst [vmem:[%s170_s4 + $0x10] sm:$0xff] %v885_v53  }
 0x11d PF: > { %s13_s12 = sadd.s32 1, %s1010_s12  }
 0x11e   : > { %p10_p4 = scmp.ge.s32.totalorder %s13_s12, 4  }
 0x120   :  { %12 = sbr.rel (!%p10_p4) target bundleno = 1 (0x1), region = 62 }

// kernel: fcn_wrapper_forward.4
= control target key start
LH: loop header
LB: loop body
LE: loop exit
PB: predicated region body
PF: predicated region fallthrough
CT: control target
= control target key end

     0   :  { %s2459_s12 = smov 0   ;;  %s2972_s0 = inlined_call_operand.vmem [shape: bf16[2,10,10,128], index: 0, kind: input, shape index: {}]   ;;  %s2973_s1 = inlined_call_operand.vmem [shape: bf16[1152,128], index: 1, kind: input, shape index: {}]   ;;  %s2974_s2 = inlined_call_operand.vmem [shape: f32[1,128], index: 2, kind: input, shape index: {}]   ;;  %s2975_s3 = inlined_call_operand.vmem [shape: bf16[2,8,8,128], index: 3, kind: output, shape index: {}]  }
   0x1 LB: > { %s1793_s13 = sadd.s32 4294967295, %s2437_s12   ;;  %p1797_p0 = scmp.ge.s32.totalorder %s2437_s12, 1  ;;  %s2437_s12 = sphi %s2459_s12, %s13_s12  }
   0x2   : > { %p137_p1 = scmp.lt.s32.totalorder %s2437_s12, 3 }
   0x4   : > { %p138_p2 = pnand %p1797_p0, %p137_p1 }
   0x5   : > { %v2350_v0 = vld [vmem:[%s2973_s1 + $0x40] sm:$0xff] (!%p138_p2)   ;;  %p161_p3 = scmp.lt.s32.totalorder (!%p138_p2), %s1793_s13, 1  ;;  %v2352_v2 = vld [vmem:[%s2973_s1 + $0x48] sm:$0xff] (!%p138_p2)   ;;  %v2354_v4 = vld [vmem:[%s2973_s1 + $0x50] sm:$0xff] (!%p138_p2)   ;;  %vm208_vm0 = vsmask.f32 (!%p138_p2), 3328 }
   0x6   : > { %141 = sbr.rel (%p138_p2) target bundleno = 392 (0x188), region = 32  ;;  %v2351_v1 = vld [vmem:[%s2973_s1 + $0x100] sm:$0xff] (!%p138_p2)   ;;  %2045 = vmatprep.subr.bf16.mxu1 (!%p138_p2), %v2350_v0  ;;  %v2353_v3 = vld [vmem:[%s2973_s1 + $0x108] sm:$0xff] (!%p138_p2)   ;;  %v2355_v5 = vld [vmem:[%s2973_s1 + $0x110] sm:$0xff] (!%p138_p2)   ;;  %vm209_vm1 = vsmask.f32 (!%p138_p2), 7440 }
   0x7   : > { %2141 = vmatprep.subr.bf16.mxu0 (!%p138_p2), %v2351_v1  ;;  %2046 = vmatpush3.bf16.msra.mxu1 (!%p138_p2), %v2350_v0  ;;  %v2356_v6 = vld [vmem:[%s2973_s1 + $0x58] sm:$0xff] (!%p138_p2)   ;;  %v2358_v8 = vld [vmem:[%s2973_s1 + $0x60] sm:$0xff] (!%p138_p2)   ;;  %v2360_v10 = vld [vmem:[%s2973_s1 + $0x68] sm:$0xff] (!%p138_p2)   ;;  %vm613_vm3 = vcmask (!%p138_p2), 1042432   ;;  %vm614_vm4 = vcmask (!%p138_p2), 1046532  }
   0x8   : > { %2142 = vmatpush3.bf16.msra.mxu0 (!%p138_p2), %v2351_v1  ;;  %2047 = vmatprep.subr.bf16.mxu1 (!%p138_p2), %v2352_v2  ;;  %v2357_v7 = vld [vmem:[%s2973_s1 + $0x118] sm:$0xff] (!%p138_p2)   ;;  %v2359_v9 = vld [vmem:[%s2973_s1 + $0x120] sm:$0xff] (!%p138_p2)   ;;  %v2361_v14 = vld [vmem:[%s2973_s1 + $0x128] sm:$0xff] (!%p138_p2)  }
   0x9   : > { %2143 = vmatprep.subr.bf16.mxu0 (!%p138_p2), %v2353_v3  ;;  %v2362_v22 = vld [vmem:[%s2973_s1 + $0x70] sm:$0xff] (!%p138_p2)   ;;  %v2364_v38 = vld [vmem:[%s2973_s1 + $0x78] sm:$0xff] (!%p138_p2)   ;;  %vm2556_vm2 = vmor (!%p138_p2), %vm208_vm0, %vm209_vm1 }
   0xa   : > { %v2363_v23 = vld [vmem:[%s2973_s1 + $0x130] sm:$0xff] (!%p138_p2)   ;;  %v2365_v48 = vld [vmem:[%s2973_s1 + $0x138] sm:$0xff] (!%p138_p2)   ;;  %v2366_v62 = vld [vmem:[%s2973_s1] sm:$0xff] (!%p138_p2)  }
   0xb   : > { %2048 = vmatpush3.bf16.msra.mxu1 (!%p138_p2), %v2352_v2  ;;  %vm2669_vm5 = vmor (!%p138_p2), %vm613_vm3, %vm614_vm4  ;;  %v2394_v39 = vld [vmem:[%s2973_s1 + $0xa8] sm:$0xff] (!%p138_p2)  }
   0xc   : > { %2144 = vmatpush3.bf16.msra.mxu0 (!%p138_p2), %v2353_v3  ;;  %2049 = vmatprep.subr.bf16.mxu1 (!%p138_p2), %v2354_v4  ;;  %v2367_v3 = vld [vmem:[%s2973_s1 + $0x140] sm:$0xff] (!%p138_p2)  }
   0xd   : > { %s2981_s13 = smov (!%p161_p3, %s1793_s13), 1  ;;  %2145 = vmatprep.subr.bf16.mxu0 %v2355_v5 }
   0xe   : > { %s2341_s30 = smul.u32 80, %s2981_s13  ;;  %s1913_s15 = sshll.u32 %s2981_s13, 5 }
   0xf   : > { %2050 = vmatpush3.bf16.msra.mxu1 %v2354_v4  ;;  %s170_s18 = scalar_lea.vmem %s2975_s3, %s1913_s15 }
  0x10   : > { %2146 = vmatpush3.bf16.msra.mxu0 %v2355_v5  ;;  %2051 = vmatprep.subr.bf16.mxu1 %v2356_v6  ;;  %s2503_s10 = scalar_lea.vmem %s2972_s0, %s2341_s30 }
  0x11   : > { %2147 = vmatprep.subr.bf16.mxu0 %v2357_v7  ;;  %v2509_v11 = vld [vmem:[%s2503_s10] sm:$0xf]  ;;  %v2512_v12 = vld [vmem:[%s2503_s10 + $0x4] sm:$0x1]  ;;  %v2515_v13 = vld [vmem:[%s2503_s10 + $0x8] sm:$0xf] }
  0x12   : > { %v2521_v15 = vld [vmem:[%s2503_s10 + $0xc] sm:$0x1]  ;;  %v212_v16 = vshrl.u32 %v2509_v11, 16  ;;  %v215_v17 = vshll.u32 %v2509_v11, 16  ;;  %v221_v18 = vshll.u32 %v2512_v12, 16  ;;  %v226_v19 = vshrl.u32 %v2515_v13, 16 }
  0x13   : > { %2052 = vmatpush3.bf16.msra.mxu1 %v2356_v6  ;;  %v229_v20 = vshll.u32 %v2515_v13, 16  ;;  %v235_v21 = vshll.u32 %v2521_v15, 16  ;;  %v2536_v30 = vld [vmem:[%s2503_s10 + $0x10] sm:$0xf]  ;;  %v2539_v31 = vld [vmem:[%s2503_s10 + $0x14] sm:$0x1] }
  0x14   : > { %2148 = vmatpush3.bf16.msra.mxu0 %v2357_v7  ;;  %2053 = vmatprep.subr.bf16.mxu1 %v2358_v8  ;;  %v214_v24 = vrot.slane %v212_v16, 4  ;;  %v217_v25 = vrot.slane %v215_v17, 5  ;;  %v223_v26 = vrot.slane %v221_v18, 5  ;;  %v228_v27 = vrot.slane %v226_v19, 4  ;;  %v2542_v33 = vld [vmem:[%s2503_s10 + $0x18] sm:$0xf] }
  0x15   : > { %2149 = vmatprep.subr.bf16.mxu0 %v2359_v9  ;;  %v231_v28 = vrot.slane %v229_v20, 5  ;;  %v237_v29 = vrot.slane %v235_v21, 5  ;;  %v2545_v34 = vld [vmem:[%s2503_s10 + $0x1c] sm:$0x1]  ;;  %v240_v35 = vshrl.u32 %v2536_v30, 16  ;;  %v243_v36 = vshll.u32 %v2536_v30, 16 }
  0x16   : > { %v218_v32 = vor.u32 %v217_v25, %v214_v24  ;;  %v1845_v37 = vcombine.low %v2515_v13, %v2536_v30  ;;  %v249_v41 = vshll.u32 %v2539_v31, 16  ;;  %v254_v42 = vshrl.u32 %v2542_v33, 16  ;;  %v2568_v52 = vld [vmem:[%s2503_s10 + $0x20] sm:$0xf]  ;;  %v2573_v56 = vld [vmem:[%s2503_s10 + $0x24] sm:$0x1] }
  0x17   : > { %2054 = vmatpush3.bf16.msra.mxu1 %v2358_v8  ;;  %v232_v40 = vor.u32 %v231_v28, %v228_v27  ;;  %v257_v43 = vshll.u32 %v2542_v33, 16  ;;  %v242_v45 = vrot.slane %v240_v35, 4  ;;  %v245_v46 = vrot.slane %v243_v36, 5  ;;  %v2368_v17 = vld [vmem:[%s2973_s1 + $0x8] sm:$0xff]   ;;  %v2372_v35 = vld [vmem:[%s2973_s1 + $0x18] sm:$0xff]  }
  0x18   : > { %2150 = vmatpush3.bf16.msra.mxu0 %v2359_v9  ;;  %2055 = vmatprep.subr.bf16.mxu1 %v2360_v10  ;;  %v219_v44 = vrot.slane %v218_v32, 4  ;;  %v263_v47 = vshll.u32 %v2545_v34, 16  ;;  %v256_v50 = vrot.slane %v254_v42, 4  ;;  %v251_v55 = vrot.slane %v249_v41, 5  ;;  %v2369_v24 = vld [vmem:[%s2973_s1 + $0x148] sm:$0xff]   ;;  %v2371_v32 = vld [vmem:[%s2973_s1 + $0x150] sm:$0xff]  }
  0x19   : > { %2151 = vmatprep.subr.bf16.mxu0 %v2361_v14  ;;  %v233_v49 = vrot.slane %v232_v40, 4  ;;  %v259_v51 = vrot.slane %v257_v43, 5  ;;  %v246_v54 = vor.u32 %v245_v46, %v242_v45  ;;  %v268_v60 = vshrl.u32 %v2568_v52, 16  ;;  %v2609_v25 = vld [vmem:[%s2503_s10 + $0x28] sm:$0xf] }
  0x1a   : > { %v224_v53 = vsel %vm2556_vm2, %v219_v44, %v223_v26  ;;  %v265_v59 = vrot.slane %v263_v47, 5  ;;  %v271_v0 = vshll.u32 %v2568_v52, 16  ;;  %v277_v1 = vshll.u32 %v2573_v56, 16  ;;  %v2613_v27 = vld [vmem:[%s2503_s10 + $0x2c] sm:$0x1] }
  0x1b   : > { %2056 = vmatpush3.bf16.msra.mxu1 %v2360_v10  ;;  %v238_v57 = vsel %vm2556_vm2, %v233_v49, %v237_v29  ;;  %v260_v58 = vor.u32 %v259_v51, %v256_v50  ;;  %v247_v63 = vrot.slane %v246_v54, 4  ;;  %v270_v4 = vrot.slane %v268_v60, 4  ;;  %v2628_v42 = vld [vmem:[%s2503_s10 + $0x34] sm:$0x1]  ;;  %v2373_v54 = vld [vmem:[%s2973_s1 + $0x158] sm:$0xff]  }
  0x1c   : > { %2152 = vmatpush3.bf16.msra.mxu0 %v2361_v14  ;;  %2057 = vmatprep.subr.bf16.mxu1 %v2362_v22  ;;  %v1801_v61 = vcombine.low %v224_v53, %v238_v57  ;;  %v273_v6 = vrot.slane %v271_v0, 5  ;;  %v1846_v7 = vcombine.low %v2542_v33, %v2568_v52  ;;  %v279_v16 = vrot.slane %v277_v1, 5  ;;  %v2637_v53 = vld [vmem:[%s2503_s10 + $0x38] sm:$0xf]  ;;  %v2652_v0 = vld [vmem:[%s2503_s10 + $0x40] sm:$0xf] }
  0x1d   : > { %2153 = vmatprep.subr.bf16.mxu0 %v2363_v23  ;;  %v261_v2 = vrot.slane %v260_v58, 4  ;;  %v252_v5 = vsel %vm2556_vm2, %v247_v63, %v251_v55  ;;  %v622_v19 = vrot.slane %v2521_v15, 5  ;;  %v626_v20 = vrot.slane %v2539_v31, 5  ;;  %v2374_v55 = vld [vmem:[%s2973_s1 + $0x20] sm:$0xff]   ;;  %v2646_v58 = vld [vmem:[%s2503_s10 + $0x3c] sm:$0x1] }
  0x1e   : > { %2061 = vmatprep.mubr.bf16.mxu1 %v1801_v61  ;;  %v1857_v9 = vcombine.low %v238_v57, %v252_v5  ;;  %v274_v14 = vor.u32 %v273_v6, %v270_v4  ;;  %v1826_v26 = vrot.slane %v2515_v13, 9  ;;  %v282_v28 = vshrl.u32 %v2609_v25, 16  ;;  %v2655_v1 = vld [vmem:[%s2503_s10 + $0x44] sm:$0x1]  ;;  %v2377_v15 = vld [vmem:[%s2973_s1 + $0x168] sm:$0xff]  }
  0x1f   : > { %2058 = vmatpush3.bf16.msra.mxu1 %v2362_v22  ;;  %v266_v8 = vsel %vm2556_vm2, %v261_v2, %v265_v59  ;;  %v2370_v22 = vld [vmem:[%s2973_s1 + $0x10] sm:$0xff]   ;;  %v285_v29 = vshll.u32 %v2609_v25, 16  ;;  %v291_v36 = vshll.u32 %v2613_v27, 16  ;;  %v305_v45 = vshll.u32 %v2628_v42, 16 }
  0x20   : > { %2154 = vmatpush3.bf16.msra.mxu0 %v2363_v23  ;;  %2059 = vmatprep.subr.bf16.mxu1 %v2364_v38  ;;  %v2592_v10 = vcombine.low %v252_v5, %v266_v8  ;;  %v275_v18 = vrot.slane %v274_v14, 4  ;;  %v284_v40 = vrot.slane %v282_v28, 4  ;;  %v1827_v46 = vrot.slane %v2536_v30, 9  ;;  %v2376_v28 = vld [vmem:[%s2973_s1 + $0x28] sm:$0xff]  }
  0x21   : > { %2155 = vmatprep.subr.bf16.mxu0 %v2365_v48  ;;  %2157 = vmatprep.mubr.bf16.mxu0 %v1857_v9  ;;  %v287_v41 = vrot.slane %v285_v29, 5  ;;  %v293_v49 = vrot.slane %v291_v36, 5  ;;  %v307_v57 = vrot.slane %v305_v45, 5  ;;  %v310_v59 = vshrl.u32 %v2637_v53, 16 }
  0x22   : > { %v280_v21 = vsel %vm2556_vm2, %v275_v18, %v279_v16  ;;  %v313_v60 = vshll.u32 %v2637_v53, 16  ;;  %v319_v63 = vshll.u32 %v2646_v58, 16  ;;  %v949_v4 = vshrl.u32 %v2652_v0, 16  ;;  %v2375_v16 = vld [vmem:[%s2973_s1 + $0x160] sm:$0xff]  }
  0x23   : > { %2060 = vmatpush3.bf16.msra.mxu1 %v2364_v38  ;;  %v1858_v23 = vcombine.low %v266_v8, %v280_v21  ;;  %v2625_v38 = vld [vmem:[%s2503_s10 + $0x30] sm:$0xf]  ;;  %v312_v2 = vrot.slane %v310_v59, 4  ;;  %v952_v5 = vshll.u32 %v2652_v0, 16  ;;  %v958_v14 = vshll.u32 %v2655_v1, 16  ;;  %v2383_v59 = vld [vmem:[%s2973_s1 + $0x80] sm:$0xff]  }
  0x24   : > { %2156 = vmatpush3.bf16.msra.mxu0 %v2365_v48  ;;  %2069 = vmatprep.subr.bf16.mxu1 %v2366_v62  ;;  %v296_v43 = vshrl.u32 %v2625_v38, 16  ;;  %v299_v44 = vshll.u32 %v2625_v38, 16  ;;  %v1847_v47 = vcombine.low %v2609_v25, %v2625_v38  ;;  %v288_v48 = vor.u32 %v287_v41, %v284_v40 }
  0x25   : > { %2165 = vmatprep.subr.bf16.mxu0 %v2367_v3  ;;  %v321_v9 = vrot.slane %v319_v63, 5  ;;  %v960_v41 = vrot.slane %v958_v14, 5  ;;  %v2691_v45 = vsel %vm2669_vm5, %v1826_v26, %v622_v19  ;;  %v618_v26 = vrot.slane %v2512_v12, 5  ;;  %v2737_v63 = vld [vmem:[%s2503_s10 + $0x48] sm:$0xf]  ;;  %v2384_v14 = vld [vmem:[%s2973_s1 + $0x180] sm:$0xff]  }
  0x26   : > { %2062 = vmatmul.mubr.bf16.vlgmr.msra.gmra.mrb[0].mxu1 %v2592_v10  ;;  %v298_v50 = vrot.slane %v296_v43, 4  ;;  %v301_v51 = vrot.slane %v299_v44, 5  ;;  %v289_v61 = vrot.slane %v288_v48, 4  ;;  %v2697_v48 = vsel %vm2669_vm5, %v1827_v46, %v626_v20 }
  0x27   : > { %2070 = vmatpush3.bf16.msra.mxu1 %v2366_v62  ;;  %2158 = vmatmul.mubr.bf16.vlgmr.msra.gmra.mrb[0].mxu0 %v1858_v23  ;;  %v954_v23 = vrot.slane %v952_v5, 5  ;;  %v1870_v20 = vcombine.low %v2691_v45, %v2697_v48  ;;  %v630_v46 = vrot.slane %v2545_v34, 5  ;;  %v1828_v12 = vrot.slane %v2542_v33, 9  ;;  %v191_v5 = vld [vmem:[%s2503_s10 + $0x4c] sm:$0x1] }
  0x28   : > { %2071 = vmatprep.subr.bf16.mxu1 %v2368_v17  ;;  %2166 = vmatpush3.bf16.msra.mxu0 %v2367_v3  ;;  %v302_v62 = vor.u32 %v301_v51, %v298_v50  ;;  %v315_v3 = vrot.slane %v313_v60, 5  ;;  %v294_v6 = vsel %vm2556_vm2, %v289_v61, %v293_v49  ;;  %v2378_v49 = vld [vmem:[%s2973_s1 + $0x30] sm:$0xff]   ;;  %v634_v51 = vrot.slane %v2573_v56, 5 }
  0x29   : > { %2167 = vmatprep.subr.bf16.mxu0 %v2369_v24  ;;  %v1829_v34 = vrot.slane %v2568_v52, 9  ;;  %v1825_v56 = vrot.slane %v2509_v11, 9  ;;  %v1830_v60 = vrot.slane %v2609_v25, 9  ;;  %v638_v61 = vrot.slane %v2613_v27, 5  ;;  %v2386_v27 = vld [vmem:[%s2973_s1 + $0x88] sm:$0xff]  }
  0x2a   : > { %v303_v8 = vrot.slane %v302_v62, 4  ;;  %v316_v18 = vor.u32 %v315_v3, %v312_v2  ;;  %v1831_v62 = vrot.slane %v2625_v38, 9  ;;  %v1111_v2 = vrot.slane %v2655_v1, 5 }
  0x2b   : > { %2072 = vmatpush3.bf16.msra.mxu1 %v2368_v17  ;;  %v2665_v17 = vcombine.low %v280_v21, %v294_v6  ;;  %v1848_v21 = vcombine.low %v2637_v53, %v2652_v0  ;;  %v2743_v3 = vcombine.low %v2536_v30, %v2542_v33  ;;  %v2757_v1 = vsel %vm2669_vm5, %v1828_v12, %v630_v46  ;;  %v2411_v30 = vld [vmem:[%s2973_s1 + $0x1e0] sm:$0xff]   ;;  %v2426_v33 = vld [vmem:[%s2973_s1 + $0x218] sm:$0xff]  }
  0x2c   : > { %2073 = vmatprep.subr.bf16.mxu1 %v2370_v22  ;;  %2168 = vmatpush3.bf16.msra.mxu0 %v2369_v24  ;;  %v308_v29 = vsel %vm2556_vm2, %v303_v8, %v307_v57  ;;  %v317_v36 = vrot.slane %v316_v18, 4  ;;  %v2381_v57 = vld [vmem:[%s2973_s1 + $0x178] sm:$0xff]   ;;  %v2753_v8 = vcombine.low %v2568_v52, %v2609_v25  ;;  %v2804_v46 = vcombine.low %v2625_v38, %v2637_v53  ;;  %v2392_v24 = vld [vmem:[%s2973_s1 + $0xa0] sm:$0xff]   ;;  %v2429_v25 = vld [vmem:[%s2973_s1 + $0x230] sm:$0xff]  }
  0x2d   : > { %2169 = vmatprep.subr.bf16.mxu0 %v2371_v32  ;;  %2065 = vmatprep.mubr.bf16.mxu1 %v2665_v17  ;;  %v2427_v52 = vld [vmem:[%s2973_s1 + $0x220] sm:$0xff]   ;;  %v2430_v38 = vld [vmem:[%s2973_s1 + $0x238] sm:$0xff]  }
  0x2e   : > { %v322_v43 = vsel %vm2556_vm2, %v317_v36, %v321_v9  ;;  %v1557_v9 = vrot.slane %v191_v5, 5  ;;  %v1404_v36 = vshll.u32 %v2737_v63, 16 }
  0x2f   : > { %2074 = vmatpush3.bf16.msra.mxu1 %v2370_v22  ;;  %v951_v22 = vrot.slane %v949_v4, 4  ;;  %v2702_v50 = vcombine.low %v308_v29, %v322_v43  ;;  %v642_v4 = vrot.slane %v2628_v42, 5  ;;  %v2761_v42 = vsel %vm2669_vm5, %v1829_v34, %v634_v51  ;;  %v2389_v34 = vld [vmem:[%s2973_s1 + $0x190] sm:$0xff]  }
  0x30   : > { %2075 = vmatprep.subr.bf16.mxu1 %v2372_v35  ;;  %2170 = vmatpush3.bf16.msra.mxu0 %v2371_v32  ;;  %v1813_v32 = vcombine.low %v2509_v11, %v2515_v13  ;;  %v1869_v11 = vrot.slane %v2652_v0, 9  ;;  %v2412_v13 = vld [vmem:[%s2973_s1 + $0xe8] sm:$0xff]  }
  0x31   : > { %2171 = vmatprep.subr.bf16.mxu0 %v2373_v54  ;;  %v955_v40 = vor.u32 %v954_v23, %v951_v22  ;;  %2066 = vmatmul.mubr.bf16.gmra.mrb[4].mxu1 %v2702_v50  ;;  %v1401_v22 = vshrl.u32 %v2737_v63, 16  ;;  %v2388_v23 = vld [vmem:[%s2973_s1 + $0x90] sm:$0xff]  }
  0x32   : > { %2085 = vmatprep.mubr.bf16.mxu1 %v1813_v32 }
  0x33   : > { %2076 = vmatpush3.bf16.msra.mxu1 %v2372_v35  ;;  %v1859_v35 = vcombine.low %v294_v6, %v308_v29  ;;  %v956_v44 = vrot.slane %v955_v40, 4  ;;  %v1900_v6 = vrot.slane %v2737_v63, 9  ;;  %v2785_v29 = vsel %vm2669_vm5, %v1831_v62, %v642_v4  ;;  %v2400_v62 = vld [vmem:[%s2973_s1 + $0xb8] sm:$0xff]  }
  0x34   : > { %2077 = vmatprep.subr.bf16.mxu1 %v2374_v55  ;;  %2172 = vmatpush3.bf16.msra.mxu0 %v2373_v54  ;;  %v2380_v54 = vld [vmem:[%s2973_s1 + $0x38] sm:$0xff]   ;;  %v1871_v40 = vcombine.low %v2757_v1, %v2761_v42  ;;  %v1403_v32 = vrot.slane %v1401_v22, 4  ;;  %v2855_v4 = vcombine.low %v2697_v48, %v2757_v1  ;;  %v2406_v48 = vld [vmem:[%s2973_s1 + $0xd0] sm:$0xff]   ;;  %v2410_v22 = vld [vmem:[%s2973_s1 + $0xe0] sm:$0xff]  }
  0x35   : > { %2161 = vmatprep.mubr.bf16.mxu0 %v1859_v35  ;;  %2173 = vmatprep.subr.bf16.mxu0 %v2375_v16  ;;  %v2709_v31 = vsel %vm2556_vm2, %v956_v44, %v960_v41  ;;  %v2772_v18 = vsel %vm2669_vm5, %v1900_v6, %v1557_v9  ;;  %v1832_v41 = vrot.slane %v2637_v53, 9  ;;  %v619_v44 = vsel %vm2669_vm5, %v1825_v56, %v618_v26  ;;  %v2404_v6 = vld [vmem:[%s2973_s1 + $0xc8] sm:$0xff]  }
  0x36   : > { %v1860_v19 = vcombine.low %v322_v43, %v2709_v31  ;;  %v646_v43 = vrot.slane %v2646_v58, 5  ;;  %v1833_v58 = vcombine.low %v619_v44, %v2691_v45  ;;  %v2405_v9 = vld [vmem:[%s2973_s1 + $0x1c8] sm:$0xff]  }
  0x37   : > { %2078 = vmatpush3.bf16.msra.mxu1 %v2374_v55  ;;  %v2379_v55 = vld [vmem:[%s2973_s1 + $0x170] sm:$0xff]  }
  0x38   : > { %2079 = vmatprep.subr.bf16.mxu1 %v2376_v28  ;;  %2174 = vmatpush3.bf16.msra.mxu0 %v2375_v16  ;;  %v2768_v16 = vsel %vm2669_vm5, %v1869_v11, %v1111_v2  ;;  %v2398_v11 = vld [vmem:[%s2973_s1 + $0x1b0] sm:$0xff]   ;;  %v2402_v2 = vld [vmem:[%s2973_s1 + $0xc0] sm:$0xff]  }
  0x39   : > { %2175 = vmatprep.subr.bf16.mxu0 %v2377_v15  ;;  %2162 = vmatmul.mubr.bf16.gmra.mrb[4].mxu0 %v1860_v19  ;;  %v1901_v35 = vcombine.low %v2768_v16, %v2772_v18 }
  0x3a   : > { %2181 = vmatprep.mubr.bf16.mxu0 %v1870_v20  ;;  %v1410_v20 = vshll.u32 %v191_v5, 16 }
  0x3b   : > { %2080 = vmatpush3.bf16.msra.mxu1 %v2376_v28  ;;  %v2781_v28 = vsel %vm2669_vm5, %v1830_v60, %v638_v61  ;;  %v2397_v60 = vld [vmem:[%s2973_s1 + $0xb0] sm:$0xff]   ;;  %v2395_v61 = vld [vmem:[%s2973_s1 + $0x1a8] sm:$0xff]  }
  0x3c   : > { %2081 = vmatprep.subr.bf16.mxu1 %v2378_v49  ;;  %2176 = vmatpush3.bf16.msra.mxu0 %v2377_v15  ;;  %v2387_v15 = vld [vmem:[%s2973_s1 + $0x188] sm:$0xff]   ;;  %v1872_v19 = vcombine.low %v2781_v28, %v2785_v29  ;;  %v1412_v26 = vrot.slane %v1410_v20, 5  ;;  %v2859_v5 = vcombine.low %v2761_v42, %v2781_v28  ;;  %v2408_v42 = vld [vmem:[%s2973_s1 + $0xd8] sm:$0xff]  }
  0x3d   : > { %2177 = vmatprep.subr.bf16.mxu0 %v2379_v55  ;;  %v2417_v28 = vld [vmem:[%s2973_s1 + $0xf8] sm:$0xff]  }
  0x3f   : > { %2082 = vmatpush3.bf16.msra.mxu1 %v2378_v49  ;;  %v1406_v49 = vrot.slane %v1404_v36, 5  ;;  %v2418_v36 = vld [vmem:[%s2973_s1 + $0x1f8] sm:$0xff]  }
  0x40   : > { %2083 = vmatprep.subr.bf16.mxu1 %v2380_v54  ;;  %2178 = vmatpush3.bf16.msra.mxu0 %v2379_v55  ;;  %v647_v55 = vsel %vm2669_vm5, %v1832_v41, %v646_v43  ;;  %v2425_v41 = vld [vmem:[%s2973_s1 + $0x210] sm:$0xff]  }
  0x41   : > { %2179 = vmatprep.subr.bf16.mxu0 %v2381_v57  ;;  %v1407_v51 = vor.u32 %v1406_v49, %v1403_v32  ;;  %v1873_v56 = vcombine.low %v647_v55, %v2768_v16  ;;  %v2876_v1 = vcombine.low %v2785_v29, %v647_v55  ;;  %v2421_v29 = vld [vmem:[%s2973_s1 + $0x200] sm:$0xff]  }
  0x43   : > { %2084 = vmatpush3.bf16.msra.mxu1 %v2380_v54  ;;  %v2390_v54 = vld [vmem:[%s2973_s1 + $0x98] sm:$0xff]   ;;  %v1408_v12 = vrot.slane %v1407_v51, 4 }
  0x44   : > { %2093 = vmatprep.subr.bf16.mxu1 %v2383_v59  ;;  %2180 = vmatpush3.bf16.msra.mxu0 %v2381_v57 }
  0x45   : > { %2189 = vmatprep.subr.bf16.mxu0 %v2384_v14  ;;  %v1413_v45 = vsel %vm2556_vm2, %v1408_v12, %v1412_v26 }
  0x46   : > { %2086 = vmatmul.mubr.bf16.vlgmr.msra.gmra.mrb[0].mxu1 %v2743_v3  ;;  %v2820_v57 = vcombine.low %v2709_v31, %v1413_v45  ;;  %v2393_v31 = vld [vmem:[%s2973_s1 + $0x1a0] sm:$0xff]  }
  0x47   : > { %2094 = vmatpush3.bf16.msra.mxu1 %v2383_v59  ;;  %2089 = vmatprep.mubr.bf16.mxu1 %v2753_v8  ;;  %v2391_v59 = vld [vmem:[%s2973_s1 + $0x198] sm:$0xff]  }
  0x48   : > { %2095 = vmatprep.subr.bf16.mxu1 %v2386_v27  ;;  %2182 = vmatmul.mubr.bf16.vlgmr.msra.gmra.mrb[0].mxu0 %v1871_v40  ;;  %v2422_v40 = vld [vmem:[%s2973_s1 + $0x208] sm:$0xff]  }
  0x49   : > { %2190 = vmatpush3.bf16.msra.mxu0 %v2384_v14  ;;  %2185 = vmatprep.mubr.bf16.mxu0 %v1872_v19  ;;  %v2407_v14 = vld [vmem:[%s2973_s1 + $0x1d0] sm:$0xff]  }
  0x4a   : > { %2191 = vmatprep.subr.bf16.mxu0 %v2387_v15 }
  0x4b   : > { %2096 = vmatpush3.bf16.msra.mxu1 %v2386_v27  ;;  %v2403_v27 = vld [vmem:[%s2973_s1 + $0x1c0] sm:$0xff]  }
  0x4c   : > { %2097 = vmatprep.subr.bf16.mxu1 %v2388_v23 }
  0x4d   : > { %2192 = vmatpush3.bf16.msra.mxu0 %v2387_v15 }
  0x4e   : > { %2090 = vmatmul.mubr.bf16.gmra.mrb[4].mxu1 %v2804_v46  ;;  %2193 = vmatprep.subr.bf16.mxu0 %v2389_v34 }
  0x4f   : > { %2098 = vmatpush3.bf16.msra.mxu1 %v2388_v23  ;;  %2109 = vmatprep.mubr.bf16.mxu1 %v1833_v58  ;;  %v2409_v23 = vld [vmem:[%s2973_s1 + $0x1d8] sm:$0xff]  }
  0x50   : > { %2099 = vmatprep.subr.bf16.mxu1 %v2390_v54  ;;  %2186 = vmatmul.mubr.bf16.gmra.mrb[4].mxu0 %v1873_v56 }
  0x51   : > { %2194 = vmatpush3.bf16.msra.mxu0 %v2389_v34  ;;  %2205 = vmatprep.mubr.bf16.mxu0 %v2743_v3  ;;  %v2401_v3 = vld [vmem:[%s2973_s1 + $0x1b8] sm:$0xff]  }
  0x52   : > { %2195 = vmatprep.subr.bf16.mxu0 %v2391_v59 }
  0x53   : > { %2100 = vmatpush3.bf16.msra.mxu1 %v2390_v54 }
  0x54   : > { %2101 = vmatprep.subr.bf16.mxu1 %v2392_v24 }
  0x55   : > { %2196 = vmatpush3.bf16.msra.mxu0 %v2391_v59 }
  0x56   : > { %2197 = vmatprep.subr.bf16.mxu0 %v2393_v31 }
  0x57   : > { %2102 = vmatpush3.bf16.msra.mxu1 %v2392_v24 }
  0x58   : > { %2103 = vmatprep.subr.bf16.mxu1 %v2394_v39 }
  0x59   : > { %2198 = vmatpush3.bf16.msra.mxu0 %v2393_v31 }
  0x5a   : > { %2199 = vmatprep.subr.bf16.mxu0 %v2395_v61 }
  0x5b   : > { %2104 = vmatpush3.bf16.msra.mxu1 %v2394_v39 }
  0x5c   : > { %2105 = vmatprep.subr.bf16.mxu1 %v2397_v60 }
  0x5d   : > { %2200 = vmatpush3.bf16.msra.mxu0 %v2395_v61 }
  0x5e   : > { %2201 = vmatprep.subr.bf16.mxu0 %v2398_v11 }
  0x5f   : > { %2106 = vmatpush3.bf16.msra.mxu1 %v2397_v60 }
  0x60   : > { %2107 = vmatprep.subr.bf16.mxu1 %v2400_v62 }
  0x61   : > { %2202 = vmatpush3.bf16.msra.mxu0 %v2398_v11 }
  0x62   : > { %2203 = vmatprep.subr.bf16.mxu0 %v2401_v3 }
  0x63   : > { %2108 = vmatpush3.bf16.msra.mxu1 %v2400_v62 }
  0x64   : > { %2117 = vmatprep.subr.bf16.mxu1 %v2402_v2 }
  0x65   : > { %2204 = vmatpush3.bf16.msra.mxu0 %v2401_v3 }
  0x66   : > { %2110 = vmatmul.mubr.bf16.vlgmr.msra.gmra.mrb[0].mxu1 %v2855_v4  ;;  %2213 = vmatprep.subr.bf16.mxu0 %v2403_v27 }
  0x67   : > { %2118 = vmatpush3.bf16.msra.mxu1 %v2402_v2  ;;  %2113 = vmatprep.mubr.bf16.mxu1 %v2859_v5 }
  0x68   : > { %2119 = vmatprep.subr.bf16.mxu1 %v2404_v6  ;;  %2206 = vmatmul.mubr.bf16.vlgmr.msra.gmra.mrb[0].mxu0 %v2753_v8  ;;  %v1882_v8 = vcombine.low %v2652_v0, %v2737_v63  ;;  %v2413_v63 = vld [vmem:[%s2973_s1 + $0x1e8] sm:$0xff]  }
  0x69   : > { %2214 = vmatpush3.bf16.msra.mxu0 %v2403_v27  ;;  %2209 = vmatprep.mubr.bf16.mxu0 %v2804_v46 }
  0x6a   : > { %2215 = vmatprep.subr.bf16.mxu0 %v2405_v9 }
  0x6b   : > { %2120 = vmatpush3.bf16.msra.mxu1 %v2404_v6 }
  0x6c   : > { %2121 = vmatprep.subr.bf16.mxu1 %v2406_v48 }
  0x6d   : > { %2216 = vmatpush3.bf16.msra.mxu0 %v2405_v9 }
  0x6e   : > { %2114 = vmatmul.mubr.bf16.gmra.mrb[4].mxu1 %v2876_v1  ;;  %2217 = vmatprep.subr.bf16.mxu0 %v2407_v14 }
  0x6f   : > { %2122 = vmatpush3.bf16.msra.mxu1 %v2406_v48  ;;  %2133 = vmatprep.mubr.bf16.mxu1 %v1845_v37  ;;  %v2414_v37 = vld [vmem:[%s2973_s1 + $0xf0] sm:$0xff]  }
  0x70   : > { %2123 = vmatprep.subr.bf16.mxu1 %v2408_v42  ;;  %2210 = vmatmul.mubr.bf16.gmra.mrb[4].mxu0 %v1882_v8 }
  0x71   : > { %2218 = vmatpush3.bf16.msra.mxu0 %v2407_v14  ;;  %2229 = vmatprep.mubr.bf16.mxu0 %v2592_v10  ;;  %v2416_v10 = vld [vmem:[%s2973_s1 + $0x1f0] sm:$0xff]  }
  0x72   : > { %2219 = vmatprep.subr.bf16.mxu0 %v2409_v23 }
  0x73   : > { %2124 = vmatpush3.bf16.msra.mxu1 %v2408_v42 }
  0x74   : > { %2125 = vmatprep.subr.bf16.mxu1 %v2410_v22 }
  0x75   : > { %2220 = vmatpush3.bf16.msra.mxu0 %v2409_v23 }
  0x76   : > { %2221 = vmatprep.subr.bf16.mxu0 %v2411_v30 }
  0x77   : > { %2126 = vmatpush3.bf16.msra.mxu1 %v2410_v22 }
  0x78   : > { %2127 = vmatprep.subr.bf16.mxu1 %v2412_v13 }
  0x79   : > { %2222 = vmatpush3.bf16.msra.mxu0 %v2411_v30 }
  0x7a   : > { %2223 = vmatprep.subr.bf16.mxu0 %v2413_v63 }
  0x7b   : > { %2128 = vmatpush3.bf16.msra.mxu1 %v2412_v13 }
  0x7c   : > { %2129 = vmatprep.subr.bf16.mxu1 %v2414_v37 }
  0x7d   : > { %2224 = vmatpush3.bf16.msra.mxu0 %v2413_v63 }
  0x7e   : > { %2225 = vmatprep.subr.bf16.mxu0 %v2416_v10 }
  0x7f   : > { %2130 = vmatpush3.bf16.msra.mxu1 %v2414_v37 }
  0x80   : > { %2131 = vmatprep.subr.bf16.mxu1 %v2417_v28 }
  0x81   : > { %2226 = vmatpush3.bf16.msra.mxu0 %v2416_v10 }
  0x82   : > { %2227 = vmatprep.subr.bf16.mxu0 %v2418_v36 }
  0x83   : > { %2132 = vmatpush3.bf16.msra.mxu1 %v2417_v28 }
  0x84   : > { %2261 = vmatprep.subr.bf16.mxu1 %v2421_v29 }
  0x85   : > { %2228 = vmatpush3.bf16.msra.mxu0 %v2418_v36 }
  0x86   : > { %2134 = vmatmul.mubr.bf16.vlgmr.msra.gmra.mrb[0].mxu1 %v1846_v7  ;;  %2237 = vmatprep.subr.bf16.mxu0 %v2421_v29  ;;  %v2428_v7 = vld [vmem:[%s2973_s1 + $0x228] sm:$0xff]  }
  0x87   : > { %2269 = vmatpush3.bf16.msra.mxu1 %v2421_v29  ;;  %2137 = vmatprep.mubr.bf16.mxu1 %v1847_v47 }
  0x88   : > { %2262 = vmatprep.subr.bf16.mxu1 %v2422_v40  ;;  %2230 = vmatmul.mubr.bf16.vlgmr.msra.gmra.mrb[0].mxu0 %v2665_v17 }
  0x89   : > { %2238 = vmatpush3.bf16.msra.mxu0 %v2421_v29  ;;  %2233 = vmatprep.mubr.bf16.mxu0 %v2702_v50 }
  0x8a   : > { %2239 = vmatprep.subr.bf16.mxu0 %v2422_v40 }
  0x8b   : > { %2270 = vmatpush3.bf16.msra.mxu1 %v2422_v40 }
  0x8c   : > { %2263 = vmatprep.subr.bf16.mxu1 %v2425_v41 }
  0x8d   : > { %2240 = vmatpush3.bf16.msra.mxu0 %v2422_v40 }
  0x8e   : > { %2138 = vmatmul.mubr.bf16.gmra.mrb[4].mxu1 %v1848_v21  ;;  %2241 = vmatprep.subr.bf16.mxu0 %v2425_v41 }
  0x8f   : > { %2271 = vmatpush3.bf16.msra.mxu1 %v2425_v41  ;;  %2257 = vmatprep.mubr.bf16.mxu1 %v2876_v1 }
  0x90   : > { %2264 = vmatprep.subr.bf16.mxu1 %v2426_v33  ;;  %2234 = vmatmul.mubr.bf16.gmra.mrb[4].mxu0 %v2820_v57 }
  0x91   : > { %2242 = vmatpush3.bf16.msra.mxu0 %v2425_v41  ;;  %2253 = vmatprep.mubr.bf16.mxu0 %v2855_v4 }
  0x92   : > { %2243 = vmatprep.subr.bf16.mxu0 %v2426_v33 }
  0x93   : > { %2272 = vmatpush3.bf16.msra.mxu1 %v2426_v33 }
  0x94   : > { %2265 = vmatprep.subr.bf16.mxu1 %v2427_v52 }
  0x95   : > { %2244 = vmatpush3.bf16.msra.mxu0 %v2426_v33 }
  0x96   : > { %2245 = vmatprep.subr.bf16.mxu0 %v2427_v52 }
  0x97   : > { %2273 = vmatpush3.bf16.msra.mxu1 %v2427_v52 }
  0x98   : > { %2266 = vmatprep.subr.bf16.mxu1 %v2428_v7 }
  0x99   : > { %2246 = vmatpush3.bf16.msra.mxu0 %v2427_v52 }
  0x9a   : > { %2247 = vmatprep.subr.bf16.mxu0 %v2428_v7 }
  0x9b   : > { %2274 = vmatpush3.bf16.msra.mxu1 %v2428_v7 }
  0x9c   : > { %2267 = vmatprep.subr.bf16.mxu1 %v2429_v25 }
  0x9d   : > { %2248 = vmatpush3.bf16.msra.mxu0 %v2428_v7 }
  0x9e   : > { %2249 = vmatprep.subr.bf16.mxu0 %v2429_v25 }
  0x9f   : > { %2275 = vmatpush3.bf16.msra.mxu1 %v2429_v25 }
  0xa0   : > { %2268 = vmatprep.subr.bf16.mxu1 %v2430_v38 }
  0xa1   : > { %2250 = vmatpush3.bf16.msra.mxu0 %v2429_v25 }
  0xa2   : > { %2251 = vmatprep.subr.bf16.mxu0 %v2430_v38 }
  0xa3   : > { %2276 = vmatpush3.bf16.msra.mxu1 %v2430_v38 }
  0xa5   : > { %2252 = vmatpush3.bf16.msra.mxu0 %v2430_v38 }
  0xa6   : > { %2258 = vmatmul.mubr.bf16.vlgmr.msra.gmra.mrb[8].mxu1 %v1901_v35  ;;  %v1910_v35 = vld [vmem:[%s2974_s2] ss:$0 sm:$0xff] }
  0xa8   : > { %2254 = vmatmul.mubr.bf16.vlgmr.msra.gmra.mrb[0].mxu0 %v2859_v5 }
 0x159   : > { %v2135_v47 = vpop.f32.mrb[0].mxu1 }
 0x15a   : > { %v909_v53 = vpop.f32.mrb[1].mxu1 }
 0x15b   : > { %v2136_v0 = vpop.f32.mrb[2].mxu1 }
 0x15c   : > { %v912_v17 = vpop.f32.mrb[3].mxu1 }
 0x161   : > { %v2139_v21 = vpop.f32.mrb[4].mxu1 }
 0x162   : > { %v925_v50 = vpop.f32.mrb[5].mxu1 }
 0x163   : > { %v2140_v32 = vpop.f32.mrb[6].mxu1  ;;  %v2235_v44 = vpop.f32.mrb[4].mxu0 }
 0x164   : > { %v928_v43 = vpop.f32.mrb[7].mxu1  ;;  %v2281_v49 = vadd.f32 %v2235_v44, %v2139_v21  ;;  %v1531_v15 = vpop.f32.mrb[5].mxu0 }
 0x165   : > { %v2283_v19 = vadd.f32 %v1531_v15, %v925_v50  ;;  %v2236_v20 = vpop.f32.mrb[6].mxu0 }
 0x166   : > { %v2285_v46 = vadd.f32 %v2236_v20, %v2140_v32  ;;  %v1534_v16 = vpop.f32.mrb[7].mxu0 }
 0x167   : > { %v2287_v18 = vadd.f32 %v1534_v16, %v928_v43 }
 0x179   : > { %v2259_v51 = vpop.f32.mrb[8].mxu1 }
 0x17a   : > { %v2282_v58 = vadd.f32 %v2281_v49, %v2259_v51  ;;  %v1676_v26 = vpop.f32.mrb[9].mxu1 }
 0x17b   : > { %v2284_v54 = vadd.f32 %v2283_v19, %v1676_v26  ;;  %v2260_v55 = vpop.f32.mrb[10].mxu1  ;;  %v2255_v24 = vpop.f32.mrb[0].mxu0 }
 0x17c   : > { %v1712_v12 = vadd.f32 %v2282_v58, %v1910_v35  ;;  %v2286_v34 = vadd.f32 %v2285_v46, %v2260_v55  ;;  %v1679_v45 = vpop.f32.mrb[11].mxu1  ;;  %v2277_v39 = vadd.f32 %v2255_v24, %v2135_v47  ;;  %v1660_v31 = vpop.f32.mrb[1].mxu0 }
 0x17d   : > { %v1710_v56 = vadd.f32 %v2284_v54, %v1910_v35  ;;  %v2288_v57 = vadd.f32 %v2287_v18, %v1679_v45  ;;  %v2278_v62 = vadd.f32 %v1660_v31, %v909_v53  ;;  %v2256_v11 = vpop.f32.mrb[2].mxu0 }
 0x17e   : > { %v1713_v59 = vadd.f32 %v2286_v34, %v1910_v35  ;;  %v1720_v61 = vmax.f32 %v1712_v12, 0.0  ;;  %v1708_v3 = vadd.f32 %v2277_v39, %v1910_v35  ;;  %v2279_v5 = vadd.f32 %v2256_v11, %v2136_v0  ;;  %v1663_v6 = vpop.f32.mrb[3].mxu0 }
 0x17f   : > { %v1711_v60 = vadd.f32 %v2288_v57, %v1910_v35  ;;  %v1718_v4 = vmax.f32 %v1710_v56, 0.0  ;;  %v1706_v48 = vadd.f32 %v2278_v62, %v1910_v35  ;;  %v2280_v1 = vadd.f32 %v1663_v6, %v912_v17 }
 0x180   : > { %v1721_v2 = vmax.f32 %v1713_v59, 0.0  ;;  %v1709_v42 = vadd.f32 %v2279_v5, %v1910_v35  ;;  %v1716_v22 = vmax.f32 %v1708_v3, 0.0 }
 0x181   : > { %v1719_v27 = vmax.f32 %v1711_v60, 0.0  ;;  %v1707_v8 = vadd.f32 %v2280_v1, %v1910_v35  ;;  %v1714_v13 = vmax.f32 %v1706_v48, 0.0 }
 0x182   : > { %v1932_v9 = vpack.c.bf16 %v1721_v2, %v1720_v61  ;;  %v1717_v23 = vmax.f32 %v1709_v42, 0.0 }
 0x183   : > { %v1927_v14 = vpack.c.bf16 %v1719_v27, %v1718_v4  ;;  %v1715_v30 = vmax.f32 %v1707_v8, 0.0 }
 0x184   : > { %1936 = vst [vmem:[%s170_s18 + $0x18] sm:$0xff] %v1932_v9   ;;  %v1922_v37 = vpack.c.bf16 %v1717_v23, %v1716_v22 }
 0x185   : > { %1935 = vst [vmem:[%s170_s18 + $0x10] sm:$0xff] %v1927_v14   ;;  %v1917_v63 = vpack.c.bf16 %v1715_v30, %v1714_v13 }
 0x186   : > { %1934 = vst [vmem:[%s170_s18 + $0x8] sm:$0xff] %v1922_v37  }
 0x187   : > { %1918 = vst [vmem:[%s170_s18] sm:$0xff] %v1917_v63  }
 0x188 PF: > { %s13_s12 = sadd.s32 1, %s2437_s12  }
 0x189   : > { %p10_p4 = scmp.ge.s32.totalorder %s13_s12, 4  }
 0x18b   :  { %12 = sbr.rel (!%p10_p4) target bundleno = 1 (0x1), region = 62 }

// kernel: fcn_wrapper_forward.5
= control target key start
LH: loop header
LB: loop body
LE: loop exit
PB: predicated region body
PF: predicated region fallthrough
CT: control target
= control target key end

     0   :  { %s3085_s18 = smov 0   ;;  %s3718_s0 = inlined_call_operand.vmem [shape: bf16[2,10,10,128], index: 0, kind: input, shape index: {}]   ;;  %s3719_s1 = inlined_call_operand.vmem [shape: bf16[1152,128], index: 1, kind: input, shape index: {}]   ;;  %s3720_s2 = inlined_call_operand.vmem [shape: f32[1,128], index: 2, kind: input, shape index: {}]   ;;  %s3721_s3 = inlined_call_operand.vmem [shape: bf16[128,128], index: 3, kind: input, shape index: {}]   ;;  %s3722_s4 = inlined_call_operand.vmem [shape: f32[1,128], index: 4, kind: input, shape index: {}]   ;;  %s3723_s5 = inlined_call_operand.vmem [shape: f32[2,16,16,128], index: 5, kind: output, shape index: {}]  }
   0x1 LB: > { %s2365_s19 = sadd.s32 4294967295, %s3053_s18   ;;  %p2369_p0 = scmp.ge.s32.totalorder %s3053_s18, 1  ;;  %s3053_s18 = sphi %s3085_s18, %s15_s18  }
   0x2   : > { %p187_p1 = scmp.lt.s32.totalorder %s3053_s18, 3 }
   0x4   : > { %p188_p2 = pnand %p2369_p0, %p187_p1 }
   0x5   : > { %v2958_v0 = vld [vmem:[%s3719_s1 + $0x40] sm:$0xff] (!%p188_p2)   ;;  %p215_p3 = scmp.lt.s32.totalorder (!%p188_p2), %s2365_s19, 1  ;;  %v2960_v2 = vld [vmem:[%s3719_s1 + $0x48] sm:$0xff] (!%p188_p2)   ;;  %v2962_v4 = vld [vmem:[%s3719_s1 + $0x50] sm:$0xff] (!%p188_p2)   ;;  %vm262_vm0 = vsmask.f32 (!%p188_p2), 3328 }
   0x6   : > { %191 = sbr.rel (%p188_p2) target bundleno = 673 (0x2a1), region = 40  ;;  %v2959_v1 = vld [vmem:[%s3719_s1 + $0x100] sm:$0xff] (!%p188_p2)   ;;  %2645 = vmatprep.subr.bf16.mxu1 (!%p188_p2), %v2958_v0  ;;  %v2961_v3 = vld [vmem:[%s3719_s1 + $0x108] sm:$0xff] (!%p188_p2)   ;;  %v2963_v5 = vld [vmem:[%s3719_s1 + $0x110] sm:$0xff] (!%p188_p2)   ;;  %vm263_vm1 = vsmask.f32 (!%p188_p2), 7440 }
   0x7   : > { %2741 = vmatprep.subr.bf16.mxu0 (!%p188_p2), %v2959_v1  ;;  %2646 = vmatpush3.bf16.msra.mxu1 (!%p188_p2), %v2958_v0  ;;  %v2964_v6 = vld [vmem:[%s3719_s1 + $0x58] sm:$0xff] (!%p188_p2)   ;;  %v2966_v8 = vld [vmem:[%s3719_s1 + $0x60] sm:$0xff] (!%p188_p2)   ;;  %v2968_v10 = vld [vmem:[%s3719_s1 + $0x68] sm:$0xff] (!%p188_p2)   ;;  %vm667_vm3 = vcmask (!%p188_p2), 1042432   ;;  %vm668_vm4 = vcmask (!%p188_p2), 1046532  }
   0x8   : > { %2742 = vmatpush3.bf16.msra.mxu0 (!%p188_p2), %v2959_v1  ;;  %2647 = vmatprep.subr.bf16.mxu1 (!%p188_p2), %v2960_v2  ;;  %v2965_v7 = vld [vmem:[%s3719_s1 + $0x118] sm:$0xff] (!%p188_p2)   ;;  %v2967_v9 = vld [vmem:[%s3719_s1 + $0x120] sm:$0xff] (!%p188_p2)   ;;  %v2969_v14 = vld [vmem:[%s3719_s1 + $0x128] sm:$0xff] (!%p188_p2)  }
   0x9   : > { %2743 = vmatprep.subr.bf16.mxu0 (!%p188_p2), %v2961_v3  ;;  %v2970_v22 = vld [vmem:[%s3719_s1 + $0x70] sm:$0xff] (!%p188_p2)   ;;  %v2972_v38 = vld [vmem:[%s3719_s1 + $0x78] sm:$0xff] (!%p188_p2)   ;;  %vm3182_vm2 = vmor (!%p188_p2), %vm262_vm0, %vm263_vm1 }
   0xa   : > { %v2971_v23 = vld [vmem:[%s3719_s1 + $0x130] sm:$0xff] (!%p188_p2)   ;;  %v2973_v48 = vld [vmem:[%s3719_s1 + $0x138] sm:$0xff] (!%p188_p2)   ;;  %v2974_v62 = vld [vmem:[%s3719_s1] sm:$0xff] (!%p188_p2)  }
   0xb   : > { %2648 = vmatpush3.bf16.msra.mxu1 (!%p188_p2), %v2960_v2  ;;  %vm3295_vm5 = vmor (!%p188_p2), %vm667_vm3, %vm668_vm4  ;;  %v3035_v39 = vld [vmem:[%s3719_s1 + $0x220] sm:$0xff] (!%p188_p2)  }
   0xc   : > { %2744 = vmatpush3.bf16.msra.mxu0 (!%p188_p2), %v2961_v3  ;;  %2649 = vmatprep.subr.bf16.mxu1 (!%p188_p2), %v2962_v4  ;;  %v2975_v3 = vld [vmem:[%s3719_s1 + $0x140] sm:$0xff] (!%p188_p2)  }
   0xd   : > { %s3729_s19 = smov (!%p215_p3, %s2365_s19), 1  ;;  %2745 = vmatprep.subr.bf16.mxu0 %v2963_v5 }
   0xe   : > { %s2949_s11 = smul.u32 80, %s3729_s19  ;;  %s2524_s30 = sshll.u32 %s3729_s19, 8 }
   0xf   : > { %2650 = vmatpush3.bf16.msra.mxu1 %v2962_v4  ;;  %s3647_s7 = scalar_lea.vmem %s3723_s5, %s2524_s30 }
  0x10   : > { %2746 = vmatpush3.bf16.msra.mxu0 %v2963_v5  ;;  %2651 = vmatprep.subr.bf16.mxu1 %v2964_v6  ;;  %s3129_s20 = scalar_lea.vmem %s3718_s0, %s2949_s11 }
  0x11   : > { %2747 = vmatprep.subr.bf16.mxu0 %v2965_v7  ;;  %v3135_v11 = vld [vmem:[%s3129_s20] sm:$0xf]  ;;  %v3138_v12 = vld [vmem:[%s3129_s20 + $0x4] sm:$0x1]  ;;  %v3141_v13 = vld [vmem:[%s3129_s20 + $0x8] sm:$0xf] }
  0x12   : > { %v3147_v15 = vld [vmem:[%s3129_s20 + $0xc] sm:$0x1]  ;;  %v266_v16 = vshrl.u32 %v3135_v11, 16  ;;  %v269_v17 = vshll.u32 %v3135_v11, 16  ;;  %v275_v18 = vshll.u32 %v3138_v12, 16  ;;  %v280_v19 = vshrl.u32 %v3141_v13, 16 }
  0x13   : > { %2652 = vmatpush3.bf16.msra.mxu1 %v2964_v6  ;;  %v283_v20 = vshll.u32 %v3141_v13, 16  ;;  %v289_v21 = vshll.u32 %v3147_v15, 16  ;;  %v3162_v30 = vld [vmem:[%s3129_s20 + $0x10] sm:$0xf]  ;;  %v3165_v31 = vld [vmem:[%s3129_s20 + $0x14] sm:$0x1] }
  0x14   : > { %2748 = vmatpush3.bf16.msra.mxu0 %v2965_v7  ;;  %2653 = vmatprep.subr.bf16.mxu1 %v2966_v8  ;;  %v268_v24 = vrot.slane %v266_v16, 4  ;;  %v271_v25 = vrot.slane %v269_v17, 5  ;;  %v277_v26 = vrot.slane %v275_v18, 5  ;;  %v282_v27 = vrot.slane %v280_v19, 4  ;;  %v3168_v33 = vld [vmem:[%s3129_s20 + $0x18] sm:$0xf] }
  0x15   : > { %2749 = vmatprep.subr.bf16.mxu0 %v2967_v9  ;;  %v285_v28 = vrot.slane %v283_v20, 5  ;;  %v291_v29 = vrot.slane %v289_v21, 5  ;;  %v3171_v34 = vld [vmem:[%s3129_s20 + $0x1c] sm:$0x1]  ;;  %v294_v35 = vshrl.u32 %v3162_v30, 16  ;;  %v297_v36 = vshll.u32 %v3162_v30, 16 }
  0x16   : > { %v272_v32 = vor.u32 %v271_v25, %v268_v24  ;;  %v2417_v37 = vcombine.low %v3141_v13, %v3162_v30  ;;  %v303_v41 = vshll.u32 %v3165_v31, 16  ;;  %v308_v42 = vshrl.u32 %v3168_v33, 16  ;;  %v3194_v52 = vld [vmem:[%s3129_s20 + $0x20] sm:$0xf]  ;;  %v3199_v56 = vld [vmem:[%s3129_s20 + $0x24] sm:$0x1] }
  0x17   : > { %2654 = vmatpush3.bf16.msra.mxu1 %v2966_v8  ;;  %v286_v40 = vor.u32 %v285_v28, %v282_v27  ;;  %v311_v43 = vshll.u32 %v3168_v33, 16  ;;  %v296_v45 = vrot.slane %v294_v35, 4  ;;  %v299_v46 = vrot.slane %v297_v36, 5  ;;  %v2976_v17 = vld [vmem:[%s3719_s1 + $0x8] sm:$0xff]   ;;  %v2980_v35 = vld [vmem:[%s3719_s1 + $0x18] sm:$0xff]  }
  0x18   : > { %2750 = vmatpush3.bf16.msra.mxu0 %v2967_v9  ;;  %2655 = vmatprep.subr.bf16.mxu1 %v2968_v10  ;;  %v273_v44 = vrot.slane %v272_v32, 4  ;;  %v317_v47 = vshll.u32 %v3171_v34, 16  ;;  %v310_v50 = vrot.slane %v308_v42, 4  ;;  %v305_v55 = vrot.slane %v303_v41, 5  ;;  %v2977_v24 = vld [vmem:[%s3719_s1 + $0x148] sm:$0xff]   ;;  %v2979_v32 = vld [vmem:[%s3719_s1 + $0x150] sm:$0xff]  }
  0x19   : > { %2751 = vmatprep.subr.bf16.mxu0 %v2969_v14  ;;  %v287_v49 = vrot.slane %v286_v40, 4  ;;  %v313_v51 = vrot.slane %v311_v43, 5  ;;  %v300_v54 = vor.u32 %v299_v46, %v296_v45  ;;  %v322_v60 = vshrl.u32 %v3194_v52, 16  ;;  %v3235_v25 = vld [vmem:[%s3129_s20 + $0x28] sm:$0xf] }
  0x1a   : > { %v278_v53 = vsel %vm3182_vm2, %v273_v44, %v277_v26  ;;  %v319_v59 = vrot.slane %v317_v47, 5  ;;  %v325_v0 = vshll.u32 %v3194_v52, 16  ;;  %v331_v1 = vshll.u32 %v3199_v56, 16  ;;  %v3239_v27 = vld [vmem:[%s3129_s20 + $0x2c] sm:$0x1] }
  0x1b   : > { %2656 = vmatpush3.bf16.msra.mxu1 %v2968_v10  ;;  %v292_v57 = vsel %vm3182_vm2, %v287_v49, %v291_v29  ;;  %v314_v58 = vor.u32 %v313_v51, %v310_v50  ;;  %v301_v63 = vrot.slane %v300_v54, 4  ;;  %v324_v4 = vrot.slane %v322_v60, 4  ;;  %v3254_v42 = vld [vmem:[%s3129_s20 + $0x34] sm:$0x1]  ;;  %v2981_v54 = vld [vmem:[%s3719_s1 + $0x158] sm:$0xff]  }
  0x1c   : > { %2752 = vmatpush3.bf16.msra.mxu0 %v2969_v14  ;;  %2657 = vmatprep.subr.bf16.mxu1 %v2970_v22  ;;  %v2373_v61 = vcombine.low %v278_v53, %v292_v57  ;;  %v327_v6 = vrot.slane %v325_v0, 5  ;;  %v2418_v7 = vcombine.low %v3168_v33, %v3194_v52  ;;  %v333_v16 = vrot.slane %v331_v1, 5  ;;  %v3263_v53 = vld [vmem:[%s3129_s20 + $0x38] sm:$0xf]  ;;  %v3278_v0 = vld [vmem:[%s3129_s20 + $0x40] sm:$0xf] }
  0x1d   : > { %2753 = vmatprep.subr.bf16.mxu0 %v2971_v23  ;;  %v315_v2 = vrot.slane %v314_v58, 4  ;;  %v306_v5 = vsel %vm3182_vm2, %v301_v63, %v305_v55  ;;  %v676_v19 = vrot.slane %v3147_v15, 5  ;;  %v680_v20 = vrot.slane %v3165_v31, 5  ;;  %v2982_v55 = vld [vmem:[%s3719_s1 + $0x20] sm:$0xff]   ;;  %v3272_v58 = vld [vmem:[%s3129_s20 + $0x3c] sm:$0x1] }
  0x1e   : > { %2661 = vmatprep.mubr.bf16.mxu1 %v2373_v61  ;;  %v2429_v9 = vcombine.low %v292_v57, %v306_v5  ;;  %v328_v14 = vor.u32 %v327_v6, %v324_v4  ;;  %v2398_v26 = vrot.slane %v3141_v13, 9  ;;  %v336_v28 = vshrl.u32 %v3235_v25, 16  ;;  %v3281_v1 = vld [vmem:[%s3129_s20 + $0x44] sm:$0x1]  ;;  %v2985_v15 = vld [vmem:[%s3719_s1 + $0x168] sm:$0xff]  }
  0x1f   : > { %2658 = vmatpush3.bf16.msra.mxu1 %v2970_v22  ;;  %v320_v8 = vsel %vm3182_vm2, %v315_v2, %v319_v59  ;;  %v2978_v22 = vld [vmem:[%s3719_s1 + $0x10] sm:$0xff]   ;;  %v339_v29 = vshll.u32 %v3235_v25, 16  ;;  %v345_v36 = vshll.u32 %v3239_v27, 16  ;;  %v359_v45 = vshll.u32 %v3254_v42, 16 }
  0x20   : > { %2754 = vmatpush3.bf16.msra.mxu0 %v2971_v23  ;;  %2659 = vmatprep.subr.bf16.mxu1 %v2972_v38  ;;  %v3218_v10 = vcombine.low %v306_v5, %v320_v8  ;;  %v329_v18 = vrot.slane %v328_v14, 4  ;;  %v338_v40 = vrot.slane %v336_v28, 4  ;;  %v2399_v46 = vrot.slane %v3162_v30, 9  ;;  %v2984_v28 = vld [vmem:[%s3719_s1 + $0x28] sm:$0xff]  }
  0x21   : > { %2755 = vmatprep.subr.bf16.mxu0 %v2973_v48  ;;  %2757 = vmatprep.mubr.bf16.mxu0 %v2429_v9  ;;  %v341_v41 = vrot.slane %v339_v29, 5  ;;  %v347_v49 = vrot.slane %v345_v36, 5  ;;  %v361_v57 = vrot.slane %v359_v45, 5  ;;  %v364_v59 = vshrl.u32 %v3263_v53, 16 }
  0x22   : > { %v334_v21 = vsel %vm3182_vm2, %v329_v18, %v333_v16  ;;  %v367_v60 = vshll.u32 %v3263_v53, 16  ;;  %v373_v63 = vshll.u32 %v3272_v58, 16  ;;  %v1003_v4 = vshrl.u32 %v3278_v0, 16  ;;  %v2983_v16 = vld [vmem:[%s3719_s1 + $0x160] sm:$0xff]  }
  0x23   : > { %2660 = vmatpush3.bf16.msra.mxu1 %v2972_v38  ;;  %v2430_v23 = vcombine.low %v320_v8, %v334_v21  ;;  %v3251_v38 = vld [vmem:[%s3129_s20 + $0x30] sm:$0xf]  ;;  %v366_v2 = vrot.slane %v364_v59, 4  ;;  %v1006_v5 = vshll.u32 %v3278_v0, 16  ;;  %v1012_v14 = vshll.u32 %v3281_v1, 16  ;;  %v2991_v59 = vld [vmem:[%s3719_s1 + $0x80] sm:$0xff]  }
  0x24   : > { %2756 = vmatpush3.bf16.msra.mxu0 %v2973_v48  ;;  %2669 = vmatprep.subr.bf16.mxu1 %v2974_v62  ;;  %v350_v43 = vshrl.u32 %v3251_v38, 16  ;;  %v353_v44 = vshll.u32 %v3251_v38, 16  ;;  %v2419_v47 = vcombine.low %v3235_v25, %v3251_v38  ;;  %v342_v48 = vor.u32 %v341_v41, %v338_v40 }
  0x25   : > { %2765 = vmatprep.subr.bf16.mxu0 %v2975_v3  ;;  %v375_v9 = vrot.slane %v373_v63, 5  ;;  %v1014_v41 = vrot.slane %v1012_v14, 5  ;;  %v3317_v45 = vsel %vm3295_vm5, %v2398_v26, %v676_v19  ;;  %v2988_v26 = vld [vmem:[%s3719_s1 + $0x38] sm:$0xff]   ;;  %v696_v63 = vrot.slane %v3254_v42, 5  ;;  %v2994_v42 = vld [vmem:[%s3719_s1 + $0x88] sm:$0xff]  }
  0x26   : > { %2662 = vmatmul.mubr.bf16.vlgmr.msra.gmra.mrb[0].mxu1 %v3218_v10  ;;  %v352_v50 = vrot.slane %v350_v43, 4  ;;  %v355_v51 = vrot.slane %v353_v44, 5  ;;  %v343_v61 = vrot.slane %v342_v48, 4  ;;  %v3323_v48 = vsel %vm3295_vm5, %v2399_v46, %v680_v20  ;;  %v2987_v46 = vld [vmem:[%s3719_s1 + $0x170] sm:$0xff]  }
  0x27   : > { %2670 = vmatpush3.bf16.msra.mxu1 %v2974_v62  ;;  %2758 = vmatmul.mubr.bf16.vlgmr.msra.gmra.mrb[0].mxu0 %v2430_v23  ;;  %v1008_v23 = vrot.slane %v1006_v5, 5  ;;  %v2442_v20 = vcombine.low %v3317_v45, %v3323_v48  ;;  %v2992_v5 = vld [vmem:[%s3719_s1 + $0x180] sm:$0xff]   ;;  %v2404_v14 = vrot.slane %v3263_v53, 9 }
  0x28   : > { %2671 = vmatprep.subr.bf16.mxu1 %v2976_v17  ;;  %2766 = vmatpush3.bf16.msra.mxu0 %v2975_v3  ;;  %v356_v62 = vor.u32 %v355_v51, %v352_v50  ;;  %v369_v3 = vrot.slane %v367_v60, 5  ;;  %v348_v6 = vsel %vm3182_vm2, %v343_v61, %v347_v49  ;;  %v2986_v49 = vld [vmem:[%s3719_s1 + $0x30] sm:$0xff]   ;;  %v684_v51 = vrot.slane %v3171_v34, 5 }
  0x29   : > { %2767 = vmatprep.subr.bf16.mxu0 %v2977_v24  ;;  %v2401_v60 = vrot.slane %v3194_v52, 9  ;;  %v2402_v34 = vrot.slane %v3235_v25, 9  ;;  %v2386_v61 = vcombine.low %v3162_v30, %v3168_v33  ;;  %v3019_v30 = vld [vmem:[%s3719_s1 + $0x1e0] sm:$0xff]  }
  0x2a   : > { %v357_v8 = vrot.slane %v356_v62, 4  ;;  %v370_v18 = vor.u32 %v369_v3, %v366_v2  ;;  %v2403_v62 = vrot.slane %v3251_v38, 9  ;;  %v672_v2 = vrot.slane %v3138_v12, 5 }
  0x2b   : > { %2672 = vmatpush3.bf16.msra.mxu1 %v2976_v17  ;;  %v3291_v17 = vcombine.low %v334_v21, %v348_v6  ;;  %v2420_v21 = vcombine.low %v3263_v53, %v3278_v0  ;;  %v3366_v3 = vcombine.low %v3194_v52, %v3235_v25  ;;  %v2397_v12 = vrot.slane %v3135_v11, 9  ;;  %v3033_v52 = vld [vmem:[%s3719_s1 + $0x210] sm:$0xff]   ;;  %v3034_v25 = vld [vmem:[%s3719_s1 + $0x218] sm:$0xff]  }
  0x2c   : > { %2673 = vmatprep.subr.bf16.mxu1 %v2978_v22  ;;  %2768 = vmatpush3.bf16.msra.mxu0 %v2977_v24  ;;  %v362_v29 = vsel %vm3182_vm2, %v357_v8, %v361_v57  ;;  %v371_v36 = vrot.slane %v370_v18, 4  ;;  %v2400_v57 = vrot.slane %v3168_v33, 9  ;;  %v2441_v18 = vrot.slane %v3278_v0, 9 }
  0x2d   : > { %2769 = vmatprep.subr.bf16.mxu0 %v2979_v32  ;;  %2665 = vmatprep.mubr.bf16.mxu1 %v3291_v17 }
  0x2e   : > { %v376_v43 = vsel %vm3182_vm2, %v371_v36, %v375_v9  ;;  %v3392_v9 = vsel %vm3295_vm5, %v2403_v62, %v696_v63  ;;  %v3011_v62 = vld [vmem:[%s3719_s1 + $0x1c0] sm:$0xff]   ;;  %v3013_v63 = vld [vmem:[%s3719_s1 + $0x1c8] sm:$0xff]  }
  0x2f   : > { %2674 = vmatpush3.bf16.msra.mxu1 %v2978_v22  ;;  %v1005_v22 = vrot.slane %v1003_v4, 4  ;;  %v3328_v50 = vcombine.low %v362_v29, %v376_v43  ;;  %v3370_v4 = vsel %vm3295_vm5, %v2400_v57, %v684_v51  ;;  %v3008_v51 = vld [vmem:[%s3719_s1 + $0xb8] sm:$0xff]   ;;  %v3010_v57 = vld [vmem:[%s3719_s1 + $0xc0] sm:$0xff]  }
  0x30   : > { %2675 = vmatprep.subr.bf16.mxu1 %v2980_v35  ;;  %2770 = vmatpush3.bf16.msra.mxu0 %v2979_v32  ;;  %v2385_v32 = vcombine.low %v3135_v11, %v3141_v13  ;;  %v3020_v13 = vld [vmem:[%s3719_s1 + $0xe8] sm:$0xff]  }
  0x31   : > { %2771 = vmatprep.subr.bf16.mxu0 %v2981_v54  ;;  %v1009_v40 = vor.u32 %v1008_v23, %v1005_v22  ;;  %2666 = vmatmul.mubr.bf16.gmra.mrb[4].mxu1 %v3328_v50  ;;  %v1165_v22 = vrot.slane %v3281_v1, 5  ;;  %v673_v23 = vsel %vm3295_vm5, %v2397_v12, %v672_v2  ;;  %v2998_v1 = vld [vmem:[%s3719_s1 + $0x98] sm:$0xff]  }
  0x32   : > { %2685 = vmatprep.mubr.bf16.mxu1 %v2385_v32  ;;  %v3017_v12 = vld [vmem:[%s3719_s1 + $0x1d8] sm:$0xff]  }
  0x33   : > { %2676 = vmatpush3.bf16.msra.mxu1 %v2980_v35  ;;  %v2431_v35 = vcombine.low %v348_v6, %v362_v29  ;;  %v1010_v44 = vrot.slane %v1009_v40, 4  ;;  %v2996_v6 = vld [vmem:[%s3719_s1 + $0x90] sm:$0xff]   ;;  %v3420_v40 = vsel %vm3295_vm5, %v2441_v18, %v1165_v22 }
  0x34   : > { %2677 = vmatprep.subr.bf16.mxu1 %v2982_v55  ;;  %2772 = vmatpush3.bf16.msra.mxu0 %v2981_v54  ;;  %v688_v54 = vrot.slane %v3199_v56, 5  ;;  %v692_v56 = vrot.slane %v3239_v27, 5 }
  0x35   : > { %2761 = vmatprep.mubr.bf16.mxu0 %v2431_v35  ;;  %2773 = vmatprep.subr.bf16.mxu0 %v2983_v16  ;;  %v3335_v31 = vsel %vm3182_vm2, %v1010_v44, %v1014_v41  ;;  %v2405_v35 = vcombine.low %v673_v23, %v3317_v45  ;;  %v2997_v41 = vld [vmem:[%s3719_s1 + $0x190] sm:$0xff]   ;;  %v2999_v44 = vld [vmem:[%s3719_s1 + $0x198] sm:$0xff]   ;;  %v3002_v45 = vld [vmem:[%s3719_s1 + $0xa8] sm:$0xff]  }
  0x36   : > { %v2432_v19 = vcombine.low %v376_v43, %v3335_v31  ;;  %v3374_v27 = vsel %vm3295_vm5, %v2401_v60, %v688_v54  ;;  %v3388_v8 = vsel %vm3295_vm5, %v2402_v34, %v692_v56  ;;  %v3000_v43 = vld [vmem:[%s3719_s1 + $0xa0] sm:$0xff]   ;;  %v3009_v60 = vld [vmem:[%s3719_s1 + $0x1b8] sm:$0xff]   ;;  %v3473_v56 = vcombine.low %v3323_v48, %v3370_v4  ;;  %v3014_v48 = vld [vmem:[%s3719_s1 + $0xd0] sm:$0xff]  }
  0x37   : > { %2678 = vmatpush3.bf16.msra.mxu1 %v2982_v55  ;;  %v2989_v55 = vld [vmem:[%s3719_s1 + $0x178] sm:$0xff]   ;;  %v2443_v11 = vcombine.low %v3370_v4, %v3374_v27  ;;  %v2444_v29 = vcombine.low %v3388_v8, %v3392_v9  ;;  %v3477_v24 = vcombine.low %v3374_v27, %v3388_v8  ;;  %v3015_v27 = vld [vmem:[%s3719_s1 + $0x1d0] sm:$0xff]   ;;  %v3029_v23 = vld [vmem:[%s3719_s1 + $0x200] sm:$0xff]  }
  0x38   : > { %2679 = vmatprep.subr.bf16.mxu1 %v2984_v28  ;;  %2774 = vmatpush3.bf16.msra.mxu0 %v2983_v16  ;;  %v700_v16 = vrot.slane %v3272_v58, 5  ;;  %v3410_v58 = vcombine.low %v3251_v38, %v3263_v53  ;;  %v3016_v4 = vld [vmem:[%s3719_s1 + $0xd8] sm:$0xff]   ;;  %v3036_v38 = vld [vmem:[%s3719_s1 + $0x228] sm:$0xff]  }
  0x39   : > { %2775 = vmatprep.subr.bf16.mxu0 %v2985_v15  ;;  %2762 = vmatmul.mubr.bf16.gmra.mrb[4].mxu0 %v2432_v19  ;;  %v3005_v19 = vld [vmem:[%s3719_s1 + $0xb0] sm:$0xff]   ;;  %v3038_v53 = vld [vmem:[%s3719_s1 + $0x238] sm:$0xff]  }
  0x3a   : > { %2781 = vmatprep.mubr.bf16.mxu0 %v2442_v20  ;;  %v701_v36 = vsel %vm3295_vm5, %v2404_v14, %v700_v16  ;;  %v3446_v20 = vld [vmem:[%s3129_s20 + $0x48] sm:$0xf]  ;;  %v3026_v16 = vld [vmem:[%s3719_s1 + $0x1f8] sm:$0xff]  }
  0x3b   : > { %2680 = vmatpush3.bf16.msra.mxu1 %v2984_v28  ;;  %v2995_v28 = vld [vmem:[%s3719_s1 + $0x188] sm:$0xff]   ;;  %v2445_v32 = vcombine.low %v701_v36, %v3420_v40  ;;  %v3494_v2 = vcombine.low %v3392_v9, %v701_v36  ;;  %v1458_v8 = vshll.u32 %v3446_v20, 16  ;;  %v3023_v9 = vld [vmem:[%s3719_s1 + $0x1f0] sm:$0xff]   ;;  %v3046_v36 = vld [vmem:[%s3721_s3 + $0x38] sm:$0xff]  }
  0x3c   : > { %2681 = vmatprep.subr.bf16.mxu1 %v2986_v49  ;;  %2776 = vmatpush3.bf16.msra.mxu0 %v2985_v15  ;;  %v3003_v15 = vld [vmem:[%s3719_s1 + $0x1a8] sm:$0xff]  }
  0x3d   : > { %2777 = vmatprep.subr.bf16.mxu0 %v2987_v46  ;;  %v1460_v14 = vrot.slane %v1458_v8, 5 }
  0x3f   : > { %2682 = vmatpush3.bf16.msra.mxu1 %v2986_v49  ;;  %v3001_v49 = vld [vmem:[%s3719_s1 + $0x1a0] sm:$0xff]  }
  0x40   : > { %2683 = vmatprep.subr.bf16.mxu1 %v2988_v26  ;;  %2778 = vmatpush3.bf16.msra.mxu0 %v2987_v46  ;;  %v3450_v46 = vld [vmem:[%s3129_s20 + $0x4c] sm:$0x1] }
  0x41   : > { %2779 = vmatprep.subr.bf16.mxu0 %v2989_v55  ;;  %v1611_v54 = vrot.slane %v3450_v46, 5  ;;  %v1464_v22 = vshll.u32 %v3450_v46, 16 }
  0x43   : > { %2684 = vmatpush3.bf16.msra.mxu1 %v2988_v26  ;;  %v2472_v26 = vrot.slane %v3446_v20, 9 }
  0x44   : > { %2693 = vmatprep.subr.bf16.mxu1 %v2991_v59  ;;  %2780 = vmatpush3.bf16.msra.mxu0 %v2989_v55  ;;  %v3006_v55 = vld [vmem:[%s3719_s1 + $0x1b0] sm:$0xff]  }
  0x45   : > { %2789 = vmatprep.subr.bf16.mxu0 %v2992_v5 }
  0x46   : > { %2686 = vmatmul.mubr.bf16.vlgmr.msra.gmra.mrb[0].mxu1 %v2386_v61 }
  0x47   : > { %2694 = vmatpush3.bf16.msra.mxu1 %v2991_v59  ;;  %2689 = vmatprep.mubr.bf16.mxu1 %v3366_v3  ;;  %v3464_v59 = vsel %vm3295_vm5, %v2472_v26, %v1611_v54 }
  0x48   : > { %2695 = vmatprep.subr.bf16.mxu1 %v2994_v42  ;;  %2782 = vmatmul.mubr.bf16.vlgmr.msra.gmra.mrb[0].mxu0 %v2443_v11  ;;  %v2473_v34 = vcombine.low %v3420_v40, %v3464_v59 }
  0x49   : > { %2790 = vmatpush3.bf16.msra.mxu0 %v2992_v5  ;;  %2785 = vmatprep.mubr.bf16.mxu0 %v2444_v29  ;;  %v3021_v5 = vld [vmem:[%s3719_s1 + $0x1e8] sm:$0xff]   ;;  %v1466_v29 = vrot.slane %v1464_v22, 5 }
  0x4a   : > { %2791 = vmatprep.subr.bf16.mxu0 %v2995_v28 }
  0x4b   : > { %2696 = vmatpush3.bf16.msra.mxu1 %v2994_v42  ;;  %v3018_v42 = vld [vmem:[%s3719_s1 + $0xe0] sm:$0xff]  }
  0x4c   : > { %2697 = vmatprep.subr.bf16.mxu1 %v2996_v6 }
  0x4d   : > { %2792 = vmatpush3.bf16.msra.mxu0 %v2995_v28 }
  0x4e   : > { %2690 = vmatmul.mubr.bf16.gmra.mrb[4].mxu1 %v3410_v58  ;;  %2793 = vmatprep.subr.bf16.mxu0 %v2997_v41 }
  0x4f   : > { %2698 = vmatpush3.bf16.msra.mxu1 %v2996_v6  ;;  %2709 = vmatprep.mubr.bf16.mxu1 %v2405_v35  ;;  %v1455_v6 = vshrl.u32 %v3446_v20, 16  ;;  %v3044_v35 = vld [vmem:[%s3721_s3 + $0x28] sm:$0xff]  }
  0x50   : > { %2699 = vmatprep.subr.bf16.mxu1 %v2998_v1  ;;  %2786 = vmatmul.mubr.bf16.gmra.mrb[4].mxu0 %v2445_v32 }
  0x51   : > { %2794 = vmatpush3.bf16.msra.mxu0 %v2997_v41  ;;  %2805 = vmatprep.mubr.bf16.mxu0 %v2386_v61  ;;  %v3012_v61 = vld [vmem:[%s3719_s1 + $0xc8] sm:$0xff]   ;;  %v1457_v11 = vrot.slane %v1455_v6, 4 }
  0x52   : > { %2795 = vmatprep.subr.bf16.mxu0 %v2999_v44 }
  0x53   : > { %2700 = vmatpush3.bf16.msra.mxu1 %v2998_v1  ;;  %v1461_v18 = vor.u32 %v1460_v14, %v1457_v11  ;;  %v3045_v1 = vld [vmem:[%s3721_s3 + $0x30] sm:$0xff]  }
  0x54   : > { %2701 = vmatprep.subr.bf16.mxu1 %v3000_v43 }
  0x55   : > { %2796 = vmatpush3.bf16.msra.mxu0 %v2999_v44  ;;  %v1462_v28 = vrot.slane %v1461_v18, 4 }
  0x56   : > { %2797 = vmatprep.subr.bf16.mxu0 %v3001_v49 }
  0x57   : > { %2702 = vmatpush3.bf16.msra.mxu1 %v3000_v43  ;;  %v1467_v33 = vsel %vm3182_vm2, %v1462_v28, %v1466_v29  ;;  %v3615_v28 = vld [vmem:[%s3722_s4] ss:$0 sm:$0xff] }
  0x58   : > { %2703 = vmatprep.subr.bf16.mxu1 %v3002_v45 }
  0x59   : > { %2798 = vmatpush3.bf16.msra.mxu0 %v3001_v49 }
  0x5a   : > { %2799 = vmatprep.subr.bf16.mxu0 %v3003_v15 }
  0x5b   : > { %2704 = vmatpush3.bf16.msra.mxu1 %v3002_v45 }
  0x5c   : > { %2705 = vmatprep.subr.bf16.mxu1 %v3005_v19 }
  0x5d   : > { %2800 = vmatpush3.bf16.msra.mxu0 %v3003_v15 }
  0x5e   : > { %2801 = vmatprep.subr.bf16.mxu0 %v3006_v55 }
  0x5f   : > { %2706 = vmatpush3.bf16.msra.mxu1 %v3005_v19 }
  0x60   : > { %2707 = vmatprep.subr.bf16.mxu1 %v3008_v51 }
  0x61   : > { %2802 = vmatpush3.bf16.msra.mxu0 %v3006_v55 }
  0x62   : > { %2803 = vmatprep.subr.bf16.mxu0 %v3009_v60 }
  0x63   : > { %2708 = vmatpush3.bf16.msra.mxu1 %v3008_v51 }
  0x64   : > { %2717 = vmatprep.subr.bf16.mxu1 %v3010_v57 }
  0x65   : > { %2804 = vmatpush3.bf16.msra.mxu0 %v3009_v60 }
  0x66   : > { %2710 = vmatmul.mubr.bf16.vlgmr.msra.gmra.mrb[0].mxu1 %v3473_v56  ;;  %2813 = vmatprep.subr.bf16.mxu0 %v3011_v62 }
  0x67   : > { %2718 = vmatpush3.bf16.msra.mxu1 %v3010_v57  ;;  %2713 = vmatprep.mubr.bf16.mxu1 %v3477_v24 }
  0x68   : > { %2719 = vmatprep.subr.bf16.mxu1 %v3012_v61  ;;  %2806 = vmatmul.mubr.bf16.vlgmr.msra.gmra.mrb[0].mxu0 %v3366_v3  ;;  %v2454_v3 = vcombine.low %v3278_v0, %v3446_v20  ;;  %v3039_v0 = vld [vmem:[%s3721_s3] sm:$0xff]  }
  0x69   : > { %2814 = vmatpush3.bf16.msra.mxu0 %v3011_v62  ;;  %2809 = vmatprep.mubr.bf16.mxu0 %v3410_v58  ;;  %v3030_v58 = vld [vmem:[%s3719_s1 + $0x208] sm:$0xff]   ;;  %v2482_v20 = vld [vmem:[%s3720_s2] ss:$0 sm:$0xff] }
  0x6a   : > { %2815 = vmatprep.subr.bf16.mxu0 %v3013_v63 }
  0x6b   : > { %2720 = vmatpush3.bf16.msra.mxu1 %v3012_v61 }
  0x6c   : > { %2721 = vmatprep.subr.bf16.mxu1 %v3014_v48 }
  0x6d   : > { %2816 = vmatpush3.bf16.msra.mxu0 %v3013_v63 }
  0x6e   : > { %2714 = vmatmul.mubr.bf16.gmra.mrb[4].mxu1 %v3494_v2  ;;  %2817 = vmatprep.subr.bf16.mxu0 %v3015_v27 }
  0x6f   : > { %2722 = vmatpush3.bf16.msra.mxu1 %v3014_v48  ;;  %2733 = vmatprep.mubr.bf16.mxu1 %v2417_v37  ;;  %v3022_v37 = vld [vmem:[%s3719_s1 + $0xf0] sm:$0xff]  }
  0x70   : > { %2723 = vmatprep.subr.bf16.mxu1 %v3016_v4  ;;  %2810 = vmatmul.mubr.bf16.gmra.mrb[4].mxu0 %v2454_v3 }
  0x71   : > { %2818 = vmatpush3.bf16.msra.mxu0 %v3015_v27  ;;  %2829 = vmatprep.mubr.bf16.mxu0 %v3218_v10  ;;  %v3025_v10 = vld [vmem:[%s3719_s1 + $0xf8] sm:$0xff]  }
  0x72   : > { %2819 = vmatprep.subr.bf16.mxu0 %v3017_v12 }
  0x73   : > { %2724 = vmatpush3.bf16.msra.mxu1 %v3016_v4 }
  0x74   : > { %2725 = vmatprep.subr.bf16.mxu1 %v3018_v42 }
  0x75   : > { %2820 = vmatpush3.bf16.msra.mxu0 %v3017_v12 }
  0x76   : > { %2821 = vmatprep.subr.bf16.mxu0 %v3019_v30 }
  0x77   : > { %2726 = vmatpush3.bf16.msra.mxu1 %v3018_v42 }
  0x78   : > { %2727 = vmatprep.subr.bf16.mxu1 %v3020_v13 }
  0x79   : > { %2822 = vmatpush3.bf16.msra.mxu0 %v3019_v30 }
  0x7a   : > { %2823 = vmatprep.subr.bf16.mxu0 %v3021_v5 }
  0x7b   : > { %2728 = vmatpush3.bf16.msra.mxu1 %v3020_v13 }
  0x7c   : > { %2729 = vmatprep.subr.bf16.mxu1 %v3022_v37 }
  0x7d   : > { %2824 = vmatpush3.bf16.msra.mxu0 %v3021_v5 }
  0x7e   : > { %2825 = vmatprep.subr.bf16.mxu0 %v3023_v9 }
  0x7f   : > { %2730 = vmatpush3.bf16.msra.mxu1 %v3022_v37 }
  0x80   : > { %2731 = vmatprep.subr.bf16.mxu1 %v3025_v10 }
  0x81   : > { %2826 = vmatpush3.bf16.msra.mxu0 %v3023_v9 }
  0x82   : > { %2827 = vmatprep.subr.bf16.mxu0 %v3026_v16 }
  0x83   : > { %2732 = vmatpush3.bf16.msra.mxu1 %v3025_v10 }
  0x84   : > { %2861 = vmatprep.subr.bf16.mxu1 %v3039_v0 }
  0x85   : > { %2828 = vmatpush3.bf16.msra.mxu0 %v3026_v16 }
  0x86   : > { %2734 = vmatmul.mubr.bf16.vlgmr.msra.gmra.mrb[0].mxu1 %v2418_v7  ;;  %2837 = vmatprep.subr.bf16.mxu0 %v3029_v23  ;;  %v2463_v7 = vcombine.low %v3335_v31, %v1467_v33  ;;  %v3043_v31 = vld [vmem:[%s3721_s3 + $0x20] sm:$0xff]  }
  0x87   : > { %2737 = vmatprep.mubr.bf16.mxu1 %v2419_v47  ;;  %v3037_v47 = vld [vmem:[%s3719_s1 + $0x230] sm:$0xff]   ;;  %2862 = vmatpush3.bf16.msra.mxu1 %v3039_v0 }
  0x88   : > { %2830 = vmatmul.mubr.bf16.vlgmr.msra.gmra.mrb[0].mxu0 %v3291_v17  ;;  %v3040_v17 = vld [vmem:[%s3721_s3 + $0x8] sm:$0xff]  }
  0x89   : > { %2838 = vmatpush3.bf16.msra.mxu0 %v3029_v23  ;;  %2833 = vmatprep.mubr.bf16.mxu0 %v3328_v50  ;;  %v3042_v50 = vld [vmem:[%s3721_s3 + $0x18] sm:$0xff]  }
  0x8a   : > { %2839 = vmatprep.subr.bf16.mxu0 %v3030_v58  ;;  %2863 = vmatprep.subr.bf16.mxu1 %v3040_v17 }
  0x8b   : > { %2864 = vmatpush3.bf16.msra.mxu1 %v3040_v17 }
  0x8d   : > { %2840 = vmatpush3.bf16.msra.mxu0 %v3030_v58 }
  0x8e   : > { %2738 = vmatmul.mubr.bf16.gmra.mrb[4].mxu1 %v2420_v21  ;;  %2841 = vmatprep.subr.bf16.mxu0 %v3033_v52  ;;  %v3041_v21 = vld [vmem:[%s3721_s3 + $0x10] sm:$0xff]  }
  0x8f   : > { %2865 = vmatprep.subr.bf16.mxu1 %v3041_v21 }
  0x90   : > { %2834 = vmatmul.mubr.bf16.gmra.mrb[4].mxu0 %v2463_v7  ;;  %2866 = vmatpush3.bf16.msra.mxu1 %v3041_v21 }
  0x91   : > { %2842 = vmatpush3.bf16.msra.mxu0 %v3033_v52  ;;  %2853 = vmatprep.mubr.bf16.mxu0 %v3473_v56 }
  0x92   : > { %2843 = vmatprep.subr.bf16.mxu0 %v3034_v25  ;;  %2867 = vmatprep.subr.bf16.mxu1 %v3042_v50 }
  0x94   : > { %2868 = vmatpush3.bf16.msra.mxu1 %v3042_v50 }
  0x95   : > { %2844 = vmatpush3.bf16.msra.mxu0 %v3034_v25  ;;  %2869 = vmatprep.subr.bf16.mxu1 %v3043_v31 }
  0x96   : > { %2845 = vmatprep.subr.bf16.mxu0 %v3035_v39 }
  0x98   : > { %2870 = vmatpush3.bf16.msra.mxu1 %v3043_v31 }
  0x99   : > { %2846 = vmatpush3.bf16.msra.mxu0 %v3035_v39  ;;  %2871 = vmatprep.subr.bf16.mxu1 %v3044_v35 }
  0x9a   : > { %2847 = vmatprep.subr.bf16.mxu0 %v3036_v38 }
  0x9c   : > { %2872 = vmatpush3.bf16.msra.mxu1 %v3044_v35 }
  0x9d   : > { %2848 = vmatpush3.bf16.msra.mxu0 %v3036_v38  ;;  %2873 = vmatprep.subr.bf16.mxu1 %v3045_v1 }
  0x9e   : > { %2849 = vmatprep.subr.bf16.mxu0 %v3037_v47 }
  0xa0   : > { %2874 = vmatpush3.bf16.msra.mxu1 %v3045_v1 }
  0xa1   : > { %2850 = vmatpush3.bf16.msra.mxu0 %v3037_v47  ;;  %2875 = vmatprep.subr.bf16.mxu1 %v3046_v36 }
  0xa2   : > { %2851 = vmatprep.subr.bf16.mxu0 %v3038_v53 }
  0xa4   : > { %2876 = vmatpush3.bf16.msra.mxu1 %v3046_v36 }
  0xa5   : > { %2852 = vmatpush3.bf16.msra.mxu0 %v3038_v53 }
  0xa8   : > { %2854 = vmatmul.mubr.bf16.vlgmr.msra.gmra.mrb[0].mxu0 %v3477_v24 }
  0xa9   : > { %2857 = vmatprep.mubr.bf16.mxu0 %v3494_v2 }
  0xb0   : > { %2858 = vmatmul.mubr.bf16.gmra.mrb[4].mxu0 %v2473_v34 }
 0x159   : > { %v2735_v40 = vpop.f32.mrb[0].mxu1 }
 0x15a   : > { %v963_v41 = vpop.f32.mrb[1].mxu1 }
 0x15b   : > { %v2736_v32 = vpop.f32.mrb[2].mxu1 }
 0x15c   : > { %v966_v43 = vpop.f32.mrb[3].mxu1 }
 0x161   : > { %v2739_v44 = vpop.f32.mrb[4].mxu1 }
 0x162   : > { %v979_v45 = vpop.f32.mrb[5].mxu1 }
 0x163   : > { %v2740_v49 = vpop.f32.mrb[6].mxu1 }
 0x164   : > { %v982_v15 = vpop.f32.mrb[7].mxu1 }
 0x17b   : > { %v2855_v19 = vpop.f32.mrb[0].mxu0 }
 0x17c   : > { %v2885_v26 = vadd.f32 %v2855_v19, %v2735_v40  ;;  %v1714_v46 = vpop.f32.mrb[1].mxu0 }
 0x17d   : > { %v2886_v51 = vadd.f32 %v1714_v46, %v963_v41  ;;  %v2856_v54 = vpop.f32.mrb[2].mxu0 }
 0x17e   : > { %v1762_v55 = vadd.f32 %v2885_v26, %v2482_v20  ;;  %v2887_v57 = vadd.f32 %v2856_v54, %v2736_v32  ;;  %v1717_v59 = vpop.f32.mrb[3].mxu0 }
 0x17f   : > { %v1760_v60 = vadd.f32 %v2886_v51, %v2482_v20  ;;  %v2888_v34 = vadd.f32 %v1717_v59, %v966_v43 }
 0x180   : > { %v1763_v56 = vadd.f32 %v2887_v57, %v2482_v20  ;;  %v1770_v61 = vmax.f32 %v1762_v55, 0.0 }
 0x181   : > { %v1761_v24 = vadd.f32 %v2888_v34, %v2482_v20  ;;  %v1768_v48 = vmax.f32 %v1760_v60, 0.0 }
 0x182   : > { %v1771_v62 = vmax.f32 %v1763_v56, 0.0 }
 0x183   : > { %v1769_v63 = vmax.f32 %v1761_v24, 0.0  ;;  %v2859_v2 = vpop.f32.mrb[4].mxu0 }
 0x184   : > { %v1777_v4 = vpack.c.bf16 %v1771_v62, %v1770_v61  ;;  %v2889_v27 = vadd.f32 %v2859_v2, %v2739_v44  ;;  %v1730_v3 = vpop.f32.mrb[5].mxu0 }
 0x185   : > { %v2890_v42 = vadd.f32 %v1730_v3, %v979_v45  ;;  %v2860_v12 = vpop.f32.mrb[6].mxu0  ;;  %v1776_v13 = vpack.c.bf16 %v1769_v63, %v1768_v48 }
 0x186   : > { %v1766_v30 = vadd.f32 %v2889_v27, %v2482_v20  ;;  %v2891_v37 = vadd.f32 %v2860_v12, %v2740_v49  ;;  %v1733_v5 = vpop.f32.mrb[7].mxu0 }
 0x187   : > { %v1764_v6 = vadd.f32 %v2890_v42, %v2482_v20  ;;  %v2892_v8 = vadd.f32 %v1733_v5, %v982_v15  ;;  %2877 = vmatprep.mubr.bf16.mxu1 %v1776_v13 }
 0x188   : > { %v1767_v10 = vadd.f32 %v2891_v37, %v2482_v20  ;;  %2878 = vmatmul.mubr.bf16.vlgmr.msra.gmra.mrb[8].mxu1 %v1777_v4  ;;  %v1774_v11 = vmax.f32 %v1766_v30, 0.0 }
 0x189   : > { %v1765_v9 = vadd.f32 %v2892_v8, %v2482_v20  ;;  %v1772_v16 = vmax.f32 %v1764_v6, 0.0 }
 0x18a   : > { %v1775_v14 = vmax.f32 %v1767_v10, 0.0 }
 0x18b   : > { %v1773_v18 = vmax.f32 %v1765_v9, 0.0 }
 0x18c   : > { %v1779_v22 = vpack.c.bf16 %v1775_v14, %v1774_v11 }
 0x18d   : > { %v1778_v23 = vpack.c.bf16 %v1773_v18, %v1772_v16 }
 0x18f   : > { %2881 = vmatprep.mubr.bf16.mxu1 %v1778_v23 }
 0x190   : > { %2882 = vmatmul.mubr.bf16.gmra.mrb[12].mxu1 %v1779_v22 }
 0x25b   : > { %v2879_v29 = vpop.f32.mrb[8].mxu1 }
 0x25c   : > { %v1894_v58 = vadd.f32 %v2879_v29, %v3615_v28  ;;  %v1885_v33 = vpop.f32.mrb[9].mxu1 }
 0x25d   : > { %v1886_v52 = vadd.f32 %v3615_v28, %v1885_v33  ;;  %v2880_v7 = vpop.f32.mrb[10].mxu1 }
 0x25e   : > { %v1918_v25 = vmul.f32 0.25, %v1894_v58  ;;  %v1926_v39 = vmul.f32 0.75, %v1894_v58  ;;  %v1897_v38 = vadd.f32 %v2880_v7, %v3615_v28  ;;  %v1888_v47 = vpop.f32.mrb[11].mxu1 }
 0x25f   : > { %v1916_v53 = vmul.f32 0.25, %v1886_v52  ;;  %v1924_v0 = vmul.f32 0.75, %v1886_v52  ;;  %v1889_v17 = vadd.f32 %v3615_v28, %v1888_v47 }
 0x260   : > { %v1934_v21 = vadd.f32 %v1926_v39, %v1918_v25  ;;  %v1958_v50 = vrot.slane %v1918_v25, 1  ;;  %v1998_v31 = vrot.slane %v1926_v39, 1  ;;  %v1919_v35 = vmul.f32 0.25, %v1897_v38 }
 0x261   : > { %v1932_v1 = vadd.f32 %v1924_v0, %v1916_v53  ;;  %v1956_v36 = vrot.slane %v1916_v53, 1  ;;  %v1996_v40 = vrot.slane %v1924_v0, 1  ;;  %v1927_v41 = vmul.f32 0.75, %v1897_v38 }
 0x262   : > { %1942 = vst [vmem:[#allocation2 + $0x20] ss:$12 sps:$4 sm:$0x81] %v1934_v21   ;;  %v1974_v32 = vadd.f32 %v1958_v50, %v1926_v39  ;;  %v2014_v43 = vadd.f32 %v1998_v31, %v1918_v25  ;;  %v1959_v44 = vrot.slane %v1919_v35, 1  ;;  %v1917_v45 = vmul.f32 0.25, %v1889_v17 }
 0x263   : > { %1940 = vst [vmem:[#allocation2] ss:$12 sps:$4 sm:$0x81] %v1932_v1   ;;  %v1972_v49 = vadd.f32 %v1956_v36, %v1924_v0  ;;  %v2012_v15 = vadd.f32 %v1996_v40, %v1916_v53  ;;  %v1935_v19 = vadd.f32 %v1927_v41, %v1919_v35  ;;  %v1999_v20 = vrot.slane %v1927_v41, 1  ;;  %v2883_v26 = vpop.f32.mrb[12].mxu1 }
 0x264   : > { %1982 = vst [vmem:[#allocation2 + $0x21] ss:$8 sps:$4 sm:$0x11] %v1974_v32   ;;  %2022 = vst [vmem:[#allocation2 + $0x22] ss:$8 sps:$4 sm:$0x11] %v2014_v43   ;;  %v1975_v46 = vadd.f32 %v1959_v44, %v1927_v41  ;;  %v1910_v55 = vadd.f32 %v2883_v26, %v3615_v28 }
 0x265   : > { %2030 = vst [vmem:[#allocation2 + $0x22] ss:$8 sps:$4 sm:$0x22] %v1974_v32   ;;  %2038 = vst [vmem:[#allocation2 + $0x23] ss:$8 sps:$4 sm:$0x22] %v2014_v43   ;;  %v2015_v59 = vadd.f32 %v1999_v20, %v1919_v35 }
 0x266   : > { %2046 = vst [vmem:[#allocation2 + $0x23] ss:$8 sps:$4 sm:$0x44] %v1974_v32   ;;  %2054 = vst [vmem:[#allocation2 + $0x24] ss:$8 sps:$4 sm:$0x44] %v2014_v43  }
 0x267   : > { %2062 = vst [vmem:[#allocation2 + $0x24] sm:$0x8] %v1974_v32  ;;  %2070 = vst [vmem:[#allocation2 + $0x25] sm:$0x8] %v2014_v43  ;;  %v1925_v51 = vmul.f32 0.75, %v1889_v17  ;;  %v1957_v54 = vrot.slane %v1917_v45, 1 }
 0x268   : > { %v1901_v57 = vpop.f32.mrb[13].mxu1  ;;  %1980 = vst [vmem:[#allocation2 + $0x1] ss:$8 sps:$4 sm:$0x11] %v1972_v49   ;;  %2060 = vst [vmem:[#allocation2 + $0x4] sm:$0x8] %v1972_v49 }
 0x269   : > { %2020 = vst [vmem:[#allocation2 + $0x2] ss:$8 sps:$4 sm:$0x11] %v2012_v15   ;;  %2028 = vst [vmem:[#allocation2 + $0x2] ss:$8 sps:$4 sm:$0x22] %v1972_v49   ;;  %v1902_v60 = vadd.f32 %v3615_v28, %v1901_v57  ;;  %v1933_v56 = vadd.f32 %v1925_v51, %v1917_v45  ;;  %v1973_v24 = vadd.f32 %v1957_v54, %v1925_v51 }
 0x26a   : > { %2036 = vst [vmem:[#allocation2 + $0x3] ss:$8 sps:$4 sm:$0x22] %v2012_v15   ;;  %2044 = vst [vmem:[#allocation2 + $0x3] ss:$8 sps:$4 sm:$0x44] %v1972_v49  }
 0x26b   : > { %2052 = vst [vmem:[#allocation2 + $0x4] ss:$8 sps:$4 sm:$0x44] %v2012_v15   ;;  %2068 = vst [vmem:[#allocation2 + $0x5] sm:$0x8] %v2012_v15  ;;  %v2884_v34 = vpop.f32.mrb[14].mxu1 }
 0x26c   : > { %1943 = vst [vmem:[#allocation2 + $0x30] ss:$12 sps:$4 sm:$0x81] %v1935_v19   ;;  %1983 = vst [vmem:[#allocation2 + $0x31] ss:$8 sps:$4 sm:$0x11] %v1975_v46   ;;  %v1913_v27 = vadd.f32 %v2884_v34, %v3615_v28 }
 0x26d   : > { %2031 = vst [vmem:[#allocation2 + $0x32] ss:$8 sps:$4 sm:$0x22] %v1975_v46   ;;  %2047 = vst [vmem:[#allocation2 + $0x33] ss:$8 sps:$4 sm:$0x44] %v1975_v46  }
 0x26e   : > { %2063 = vst [vmem:[#allocation2 + $0x34] sm:$0x8] %v1975_v46  ;;  %v1997_v61 = vrot.slane %v1925_v51, 1  ;;  %v1922_v62 = vmul.f32 0.25, %v1910_v55  ;;  %v1904_v48 = vpop.f32.mrb[15].mxu1  ;;  %v1930_v63 = vmul.f32 0.75, %v1910_v55 }
 0x26f   : > { %2023 = vst [vmem:[#allocation2 + $0x32] ss:$8 sps:$4 sm:$0x11] %v2015_v59   ;;  %2039 = vst [vmem:[#allocation2 + $0x33] ss:$8 sps:$4 sm:$0x22] %v2015_v59   ;;  %v1905_v12 = vadd.f32 %v3615_v28, %v1904_v48 }
 0x270   : > { %2055 = vst [vmem:[#allocation2 + $0x34] ss:$8 sps:$4 sm:$0x44] %v2015_v59   ;;  %2071 = vst [vmem:[#allocation2 + $0x35] sm:$0x8] %v2015_v59  ;;  %v1920_v2 = vmul.f32 0.25, %v1902_v60  ;;  %v2013_v3 = vadd.f32 %v1997_v61, %v1917_v45  ;;  %v1938_v13 = vadd.f32 %v1930_v63, %v1922_v62 }
 0x271   : > { %v1928_v4 = vmul.f32 0.75, %v1902_v60  ;;  %1941 = vst [vmem:[#allocation2 + $0x10] ss:$12 sps:$4 sm:$0x81] %v1933_v56   ;;  %2061 = vst [vmem:[#allocation2 + $0x14] sm:$0x8] %v1973_v24 }
 0x272   : > { %1981 = vst [vmem:[#allocation2 + $0x11] ss:$8 sps:$4 sm:$0x11] %v1973_v24   ;;  %2029 = vst [vmem:[#allocation2 + $0x12] ss:$8 sps:$4 sm:$0x22] %v1973_v24  }
 0x273   : > { %2045 = vst [vmem:[#allocation2 + $0x13] ss:$8 sps:$4 sm:$0x44] %v1973_v24   ;;  %v1962_v42 = vrot.slane %v1922_v62, 1  ;;  %v2002_v30 = vrot.slane %v1930_v63, 1  ;;  %v1936_v37 = vadd.f32 %v1928_v4, %v1920_v2  ;;  %v1960_v5 = vrot.slane %v1920_v2, 1 }
 0x274   : > { %2021 = vst [vmem:[#allocation2 + $0x12] ss:$8 sps:$4 sm:$0x11] %v2013_v3   ;;  %2037 = vst [vmem:[#allocation2 + $0x13] ss:$8 sps:$4 sm:$0x22] %v2013_v3  }
 0x275   : > { %2053 = vst [vmem:[#allocation2 + $0x14] ss:$8 sps:$4 sm:$0x44] %v2013_v3   ;;  %2069 = vst [vmem:[#allocation2 + $0x15] sm:$0x8] %v2013_v3  ;;  %v1978_v6 = vadd.f32 %v1962_v42, %v1930_v63  ;;  %v2000_v8 = vrot.slane %v1928_v4, 1  ;;  %v2018_v16 = vadd.f32 %v2002_v30, %v1922_v62  ;;  %v1976_v18 = vadd.f32 %v1960_v5, %v1928_v4 }
 0x276   : > { %v1923_v10 = vmul.f32 0.25, %v1913_v27  ;;  %v1931_v9 = vmul.f32 0.75, %v1913_v27  ;;  %v2157_v11 = vld [vmem:[#allocation2 + $0x20] sm:$0xff]  ;;  %v2158_v14 = vld [vmem:[#allocation2 + $0x28] sm:$0xff]  ;;  %v3626_v22 = vmul.f32 0.25, %v1905_v12  ;;  %v3628_v23 = vmul.f32 0.75, %v1905_v12 }
 0x277   : > { %1946 = vst [vmem:[#allocation2 + $0x60] ss:$12 sps:$4 sm:$0x81] %v1938_v13   ;;  %1944 = vst [vmem:[#allocation2 + $0x40] ss:$12 sps:$4 sm:$0x81] %v1936_v37   ;;  %v2016_v17 = vadd.f32 %v2000_v8, %v1920_v2 }
 0x278   : > { %v3630_v28 = vmul.f32 0.25, %v2157_v11  ;;  %v3632_v29 = vmul.f32 0.25, %v2158_v14  ;;  %v3634_v58 = vmul.f32 0.75, %v2157_v11  ;;  %v3636_v33 = vmul.f32 0.75, %v2158_v14  ;;  %v2132_v52 = vld [vmem:[#allocation2] sm:$0xff]  ;;  %v2133_v7 = vld [vmem:[#allocation2 + $0x8] sm:$0xff] }
 0x279   : > { %1986 = vst [vmem:[#allocation2 + $0x61] ss:$8 sps:$4 sm:$0x11] %v1978_v6   ;;  %2034 = vst [vmem:[#allocation2 + $0x62] ss:$8 sps:$4 sm:$0x22] %v1978_v6   ;;  %v1939_v21 = vadd.f32 %v1931_v9, %v1923_v10  ;;  %v1937_v20 = vadd.f32 %v3628_v23, %v3626_v22 }
 0x27a   : > { %2050 = vst [vmem:[#allocation2 + $0x63] ss:$8 sps:$4 sm:$0x44] %v1978_v6   ;;  %2066 = vst [vmem:[#allocation2 + $0x64] sm:$0x8] %v1978_v6  ;;  %v3638_v25 = vmul.f32 0.25, %v2132_v52 }
 0x27b   : > { %v3640_v39 = vmul.f32 0.25, %v2133_v7  ;;  %v2139_v38 = vmul.f32 0.75, %v2132_v52  ;;  %v2140_v47 = vmul.f32 0.75, %v2133_v7  ;;  %2026 = vst [vmem:[#allocation2 + $0x62] ss:$8 sps:$4 sm:$0x11] %v2018_v16  }
 0x27c   : > { %2042 = vst [vmem:[#allocation2 + $0x63] ss:$8 sps:$4 sm:$0x22] %v2018_v16   ;;  %2058 = vst [vmem:[#allocation2 + $0x64] ss:$8 sps:$4 sm:$0x44] %v2018_v16  }
 0x27d   : > { %2074 = vst [vmem:[#allocation2 + $0x65] sm:$0x8] %v2018_v16  ;;  %1984 = vst [vmem:[#allocation2 + $0x41] ss:$8 sps:$4 sm:$0x11] %v1976_v18   ;;  %v2180_v53 = vld [vmem:[#allocation2 + $0x30] sm:$0xff]  ;;  %v2141_v35 = vadd.f32 %v2139_v38, %v3638_v25  ;;  %v2142_v1 = vadd.f32 %v2140_v47, %v3640_v39 }
 0x27e   : > { %2032 = vst [vmem:[#allocation2 + $0x42] ss:$8 sps:$4 sm:$0x22] %v1976_v18   ;;  %2048 = vst [vmem:[#allocation2 + $0x43] ss:$8 sps:$4 sm:$0x44] %v1976_v18  }
 0x27f   : > { %2064 = vst [vmem:[#allocation2 + $0x44] sm:$0x8] %v1976_v18  ;;  %v2181_v0 = vld [vmem:[#allocation2 + $0x38] sm:$0xff]  ;;  %v1963_v50 = vrot.slane %v1923_v10, 1  ;;  %v2003_v31 = vrot.slane %v1931_v9, 1  ;;  %v3651_v36 = vmul.f32 0.25, %v2180_v53  ;;  %2143 = vst [vmem:[%s3647_s7] sm:$0xff] %v2141_v35 }
 0x280   : > { %v3653_v40 = vmul.f32 0.25, %v2181_v0  ;;  %v3655_v41 = vmul.f32 0.75, %v2180_v53  ;;  %v3657_v32 = vmul.f32 0.75, %v2181_v0  ;;  %2024 = vst [vmem:[#allocation2 + $0x42] ss:$8 sps:$4 sm:$0x11] %v2016_v17  }
 0x281   : > { %2040 = vst [vmem:[#allocation2 + $0x43] ss:$8 sps:$4 sm:$0x22] %v2016_v17   ;;  %2056 = vst [vmem:[#allocation2 + $0x44] ss:$8 sps:$4 sm:$0x44] %v2016_v17   ;;  %v1979_v43 = vadd.f32 %v1963_v50, %v1931_v9  ;;  %v2019_v44 = vadd.f32 %v2003_v31, %v1923_v10  ;;  %v2193_v45 = vadd.f32 %v3651_v36, %v3634_v58 }
 0x282   : > { %2072 = vst [vmem:[#allocation2 + $0x45] sm:$0x8] %v2016_v17  ;;  %1947 = vst [vmem:[#allocation2 + $0x70] ss:$12 sps:$4 sm:$0x81] %v1939_v21   ;;  %v2194_v49 = vadd.f32 %v3653_v40, %v3636_v33  ;;  %v2135_v15 = vld [vmem:[#allocation2 + $0x10] sm:$0xff]  ;;  %v2209_v46 = vadd.f32 %v3655_v41, %v3630_v28  ;;  %v2210_v51 = vadd.f32 %v3657_v32, %v3632_v29 }
 0x283   : > { %2144 = vst [vmem:[%s3647_s7 + $0x8] sm:$0xff] %v2142_v1  ;;  %v2136_v19 = vld [vmem:[#allocation2 + $0x18] sm:$0xff]  ;;  %v1961_v26 = vrot.slane %v3626_v22, 1  ;;  %v2145_v54 = vmul.f32 0.25, %v2135_v15  ;;  %2067 = vst [vmem:[#allocation2 + $0x74] sm:$0x8] %v1979_v43 }
 0x284   : > { %v2146_v55 = vmul.f32 0.25, %v2136_v19  ;;  %1987 = vst [vmem:[#allocation2 + $0x71] ss:$8 sps:$4 sm:$0x11] %v1979_v43   ;;  %2075 = vst [vmem:[#allocation2 + $0x75] sm:$0x8] %v2019_v44 }
 0x285   : > { %2027 = vst [vmem:[#allocation2 + $0x72] ss:$8 sps:$4 sm:$0x11] %v2019_v44   ;;  %2035 = vst [vmem:[#allocation2 + $0x72] ss:$8 sps:$4 sm:$0x22] %v1979_v43   ;;  %v1977_v60 = vadd.f32 %v1961_v26, %v3628_v23  ;;  %v2147_v56 = vadd.f32 %v2145_v54, %v2139_v38  ;;  %v2186_v61 = vadd.f32 %v3634_v58, %v2145_v54 }
 0x286   : > { %2043 = vst [vmem:[#allocation2 + $0x73] ss:$8 sps:$4 sm:$0x22] %v2019_v44   ;;  %2051 = vst [vmem:[#allocation2 + $0x73] ss:$8 sps:$4 sm:$0x44] %v1979_v43   ;;  %v2148_v24 = vadd.f32 %v2146_v55, %v2140_v47  ;;  %v2187_v62 = vadd.f32 %v3636_v33, %v2146_v55 }
 0x287   : > { %2059 = vst [vmem:[#allocation2 + $0x74] ss:$8 sps:$4 sm:$0x44] %v2019_v44   ;;  %2500 = vst [vmem:[%s3647_s7 + $0x50] sm:$0xff] %v2193_v45  ;;  %v2161_v57 = vmul.f32 0.75, %v2135_v15  ;;  %v2162_v59 = vmul.f32 0.75, %v2136_v19 }
 0x288   : > { %2501 = vst [vmem:[%s3647_s7 + $0x58] sm:$0xff] %v2194_v49  ;;  %1945 = vst [vmem:[#allocation2 + $0x50] ss:$12 sps:$4 sm:$0x81] %v1937_v20   ;;  %v2001_v34 = vrot.slane %v3628_v23, 1  ;;  %v2249_v27 = vld [vmem:[#allocation2 + $0x60] sm:$0xff] }
 0x289   : > { %2502 = vst [vmem:[%s3647_s7 + $0x60] sm:$0xff] %v2209_v46  ;;  %2503 = vst [vmem:[%s3647_s7 + $0x68] sm:$0xff] %v2210_v51  ;;  %v2163_v48 = vadd.f32 %v2161_v57, %v3638_v25  ;;  %v2164_v63 = vadd.f32 %v2162_v59, %v3640_v39  ;;  %v2170_v2 = vadd.f32 %v3630_v28, %v2161_v57  ;;  %v2250_v3 = vld [vmem:[#allocation2 + $0x68] sm:$0xff]  ;;  %v2203_v42 = vld [vmem:[#allocation2 + $0x40] sm:$0xff]  ;;  %v2260_v8 = vmul.f32 0.25, %v2249_v27 }
 0x28a   : > { %v2171_v4 = vadd.f32 %v3632_v29, %v2162_v59  ;;  %1985 = vst [vmem:[#allocation2 + $0x51] ss:$8 sps:$4 sm:$0x11] %v1977_v60   ;;  %2033 = vst [vmem:[#allocation2 + $0x52] ss:$8 sps:$4 sm:$0x22] %v1977_v60   ;;  %v2017_v13 = vadd.f32 %v2001_v34, %v3626_v22 }
 0x28b   : > { %2049 = vst [vmem:[#allocation2 + $0x53] ss:$8 sps:$4 sm:$0x44] %v1977_v60   ;;  %2065 = vst [vmem:[#allocation2 + $0x54] sm:$0x8] %v1977_v60  ;;  %v2204_v12 = vld [vmem:[#allocation2 + $0x48] sm:$0xff] }
 0x28c   : > { %2492 = vst [vmem:[%s3647_s7 + $0x10] sm:$0xff] %v2147_v56  ;;  %2493 = vst [vmem:[%s3647_s7 + $0x18] sm:$0xff] %v2148_v24  ;;  %v2214_v30 = vmul.f32 0.25, %v2203_v42  ;;  %v2215_v37 = vmul.f32 0.25, %v2204_v12  ;;  %v2230_v5 = vmul.f32 0.75, %v2203_v42  ;;  %v2231_v6 = vmul.f32 0.75, %v2204_v12 }
 0x28d   : > { %2498 = vst [vmem:[%s3647_s7 + $0x40] sm:$0xff] %v2186_v61  ;;  %2499 = vst [vmem:[%s3647_s7 + $0x48] sm:$0xff] %v2187_v62  ;;  %v2261_v10 = vmul.f32 0.25, %v2250_v3  ;;  %v2276_v9 = vmul.f32 0.75, %v2249_v27  ;;  %v2277_v11 = vmul.f32 0.75, %v2250_v3 }
 0x28e   : > { %2494 = vst [vmem:[%s3647_s7 + $0x20] sm:$0xff] %v2163_v48  ;;  %2495 = vst [vmem:[%s3647_s7 + $0x28] sm:$0xff] %v2164_v63  ;;  %v2272_v14 = vld [vmem:[#allocation2 + $0x70] sm:$0xff]  ;;  %v2273_v16 = vld [vmem:[#allocation2 + $0x78] sm:$0xff]  ;;  %v2216_v18 = vadd.f32 %v2214_v30, %v3655_v41  ;;  %v2217_v22 = vadd.f32 %v2215_v37, %v3657_v32  ;;  %v2232_v23 = vadd.f32 %v2230_v5, %v3651_v36 }
 0x28f   : > { %2496 = vst [vmem:[%s3647_s7 + $0x30] sm:$0xff] %v2170_v2  ;;  %2497 = vst [vmem:[%s3647_s7 + $0x38] sm:$0xff] %v2171_v4  ;;  %v2233_v28 = vadd.f32 %v2231_v6, %v3653_v40  ;;  %v2283_v29 = vmul.f32 0.25, %v2272_v14  ;;  %v2284_v58 = vmul.f32 0.25, %v2273_v16  ;;  %v2296_v33 = vmul.f32 0.75, %v2272_v14 }
 0x290   : > { %2025 = vst [vmem:[#allocation2 + $0x52] ss:$8 sps:$4 sm:$0x11] %v2017_v13   ;;  %2041 = vst [vmem:[#allocation2 + $0x53] ss:$8 sps:$4 sm:$0x22] %v2017_v13  }
 0x291   : > { %2057 = vst [vmem:[#allocation2 + $0x54] ss:$8 sps:$4 sm:$0x44] %v2017_v13   ;;  %2073 = vst [vmem:[#allocation2 + $0x55] sm:$0x8] %v2017_v13  ;;  %v2297_v52 = vmul.f32 0.75, %v2273_v16  ;;  %v2285_v7 = vadd.f32 %v2283_v29, %v2276_v9  ;;  %v2286_v25 = vadd.f32 %v2284_v58, %v2277_v11  ;;  %v2298_v39 = vadd.f32 %v2296_v33, %v2260_v8 }
 0x292   : > { %2504 = vst [vmem:[%s3647_s7 + $0x70] sm:$0xff] %v2216_v18  ;;  %2505 = vst [vmem:[%s3647_s7 + $0x78] sm:$0xff] %v2217_v22  ;;  %v2305_v47 = vadd.f32 %v2296_v33, %v2283_v29 }
 0x293   : > { %2506 = vst [vmem:[%s3647_s7 + $0x80] sm:$0xff] %v2232_v23  ;;  %2507 = vst [vmem:[%s3647_s7 + $0x88] sm:$0xff] %v2233_v28  ;;  %v2299_v38 = vadd.f32 %v2297_v52, %v2261_v10  ;;  %v2306_v53 = vadd.f32 %v2297_v52, %v2284_v58 }
 0x294   : > { %2516 = vst [vmem:[%s3647_s7 + $0xd0] sm:$0xff] %v2285_v7  ;;  %2517 = vst [vmem:[%s3647_s7 + $0xd8] sm:$0xff] %v2286_v25 }
 0x295   : > { %2518 = vst [vmem:[%s3647_s7 + $0xe0] sm:$0xff] %v2298_v39  ;;  %2519 = vst [vmem:[%s3647_s7 + $0xe8] sm:$0xff] %v2299_v38 }
 0x296   : > { %2520 = vst [vmem:[%s3647_s7 + $0xf0] sm:$0xff] %v2305_v47  ;;  %2521 = vst [vmem:[%s3647_s7 + $0xf8] sm:$0xff] %v2306_v53 }
 0x298   : > { %v2226_v0 = vld [vmem:[#allocation2 + $0x50] sm:$0xff]  ;;  %v2227_v17 = vld [vmem:[#allocation2 + $0x58] sm:$0xff] }
 0x299   : > { %v2237_v21 = vmul.f32 0.25, %v2226_v0  ;;  %v2238_v50 = vmul.f32 0.25, %v2227_v17  ;;  %v2253_v31 = vmul.f32 0.75, %v2226_v0  ;;  %v2254_v35 = vmul.f32 0.75, %v2227_v17 }
 0x29b   : > { %v2239_v1 = vadd.f32 %v2237_v21, %v2230_v5  ;;  %v2240_v36 = vadd.f32 %v2238_v50, %v2231_v6  ;;  %v2255_v40 = vadd.f32 %v2253_v31, %v2214_v30  ;;  %v2256_v41 = vadd.f32 %v2254_v35, %v2215_v37 }
 0x29c   : > { %v2262_v32 = vadd.f32 %v2260_v8, %v2253_v31  ;;  %v2263_v43 = vadd.f32 %v2261_v10, %v2254_v35  ;;  %v2278_v44 = vadd.f32 %v2276_v9, %v2237_v21  ;;  %v2279_v45 = vadd.f32 %v2277_v11, %v2238_v50 }
 0x29d   : > { %2508 = vst [vmem:[%s3647_s7 + $0x90] sm:$0xff] %v2239_v1  ;;  %2509 = vst [vmem:[%s3647_s7 + $0x98] sm:$0xff] %v2240_v36 }
 0x29e   : > { %2510 = vst [vmem:[%s3647_s7 + $0xa0] sm:$0xff] %v2255_v40  ;;  %2511 = vst [vmem:[%s3647_s7 + $0xa8] sm:$0xff] %v2256_v41 }
 0x29f   : > { %2512 = vst [vmem:[%s3647_s7 + $0xb0] sm:$0xff] %v2262_v32  ;;  %2513 = vst [vmem:[%s3647_s7 + $0xb8] sm:$0xff] %v2263_v43 }
 0x2a0   : > { %2514 = vst [vmem:[%s3647_s7 + $0xc0] sm:$0xff] %v2278_v44  ;;  %2515 = vst [vmem:[%s3647_s7 + $0xc8] sm:$0xff] %v2279_v45 }
 0x2a1 PF: > { %s15_s18 = sadd.s32 1, %s3053_s18  }
 0x2a2   : > { %p12_p4 = scmp.ge.s32.totalorder %s15_s18, 4  }
 0x2a4   :  { %14 = sbr.rel (!%p12_p4) target bundleno = 1 (0x1), region = 92 }

</bundles_post_ra>
